<compile_context>
chip_gen: v6e
topology: v6e:2x2x1
jax: 0.10.0
libtpu: 0.0.40
codegen_flags: <defaults>
</compile_context>

<pallas_src>
import functools

import jax
import jax.numpy as jnp
from jax.experimental import pallas as pl
from jax.experimental.pallas import tpu as pltpu


# ---------------------------------------------------------------------------
# Pallas kernels
# ---------------------------------------------------------------------------
def _qkv_dwconv_kernel(x_ref, wq_ref, bq_ref, wdw_ref, bdw_ref, mask_ref,
                       o_ref, *, c, h, w):
    """Fused (FiLM-folded) qkv 1x1x1 conv + depthwise 3x3x3 conv.

    x_ref:    (1, dim, S)  bf16   per-batch input, resident across channel tiles
    wq_ref:   (1, TC, dim) bf16   FiLM-folded qkv weight rows for this tile
    bq_ref:   (1, TC, 1)   f32    FiLM-folded qkv bias
    wdw_ref:  (27, TC, 1)  f32    depthwise taps
    bdw_ref:  (TC, 1)      f32    depthwise bias
    mask_ref: (27, 1, S)   bf16   precomputed boundary masks (0/1)
    o_ref:    (1, TC, S)   bf16
    """
    S = c * h * w
    # qkv 1x1x1 conv (modulation already folded into wq/bq): MXU, bf16 operands
    pre = jnp.dot(wq_ref[0], x_ref[0],
                  preferred_element_type=jnp.float32) + bq_ref[0]     # (TC, S)

    # depthwise 3x3x3 conv on the flat S axis: 27 XLU rolls + hoisted masks
    acc = jnp.zeros(pre.shape, jnp.float32)
    tap = 0
    for dz in (-1, 0, 1):
        for dy in (-1, 0, 1):
            for dx in (-1, 0, 1):
                off = dz * h * w + dy * w + dx
                shifted = pre if off == 0 else pltpu.roll(pre, (-off) % S, axis=1)
                acc = acc + shifted * mask_ref[tap] * wdw_ref[tap]
                tap += 1
    o_ref[0] = (acc + bdw_ref[...]).astype(o_ref.dtype)


def _attention_head_kernel(temp_ref, q_ref, k_ref, v_ref, o_ref):
    """One (batch, head) grid step of the L2-normalized channel attention.

    temp_ref: (num_heads,) f32 in SMEM; q/k/v refs: (1, n_per, S) bf16.
    """
    hd = pl.program_id(1)
    q = q_ref[0].astype(jnp.float32)
    k = k_ref[0].astype(jnp.float32)

    # F.normalize(dim=-1): x / max(||x||, 1e-12) == x * rsqrt(max(||x||^2, 1e-24))
    qn = (q * jax.lax.rsqrt(
        jnp.maximum(jnp.sum(q * q, axis=-1, keepdims=True), 1e-24))).astype(jnp.bfloat16)
    kn = (k * jax.lax.rsqrt(
        jnp.maximum(jnp.sum(k * k, axis=-1, keepdims=True), 1e-24))).astype(jnp.bfloat16)

    a = jax.lax.dot_general(qn, kn, (((1,), (1,)), ((), ())),
                            preferred_element_type=jnp.float32)        # (n, n)
    a = a * temp_ref[hd]                                               # SMEM scalar
    m = jnp.max(a, axis=-1, keepdims=True)
    e = jnp.exp(a - m)
    p = e * pl.reciprocal(jnp.sum(e, axis=-1, keepdims=True), approx=True)
    oh = jnp.dot(p.astype(jnp.bfloat16), v_ref[0],
                 preferred_element_type=jnp.float32)                   # (n, S)
    o_ref[0] = oh.astype(o_ref.dtype)


def _project_out_kernel(x_ref, wp_ref, bp_ref, o_ref):
    """project_out 1x1x1 conv: single (dim,dim)x(dim,TS) matmul, lane-dense store."""
    o_ref[0] = (jnp.dot(wp_ref[...], x_ref[0],
                        preferred_element_type=jnp.float32)
                + bp_ref[...]).astype(o_ref.dtype)


# ---------------------------------------------------------------------------
# Tile / VMEM pickers
# ---------------------------------------------------------------------------
def _pick_seq_tile(S, preferred=2048):
    """Largest lane-aligned tile <= preferred dividing S (else full S)."""
    if S <= preferred:
        return S
    t = preferred
    while t >= 128:
        if S % t == 0:
            return t
        t //= 2
    return S


def _pick_chan_tile(C):
    """Channel tile for the fused qkv+dwconv kernel (multiple of 8, or full C)."""
    if C <= 256 or C % 8 != 0:
        return C
    for cand in (256, 128, 64, 32, 16, 8):
        if C % cand == 0:
            return cand
    return C


def _vmem_limit_bytes():
    """~3/4 of physical VMEM: ~96 MiB on v5e/v6e (128 MiB), ~48 MiB on v7x (64 MiB)."""
    try:
        cap = pltpu.get_tpu_info().vmem_capacity_bytes
    except Exception:
        cap = 64 * 1024 * 1024
    return int(min(cap * 3 // 4, 100 * 1024 * 1024))


# ---------------------------------------------------------------------------
# Wrapper
# ---------------------------------------------------------------------------
def attention3d_pallas(x, t, params, num_heads):
    b, dim, c, h, w = x.shape
    S = c * h * w
    C3 = 3 * dim
    n_per = dim // num_heads
    assert dim % num_heads == 0
    # head blocks must land on (8,128) sublane boundaries (review item 12)
    assert n_per % 8 == 0 or num_heads == 1, (
        "dim/num_heads must be a multiple of 8")  # TODO(synk): pad heads otherwise

    f32, bf16 = jnp.float32, jnp.bfloat16

    # --- parameter re-layout (channels on sublanes, S on lanes) ---
    Wqkv = params["Wqkv"].reshape(C3, dim).astype(f32)
    bqkv = params["bqkv"].reshape(C3).astype(f32)
    Wdw = params["Wdw"].reshape(C3, 27).T[:, :, None].astype(f32)      # (27,C3,1)
    bdw = params["bdw"].reshape(C3, 1).astype(f32)
    Wproj = params["Wproj"].reshape(dim, dim).astype(bf16)
    bproj = params["bproj"].reshape(dim, 1).astype(f32)
    temp = params["temperature"].reshape(num_heads).astype(f32)

    # FiLM (dense1/dense2) folded into per-batch effective qkv weights/bias:
    #   Wqkv @ (x*d1 + d2) + bqkv == (Wqkv*d1) @ x + (Wqkv@d2 + bqkv)
    d1 = (t @ params["W1"].T + params["b1"]).astype(f32)               # (B, dim)
    d2 = (t @ params["W2"].T + params["b2"]).astype(f32)
    Wq_eff = (Wqkv[None] * d1[:, None, :]).astype(bf16)                # (B, C3, dim)
    bq_eff = (d2 @ Wqkv.T + bqkv)[:, :, None].astype(f32)              # (B, C3, 1)

    # 27 boundary masks for the flat-roll depthwise conv, hoisted out of the
    # kernel (no per-block iota / div / mod / compare).  0/1 exact in bf16.
    s = jnp.arange(S)
    xs, ys, zs = s % w, (s // w) % h, s // (h * w)
    masks = []
    for dz in (-1, 0, 1):
        for dy in (-1, 0, 1):
            for dx in (-1, 0, 1):
                ok = ((zs + dz >= 0) & (zs + dz < c) &
                      (ys + dy >= 0) & (ys + dy < h) &
                      (xs + dx >= 0) & (xs + dx < w))
                masks.append(ok)
    mask27 = jnp.stack(masks).astype(bf16).reshape(27, 1, S)

    x_cs = x.reshape(b, dim, S).astype(bf16)         # NCDHW -> (B, dim, S): free

    TC = _pick_chan_tile(C3)
    TS = _pick_seq_tile(S)
    cp = pltpu.CompilerParams(dimension_semantics=("parallel", "parallel"),
                              vmem_limit_bytes=_vmem_limit_bytes())

    # ---- stage 1+2 fused: (FiLM-folded) qkv 1x1x1 conv + depthwise 3x3x3 ----
    qkv_dw = pl.pallas_call(
        functools.partial(_qkv_dwconv_kernel, c=c, h=h, w=w),
        out_shape=jax.ShapeDtypeStruct((b, C3, S), bf16),
        grid=(b, C3 // TC),
        in_specs=[
            pl.BlockSpec((1, dim, S), lambda i, j: (i, 0, 0)),   # x, resident/batch
            pl.BlockSpec((1, TC, dim), lambda i, j: (i, j, 0)),  # FiLM-folded Wqkv rows
            pl.BlockSpec((1, TC, 1), lambda i, j: (i, j, 0)),    # FiLM-folded bias
            pl.BlockSpec((27, TC, 1), lambda i, j: (0, j, 0)),   # depthwise taps
            pl.BlockSpec((TC, 1), lambda i, j: (j, 0)),          # depthwise bias
            pl.BlockSpec((27, 1, S), lambda i, j: (0, 0, 0)),    # boundary masks
        ],
        out_specs=pl.BlockSpec((1, TC, S), lambda i, j: (i, j, 0)),
        compiler_params=cp,
    )(x_cs, Wq_eff, bq_eff, Wdw, bdw, mask27)

    # ---- stage 3: channel attention, head-tiled grid (B, num_heads) ----
    head_out = pl.pallas_call(
        _attention_head_kernel,
        out_shape=jax.ShapeDtypeStruct((b, dim, S), bf16),
        grid=(b, num_heads),
        in_specs=[
            pl.BlockSpec(memory_space=pltpu.MemorySpace.SMEM),   # temperature
            pl.BlockSpec((1, n_per, S), lambda i, hd: (i, hd, 0)),                  # q
            pl.BlockSpec((1, n_per, S), lambda i, hd: (i, num_heads + hd, 0)),      # k
            pl.BlockSpec((1, n_per, S), lambda i, hd: (i, 2 * num_heads + hd, 0)),  # v
        ],
        out_specs=pl.BlockSpec((1, n_per, S), lambda i, hd: (i, hd, 0)),
        compiler_params=cp,
    )(temp, qkv_dw, qkv_dw, qkv_dw)

    # ---- stage 4: project_out 1x1x1 conv, S-tiled, single full-K matmul ----
    out_cs = pl.pallas_call(
        _project_out_kernel,
        out_shape=jax.ShapeDtypeStruct((b, dim, S), f32),
        grid=(b, S // TS),
        in_specs=[
            pl.BlockSpec((1, dim, TS), lambda i, j: (i, 0, j)),
            pl.BlockSpec((dim, dim), lambda i, j: (0, 0)),
            pl.BlockSpec((dim, 1), lambda i, j: (0, 0)),
        ],
        out_specs=pl.BlockSpec((1, dim, TS), lambda i, j: (i, 0, j)),
        compiler_params=cp,
    )(head_out, Wproj, bproj)

    # (B, dim, S) -> NCDHW: free reshape, no transpose.
    return out_cs.reshape(b, dim, c, h, w)


# ---------------------------------------------------------------------------
# Plain-JAX reference (mirrors the PyTorch forward) for verification
# ---------------------------------------------------------------------------
def attention3d_reference(x, t, params, num_heads):
    b, dim, c, h, w = x.shape
    S = c * h * w
    dn = ("NCDHW", "OIDHW", "NCDHW")

    d1 = t @ params["W1"].T + params["b1"]
    d2 = t @ params["W2"].T + params["b2"]
    xm = x * d1[:, :, None, None, None] + d2[:, :, None, None, None]

    qkv = jax.lax.conv_general_dilated(
        xm, params["Wqkv"], (1, 1, 1), "VALID", dimension_numbers=dn
    ) + params["bqkv"][None, :, None, None, None]
    qkv = jax.lax.conv_general_dilated(
        qkv, params["Wdw"], (1, 1, 1), [(1, 1)] * 3, dimension_numbers=dn,
        feature_group_count=3 * dim,
    ) + params["bdw"][None, :, None, None, None]

    q, k, v = jnp.split(qkv, 3, axis=1)

    def rr(a):
        return a.reshape(b, num_heads, dim // num_heads, S)

    q, k, v = rr(q), rr(k), rr(v)

    def l2n(a):
        nrm = jnp.sqrt(jnp.sum(a * a, axis=-1, keepdims=True))
        return a / jnp.maximum(nrm, 1e-12)

    q, k = l2n(q), l2n(k)
    attn = jnp.einsum("bhns,bhms->bhnm", q, k) * params["temperature"][None]
    attn = jax.nn.softmax(attn, axis=-1)
    out = jnp.einsum("bhnm,bhms->bhns", attn, v)
    out = out.reshape(b, dim, c, h, w)
    out = jax.lax.conv_general_dilated(
        out, params["Wproj"], (1, 1, 1), "VALID", dimension_numbers=dn
    ) + params["bproj"][None, :, None, None, None]
    return out


# ---------------------------------------------------------------------------
# Deterministic parameter init (PyTorch parameter shapes)
# ---------------------------------------------------------------------------
def init_params(key, dim, num_heads, hidden):
    C3 = 3 * dim
    ks = jax.random.split(key, 11)
    nrm = lambda k, s, sc: jax.random.normal(k, s, jnp.float32) * sc
    return dict(
        W1=nrm(ks[0], (dim, hidden), 0.2), b1=nrm(ks[1], (dim,), 0.1),
        W2=nrm(ks[2], (dim, hidden), 0.2), b2=nrm(ks[3], (dim,), 0.1),
        Wqkv=nrm(ks[4], (C3, dim, 1, 1, 1), 0.3), bqkv=nrm(ks[5], (C3,), 0.05),
        Wdw=nrm(ks[6], (C3, 1, 3, 3, 3), 0.2), bdw=nrm(ks[7], (C3,), 0.05),
        Wproj=nrm(ks[8], (dim, dim, 1, 1, 1), 0.3), bproj=nrm(ks[9], (dim,), 0.05),
        temperature=jax.random.uniform(ks[10], (num_heads, 1, 1), jnp.float32,
                                       0.5, 1.5),
    )


if __name__ == "__main__":
    B, DIM, HEADS, HIDDEN = 2, 16, 2, 32     # n_per = 8 (sublane-aligned heads)
    C, H, W = 4, 8, 8                        # 3D "spatial" dims -> S = 256

    key = jax.random.PRNGKey(0)
    kx, kt, kp = jax.random.split(key, 3)
    x = jax.random.normal(kx, (B, DIM, C, H, W), jnp.float32)
    t = jax.random.normal(kt, (B, HIDDEN), jnp.float32)
    params = init_params(kp, DIM, HEADS, HIDDEN)

    fwd = jax.jit(attention3d_pallas, static_argnums=3)
    out = jax.block_until_ready(fwd(x, t, params, HEADS))

    ref = attention3d_reference(x, t, params, HEADS)
    assert out.shape == ref.shape == (B, DIM, C, H, W)
    max_diff = float(jnp.max(jnp.abs(out - ref)))
    # bf16 MXU operands + bf16 intermediates (per perf review) vs. f32 XLA
    # reference: tolerance loosened accordingly.
    assert jnp.allclose(out, ref, atol=8e-2, rtol=8e-2), (
        "max abs diff = %f" % max_diff)

    print("KERNEL_OK")
</pallas_src>

<mosaic_0001>
module attributes {stable_mosaic.version = 11 : i64} {
  func.func @_attention_head_kernel(%arg0: i32, %arg1: i32, %arg2: memref<2xf32, #tpu.memory_space<smem>>, %arg3: memref<1x8x256xbf16, #tpu.memory_space<vmem>>, %arg4: memref<1x8x256xbf16, #tpu.memory_space<vmem>>, %arg5: memref<1x8x256xbf16, #tpu.memory_space<vmem>>, %arg6: memref<1x8x256xbf16, #tpu.memory_space<vmem>>) attributes {dimension_semantics = [#tpu.dimension_semantics<parallel>, #tpu.dimension_semantics<parallel>], iteration_bounds = array<i64: 2, 2>, scalar_prefetch = 0 : i64, scratch_operands = 0 : i64, tpu.core_type = #tpu.core_type<tc>, window_params = [{transform_indices = @transform_0, window_bounds = array<i64: 2>}, {transform_indices = @transform_1, window_bounds = array<i64: 1, 8, 256>}, {transform_indices = @transform_2, window_bounds = array<i64: 1, 8, 256>}, {transform_indices = @transform_3, window_bounds = array<i64: 1, 8, 256>}, {transform_indices = @transform_4, window_bounds = array<i64: 1, 8, 256>}]} {
    %c0 = arith.constant 0 : index
    %c0_0 = arith.constant 0 : index
    %c0_1 = arith.constant 0 : index
    %0 = vector.load %arg3[%c0, %c0_0, %c0_1] : memref<1x8x256xbf16, #tpu.memory_space<vmem>>, vector<1x8x256xbf16>
    %1 = vector.shape_cast %0 : vector<1x8x256xbf16> to vector<8x256xbf16>
    %2 = arith.extf %1 : vector<8x256xbf16> to vector<8x256xf32>
    %c0_2 = arith.constant 0 : index
    %c0_3 = arith.constant 0 : index
    %c0_4 = arith.constant 0 : index
    %3 = vector.load %arg4[%c0_2, %c0_3, %c0_4] : memref<1x8x256xbf16, #tpu.memory_space<vmem>>, vector<1x8x256xbf16>
    %4 = vector.shape_cast %3 : vector<1x8x256xbf16> to vector<8x256xbf16>
    %5 = arith.extf %4 : vector<8x256xbf16> to vector<8x256xf32>
    %6 = arith.mulf %2, %2 : vector<8x256xf32>
    %cst = arith.constant dense<0.000000e+00> : vector<8xf32>
    %7 = vector.multi_reduction <add>, %6, %cst [1] : vector<8x256xf32> to vector<8xf32>
    %8 = vector.shape_cast %7 : vector<8xf32> to vector<8x1xf32>
    %cst_5 = arith.constant 1.000000e-24 : f32
    %9 = vector.broadcast %cst_5 : f32 to vector<8x1xf32>
    %10 = arith.maximumf %8, %9 : vector<8x1xf32>
    %11 = math.rsqrt %10 : vector<8x1xf32>
    %12 = vector.broadcast %11 : vector<8x1xf32> to vector<8x256xf32>
    %13 = arith.mulf %2, %12 : vector<8x256xf32>
    %14 = arith.truncf %13 : vector<8x256xf32> to vector<8x256xbf16>
    %15 = arith.mulf %5, %5 : vector<8x256xf32>
    %cst_6 = arith.constant dense<0.000000e+00> : vector<8xf32>
    %16 = vector.multi_reduction <add>, %15, %cst_6 [1] : vector<8x256xf32> to vector<8xf32>
    %17 = vector.shape_cast %16 : vector<8xf32> to vector<8x1xf32>
    %cst_7 = arith.constant 1.000000e-24 : f32
    %18 = vector.broadcast %cst_7 : f32 to vector<8x1xf32>
    %19 = arith.maximumf %17, %18 : vector<8x1xf32>
    %20 = math.rsqrt %19 : vector<8x1xf32>
    %21 = vector.broadcast %20 : vector<8x1xf32> to vector<8x256xf32>
    %22 = arith.mulf %5, %21 : vector<8x256xf32>
    %23 = arith.truncf %22 : vector<8x256xf32> to vector<8x256xbf16>
    %cst_8 = arith.constant dense<0.000000e+00> : vector<8x8xf32>
    %24 = tpu.matmul %14, %23, %cst_8 {dimension_numbers = #tpu.dot_dimension_numbers<[1], [1], [0], [0], [0, 0, 1, 0], [], []>} : vector<8x256xbf16>, vector<8x256xbf16>, vector<8x8xf32> -> vector<8x8xf32>
    %25 = arith.index_cast %arg1 : i32 to index
    %26 = memref.load %arg2[%25] : memref<2xf32, #tpu.memory_space<smem>>
    %27 = vector.broadcast %26 : f32 to vector<8x8xf32>
    %28 = arith.mulf %24, %27 : vector<8x8xf32>
    %cst_9 = arith.constant dense<0xFF800000> : vector<8xf32>
    %29 = vector.multi_reduction <maximumf>, %28, %cst_9 [1] : vector<8x8xf32> to vector<8xf32>
    %30 = vector.shape_cast %29 : vector<8xf32> to vector<8x1xf32>
    %31 = vector.broadcast %30 : vector<8x1xf32> to vector<8x8xf32>
    %32 = arith.subf %28, %31 : vector<8x8xf32>
    %33 = math.exp %32 : vector<8x8xf32>
    %cst_10 = arith.constant dense<0.000000e+00> : vector<8xf32>
    %34 = vector.multi_reduction <add>, %33, %cst_10 [1] : vector<8x8xf32> to vector<8xf32>
    %35 = vector.shape_cast %34 : vector<8xf32> to vector<8x1xf32>
    %36 = tpu.reciprocal %35 {approx = true} : vector<8x1xf32> -> vector<8x1xf32>
    %37 = vector.broadcast %36 : vector<8x1xf32> to vector<8x8xf32>
    %38 = arith.mulf %33, %37 : vector<8x8xf32>
    %39 = arith.truncf %38 : vector<8x8xf32> to vector<8x8xbf16>
    %c0_11 = arith.constant 0 : index
    %c0_12 = arith.constant 0 : index
    %c0_13 = arith.constant 0 : index
    %40 = vector.load %arg5[%c0_11, %c0_12, %c0_13] : memref<1x8x256xbf16, #tpu.memory_space<vmem>>, vector<1x8x256xbf16>
    %41 = vector.shape_cast %40 : vector<1x8x256xbf16> to vector<8x256xbf16>
    %cst_14 = arith.constant dense<0.000000e+00> : vector<8x256xf32>
    %42 = tpu.matmul %39, %41, %cst_14 {dimension_numbers = #tpu.dot_dimension_numbers<[1], [0], [0], [1], [0, 0, 1, 1], [], []>} : vector<8x8xbf16>, vector<8x256xbf16>, vector<8x256xf32> -> vector<8x256xf32>
    %43 = arith.truncf %42 : vector<8x256xf32> to vector<8x256xbf16>
    %c0_15 = arith.constant 0 : index
    %c0_16 = arith.constant 0 : index
    %c0_17 = arith.constant 0 : index
    %44 = vector.load %arg6[%c0_15, %c0_16, %c0_17] : memref<1x8x256xbf16, #tpu.memory_space<vmem>>, vector<1x8x256xbf16>
    %45 = vector.shape_cast %44 : vector<1x8x256xbf16> to vector<8x256xbf16>
    %46 = vector.shape_cast %43 : vector<8x256xbf16> to vector<1x8x256xbf16>
    tpu.vector_store %arg6[%c0_15, %c0_16, %c0_17], %46 {strides = array<i32>} : memref<1x8x256xbf16, #tpu.memory_space<vmem>>, vector<1x8x256xbf16>,
    return
  }
  func.func @transform_0(%arg0: i32, %arg1: i32) -> i32 {
    %c0_i32 = arith.constant 0 : i32
    %c0_i32_0 = arith.constant 0 : i32
    return %c0_i32 : i32
  }
  func.func @transform_1(%arg0: i32, %arg1: i32) -> (i32, i32, i32) {
    %c0_i32 = arith.constant 0 : i32
    %c0_i32_0 = arith.constant 0 : i32
    return %arg0, %arg1, %c0_i32 : i32, i32, i32
  }
  func.func @transform_2(%arg0: i32, %arg1: i32) -> (i32, i32, i32) {
    %c2_i32 = arith.constant 2 : i32
    %0 = arith.addi %c2_i32, %arg1 : i32
    %c0_i32 = arith.constant 0 : i32
    %c0_i32_0 = arith.constant 0 : i32
    return %arg0, %0, %c0_i32 : i32, i32, i32
  }
  func.func @transform_3(%arg0: i32, %arg1: i32) -> (i32, i32, i32) {
    %c4_i32 = arith.constant 4 : i32
    %0 = arith.addi %c4_i32, %arg1 : i32
    %c0_i32 = arith.constant 0 : i32
    %c0_i32_0 = arith.constant 0 : i32
    return %arg0, %0, %c0_i32 : i32, i32, i32
  }
  func.func @transform_4(%arg0: i32, %arg1: i32) -> (i32, i32, i32) {
    %c0_i32 = arith.constant 0 : i32
    %c0_i32_0 = arith.constant 0 : i32
    return %arg0, %arg1, %c0_i32 : i32, i32, i32
  }
}

module attributes {stable_mosaic.version = 11 : i64} {
  func.func @_project_out_kernel(%arg0: i32, %arg1: i32, %arg2: memref<1x16x256xbf16, #tpu.memory_space<vmem>>, %arg3: memref<16x16xbf16, #tpu.memory_space<vmem>>, %arg4: memref<16x1xf32, #tpu.memory_space<vmem>>, %arg5: memref<1x16x256xf32, #tpu.memory_space<vmem>>) attributes {dimension_semantics = [#tpu.dimension_semantics<parallel>, #tpu.dimension_semantics<parallel>], iteration_bounds = array<i64: 2, 1>, scalar_prefetch = 0 : i64, scratch_operands = 0 : i64, tpu.core_type = #tpu.core_type<tc>, window_params = [{transform_indices = @transform_0, window_bounds = array<i64: 1, 16, 256>}, {pipeline_mode = #tpu.pipeline_mode<synchronous>, transform_indices = @transform_1, window_bounds = array<i64: 16, 16>}, {pipeline_mode = #tpu.pipeline_mode<synchronous>, transform_indices = @transform_2, window_bounds = array<i64: 16, 1>}, {transform_indices = @transform_3, window_bounds = array<i64: 1, 16, 256>}]} {
    %c0 = arith.constant 0 : index
    %c0_0 = arith.constant 0 : index
    %0 = vector.load %arg3[%c0, %c0_0] : memref<16x16xbf16, #tpu.memory_space<vmem>>, vector<16x16xbf16>
    %c0_1 = arith.constant 0 : index
    %c0_2 = arith.constant 0 : index
    %c0_3 = arith.constant 0 : index
    %1 = vector.load %arg2[%c0_1, %c0_2, %c0_3] : memref<1x16x256xbf16, #tpu.memory_space<vmem>>, vector<1x16x256xbf16>
    %2 = vector.shape_cast %1 : vector<1x16x256xbf16> to vector<16x256xbf16>
    %cst = arith.constant dense<0.000000e+00> : vector<16x256xf32>
    %3 = tpu.matmul %0, %2, %cst {dimension_numbers = #tpu.dot_dimension_numbers<[1], [0], [0], [1], [0, 0, 1, 1], [], []>} : vector<16x16xbf16>, vector<16x256xbf16>, vector<16x256xf32> -> vector<16x256xf32>
    %c0_4 = arith.constant 0 : index
    %c0_5 = arith.constant 0 : index
    %4 = vector.load %arg4[%c0_4, %c0_5] : memref<16x1xf32, #tpu.memory_space<vmem>>, vector<16x1xf32>
    %5 = vector.broadcast %4 : vector<16x1xf32> to vector<16x256xf32>
    %6 = arith.addf %3, %5 : vector<16x256xf32>
    %c0_6 = arith.constant 0 : index
    %c0_7 = arith.constant 0 : index
    %c0_8 = arith.constant 0 : index
    %7 = vector.load %arg5[%c0_6, %c0_7, %c0_8] : memref<1x16x256xf32, #tpu.memory_space<vmem>>, vector<1x16x256xf32>
    %8 = vector.shape_cast %7 : vector<1x16x256xf32> to vector<16x256xf32>
    %9 = vector.shape_cast %6 : vector<16x256xf32> to vector<1x16x256xf32>
    tpu.vector_store %arg5[%c0_6, %c0_7, %c0_8], %9 {strides = array<i32>} : memref<1x16x256xf32, #tpu.memory_space<vmem>>, vector<1x16x256xf32>,
    return
  }
  func.func @transform_0(%arg0: i32, %arg1: i32) -> (i32, i32, i32) {
    %c0_i32 = arith.constant 0 : i32
    %c0_i32_0 = arith.constant 0 : i32
    return %arg0, %c0_i32, %arg1 : i32, i32, i32
  }
  func.func @transform_1(%arg0: i32, %arg1: i32) -> (i32, i32) {
    %c0_i32 = arith.constant 0 : i32
    %c0_i32_0 = arith.constant 0 : i32
    %c0_i32_1 = arith.constant 0 : i32
    return %c0_i32, %c0_i32_0 : i32, i32
  }
  func.func @transform_2(%arg0: i32, %arg1: i32) -> (i32, i32) {
    %c0_i32 = arith.constant 0 : i32
    %c0_i32_0 = arith.constant 0 : i32
    %c0_i32_1 = arith.constant 0 : i32
    return %c0_i32, %c0_i32_0 : i32, i32
  }
  func.func @transform_3(%arg0: i32, %arg1: i32) -> (i32, i32, i32) {
    %c0_i32 = arith.constant 0 : i32
    %c0_i32_0 = arith.constant 0 : i32
    return %arg0, %c0_i32, %arg1 : i32, i32, i32
  }
}

module attributes {stable_mosaic.version = 11 : i64} {
  func.func @_qkv_dwconv_kernel(%arg0: i32, %arg1: i32, %arg2: memref<1x16x256xbf16, #tpu.memory_space<vmem>>, %arg3: memref<1x48x16xbf16, #tpu.memory_space<vmem>>, %arg4: memref<1x48x1xf32, #tpu.memory_space<vmem>>, %arg5: memref<27x48x1xf32, #tpu.memory_space<vmem>>, %arg6: memref<48x1xf32, #tpu.memory_space<vmem>>, %arg7: memref<27x1x256xbf16, #tpu.memory_space<vmem>>, %arg8: memref<1x48x256xbf16, #tpu.memory_space<vmem>>) attributes {dimension_semantics = [#tpu.dimension_semantics<parallel>, #tpu.dimension_semantics<parallel>], iteration_bounds = array<i64: 2, 1>, scalar_prefetch = 0 : i64, scratch_operands = 0 : i64, tpu.core_type = #tpu.core_type<tc>, window_params = [{transform_indices = @transform_0, window_bounds = array<i64: 1, 16, 256>}, {transform_indices = @transform_1, window_bounds = array<i64: 1, 48, 16>}, {transform_indices = @transform_2, window_bounds = array<i64: 1, 48, 1>}, {transform_indices = @transform_3, window_bounds = array<i64: 27, 48, 1>}, {transform_indices = @transform_4, window_bounds = array<i64: 48, 1>}, {pipeline_mode = #tpu.pipeline_mode<synchronous>, transform_indices = @transform_5, window_bounds = array<i64: 27, 1, 256>}, {transform_indices = @transform_6, window_bounds = array<i64: 1, 48, 256>}]} {
    %c0 = arith.constant 0 : index
    %c0_0 = arith.constant 0 : index
    %c0_1 = arith.constant 0 : index
    %0 = vector.load %arg3[%c0, %c0_0, %c0_1] : memref<1x48x16xbf16, #tpu.memory_space<vmem>>, vector<1x48x16xbf16>
    %1 = vector.shape_cast %0 : vector<1x48x16xbf16> to vector<48x16xbf16>
    %c0_2 = arith.constant 0 : index
    %c0_3 = arith.constant 0 : index
    %c0_4 = arith.constant 0 : index
    %2 = vector.load %arg2[%c0_2, %c0_3, %c0_4] : memref<1x16x256xbf16, #tpu.memory_space<vmem>>, vector<1x16x256xbf16>
    %3 = vector.shape_cast %2 : vector<1x16x256xbf16> to vector<16x256xbf16>
    %cst = arith.constant dense<0.000000e+00> : vector<48x256xf32>
    %4 = tpu.matmul %1, %3, %cst {dimension_numbers = #tpu.dot_dimension_numbers<[1], [0], [0], [1], [0, 0, 1, 1], [], []>} : vector<48x16xbf16>, vector<16x256xbf16>, vector<48x256xf32> -> vector<48x256xf32>
    %c0_5 = arith.constant 0 : index
    %c0_6 = arith.constant 0 : index
    %c0_7 = arith.constant 0 : index
    %5 = vector.load %arg4[%c0_5, %c0_6, %c0_7] : memref<1x48x1xf32, #tpu.memory_space<vmem>>, vector<1x48x1xf32>
    %6 = vector.shape_cast %5 : vector<1x48x1xf32> to vector<48x1xf32>
    %7 = vector.broadcast %6 : vector<48x1xf32> to vector<48x256xf32>
    %8 = arith.addf %4, %7 : vector<48x256xf32>
    %cst_8 = arith.constant 0.000000e+00 : f32
    %9 = vector.broadcast %cst_8 : f32 to vector<48x256xf32>
    %c73_i32 = arith.constant 73 : i32
    %10 = tpu.dynamic_rotate %8 by %c73_i32 dim 1 : vector<48x256xf32>, i32 -> vector<48x256xf32>
    %c0_9 = arith.constant 0 : index
    %c0_10 = arith.constant 0 : index
    %c0_11 = arith.constant 0 : index
    %11 = vector.load %arg7[%c0_9, %c0_10, %c0_11] : memref<27x1x256xbf16, #tpu.memory_space<vmem>>, vector<1x1x256xbf16>
    %12 = vector.shape_cast %11 : vector<1x1x256xbf16> to vector<1x256xbf16>
    %13 = arith.extf %12 : vector<1x256xbf16> to vector<1x256xf32>
    %14 = vector.broadcast %13 : vector<1x256xf32> to vector<48x256xf32>
    %15 = arith.mulf %10, %14 : vector<48x256xf32>
    %c0_12 = arith.constant 0 : index
    %c0_13 = arith.constant 0 : index
    %c0_14 = arith.constant 0 : index
    %16 = vector.load %arg5[%c0_12, %c0_13, %c0_14] : memref<27x48x1xf32, #tpu.memory_space<vmem>>, vector<1x48x1xf32>
    %17 = vector.shape_cast %16 : vector<1x48x1xf32> to vector<48x1xf32>
    %18 = vector.broadcast %17 : vector<48x1xf32> to vector<48x256xf32>
    %19 = arith.mulf %15, %18 : vector<48x256xf32>
    %20 = arith.addf %9, %19 : vector<48x256xf32>
    %c72_i32 = arith.constant 72 : i32
    %21 = tpu.dynamic_rotate %8 by %c72_i32 dim 1 : vector<48x256xf32>, i32 -> vector<48x256xf32>
    %c1 = arith.constant 1 : index
    %c0_15 = arith.constant 0 : index
    %c0_16 = arith.constant 0 : index
    %22 = vector.load %arg7[%c1, %c0_15, %c0_16] : memref<27x1x256xbf16, #tpu.memory_space<vmem>>, vector<1x1x256xbf16>
    %23 = vector.shape_cast %22 : vector<1x1x256xbf16> to vector<1x256xbf16>
    %24 = arith.extf %23 : vector<1x256xbf16> to vector<1x256xf32>
    %25 = vector.broadcast %24 : vector<1x256xf32> to vector<48x256xf32>
    %26 = arith.mulf %21, %25 : vector<48x256xf32>
    %c1_17 = arith.constant 1 : index
    %c0_18 = arith.constant 0 : index
    %c0_19 = arith.constant 0 : index
    %27 = vector.load %arg5[%c1_17, %c0_18, %c0_19] : memref<27x48x1xf32, #tpu.memory_space<vmem>>, vector<1x48x1xf32>
    %28 = vector.shape_cast %27 : vector<1x48x1xf32> to vector<48x1xf32>
    %29 = vector.broadcast %28 : vector<48x1xf32> to vector<48x256xf32>
    %30 = arith.mulf %26, %29 : vector<48x256xf32>
    %31 = arith.addf %20, %30 : vector<48x256xf32>
    %c71_i32 = arith.constant 71 : i32
    %32 = tpu.dynamic_rotate %8 by %c71_i32 dim 1 : vector<48x256xf32>, i32 -> vector<48x256xf32>
    %c2 = arith.constant 2 : index
    %c0_20 = arith.constant 0 : index
    %c0_21 = arith.constant 0 : index
    %33 = vector.load %arg7[%c2, %c0_20, %c0_21] : memref<27x1x256xbf16, #tpu.memory_space<vmem>>, vector<1x1x256xbf16>
    %34 = vector.shape_cast %33 : vector<1x1x256xbf16> to vector<1x256xbf16>
    %35 = arith.extf %34 : vector<1x256xbf16> to vector<1x256xf32>
    %36 = vector.broadcast %35 : vector<1x256xf32> to vector<48x256xf32>
    %37 = arith.mulf %32, %36 : vector<48x256xf32>
    %c2_22 = arith.constant 2 : index
    %c0_23 = arith.constant 0 : index
    %c0_24 = arith.constant 0 : index
    %38 = vector.load %arg5[%c2_22, %c0_23, %c0_24] : memref<27x48x1xf32, #tpu.memory_space<vmem>>, vector<1x48x1xf32>
    %39 = vector.shape_cast %38 : vector<1x48x1xf32> to vector<48x1xf32>
    %40 = vector.broadcast %39 : vector<48x1xf32> to vector<48x256xf32>
    %41 = arith.mulf %37, %40 : vector<48x256xf32>
    %42 = arith.addf %31, %41 : vector<48x256xf32>
    %c65_i32 = arith.constant 65 : i32
    %43 = tpu.dynamic_rotate %8 by %c65_i32 dim 1 : vector<48x256xf32>, i32 -> vector<48x256xf32>
    %c3 = arith.constant 3 : index
    %c0_25 = arith.constant 0 : index
    %c0_26 = arith.constant 0 : index
    %44 = vector.load %arg7[%c3, %c0_25, %c0_26] : memref<27x1x256xbf16, #tpu.memory_space<vmem>>, vector<1x1x256xbf16>
    %45 = vector.shape_cast %44 : vector<1x1x256xbf16> to vector<1x256xbf16>
    %46 = arith.extf %45 : vector<1x256xbf16> to vector<1x256xf32>
    %47 = vector.broadcast %46 : vector<1x256xf32> to vector<48x256xf32>
    %48 = arith.mulf %43, %47 : vector<48x256xf32>
    %c3_27 = arith.constant 3 : index
    %c0_28 = arith.constant 0 : index
    %c0_29 = arith.constant 0 : index
    %49 = vector.load %arg5[%c3_27, %c0_28, %c0_29] : memref<27x48x1xf32, #tpu.memory_space<vmem>>, vector<1x48x1xf32>
    %50 = vector.shape_cast %49 : vector<1x48x1xf32> to vector<48x1xf32>
    %51 = vector.broadcast %50 : vector<48x1xf32> to vector<48x256xf32>
    %52 = arith.mulf %48, %51 : vector<48x256xf32>
    %53 = arith.addf %42, %52 : vector<48x256xf32>
    %c64_i32 = arith.constant 64 : i32
    %54 = tpu.dynamic_rotate %8 by %c64_i32 dim 1 : vector<48x256xf32>, i32 -> vector<48x256xf32>
    %c4 = arith.constant 4 : index
    %c0_30 = arith.constant 0 : index
    %c0_31 = arith.constant 0 : index
    %55 = vector.load %arg7[%c4, %c0_30, %c0_31] : memref<27x1x256xbf16, #tpu.memory_space<vmem>>, vector<1x1x256xbf16>
    %56 = vector.shape_cast %55 : vector<1x1x256xbf16> to vector<1x256xbf16>
    %57 = arith.extf %56 : vector<1x256xbf16> to vector<1x256xf32>
    %58 = vector.broadcast %57 : vector<1x256xf32> to vector<48x256xf32>
    %59 = arith.mulf %54, %58 : vector<48x256xf32>
    %c4_32 = arith.constant 4 : index
    %c0_33 = arith.constant 0 : index
    %c0_34 = arith.constant 0 : index
    %60 = vector.load %arg5[%c4_32, %c0_33, %c0_34] : memref<27x48x1xf32, #tpu.memory_space<vmem>>, vector<1x48x1xf32>
    %61 = vector.shape_cast %60 : vector<1x48x1xf32> to vector<48x1xf32>
    %62 = vector.broadcast %61 : vector<48x1xf32> to vector<48x256xf32>
    %63 = arith.mulf %59, %62 : vector<48x256xf32>
    %64 = arith.addf %53, %63 : vector<48x256xf32>
    %c63_i32 = arith.constant 63 : i32
    %65 = tpu.dynamic_rotate %8 by %c63_i32 dim 1 : vector<48x256xf32>, i32 -> vector<48x256xf32>
    %c5 = arith.constant 5 : index
    %c0_35 = arith.constant 0 : index
    %c0_36 = arith.constant 0 : index
    %66 = vector.load %arg7[%c5, %c0_35, %c0_36] : memref<27x1x256xbf16, #tpu.memory_space<vmem>>, vector<1x1x256xbf16>
    %67 = vector.shape_cast %66 : vector<1x1x256xbf16> to vector<1x256xbf16>
    %68 = arith.extf %67 : vector<1x256xbf16> to vector<1x256xf32>
    %69 = vector.broadcast %68 : vector<1x256xf32> to vector<48x256xf32>
    %70 = arith.mulf %65, %69 : vector<48x256xf32>
    %c5_37 = arith.constant 5 : index
    %c0_38 = arith.constant 0 : index
    %c0_39 = arith.constant 0 : index
    %71 = vector.load %arg5[%c5_37, %c0_38, %c0_39] : memref<27x48x1xf32, #tpu.memory_space<vmem>>, vector<1x48x1xf32>
    %72 = vector.shape_cast %71 : vector<1x48x1xf32> to vector<48x1xf32>
    %73 = vector.broadcast %72 : vector<48x1xf32> to vector<48x256xf32>
    %74 = arith.mulf %70, %73 : vector<48x256xf32>
    %75 = arith.addf %64, %74 : vector<48x256xf32>
    %c57_i32 = arith.constant 57 : i32
    %76 = tpu.dynamic_rotate %8 by %c57_i32 dim 1 : vector<48x256xf32>, i32 -> vector<48x256xf32>
    %c6 = arith.constant 6 : index
    %c0_40 = arith.constant 0 : index
    %c0_41 = arith.constant 0 : index
    %77 = vector.load %arg7[%c6, %c0_40, %c0_41] : memref<27x1x256xbf16, #tpu.memory_space<vmem>>, vector<1x1x256xbf16>
    %78 = vector.shape_cast %77 : vector<1x1x256xbf16> to vector<1x256xbf16>
    %79 = arith.extf %78 : vector<1x256xbf16> to vector<1x256xf32>
    %80 = vector.broadcast %79 : vector<1x256xf32> to vector<48x256xf32>
    %81 = arith.mulf %76, %80 : vector<48x256xf32>
    %c6_42 = arith.constant 6 : index
    %c0_43 = arith.constant 0 : index
    %c0_44 = arith.constant 0 : index
    %82 = vector.load %arg5[%c6_42, %c0_43, %c0_44] : memref<27x48x1xf32, #tpu.memory_space<vmem>>, vector<1x48x1xf32>
    %83 = vector.shape_cast %82 : vector<1x48x1xf32> to vector<48x1xf32>
    %84 = vector.broadcast %83 : vector<48x1xf32> to vector<48x256xf32>
    %85 = arith.mulf %81, %84 : vector<48x256xf32>
    %86 = arith.addf %75, %85 : vector<48x256xf32>
    %c56_i32 = arith.constant 56 : i32
    %87 = tpu.dynamic_rotate %8 by %c56_i32 dim 1 : vector<48x256xf32>, i32 -> vector<48x256xf32>
    %c7 = arith.constant 7 : index
    %c0_45 = arith.constant 0 : index
    %c0_46 = arith.constant 0 : index
    %88 = vector.load %arg7[%c7, %c0_45, %c0_46] : memref<27x1x256xbf16, #tpu.memory_space<vmem>>, vector<1x1x256xbf16>
    %89 = vector.shape_cast %88 : vector<1x1x256xbf16> to vector<1x256xbf16>
    %90 = arith.extf %89 : vector<1x256xbf16> to vector<1x256xf32>
    %91 = vector.broadcast %90 : vector<1x256xf32> to vector<48x256xf32>
    %92 = arith.mulf %87, %91 : vector<48x256xf32>
    %c7_47 = arith.constant 7 : index
    %c0_48 = arith.constant 0 : index
    %c0_49 = arith.constant 0 : index
    %93 = vector.load %arg5[%c7_47, %c0_48, %c0_49] : memref<27x48x1xf32, #tpu.memory_space<vmem>>, vector<1x48x1xf32>
    %94 = vector.shape_cast %93 : vector<1x48x1xf32> to vector<48x1xf32>
    %95 = vector.broadcast %94 : vector<48x1xf32> to vector<48x256xf32>
    %96 = arith.mulf %92, %95 : vector<48x256xf32>
    %97 = arith.addf %86, %96 : vector<48x256xf32>
    %c55_i32 = arith.constant 55 : i32
    %98 = tpu.dynamic_rotate %8 by %c55_i32 dim 1 : vector<48x256xf32>, i32 -> vector<48x256xf32>
    %c8 = arith.constant 8 : index
    %c0_50 = arith.constant 0 : index
    %c0_51 = arith.constant 0 : index
    %99 = vector.load %arg7[%c8, %c0_50, %c0_51] : memref<27x1x256xbf16, #tpu.memory_space<vmem>>, vector<1x1x256xbf16>
    %100 = vector.shape_cast %99 : vector<1x1x256xbf16> to vector<1x256xbf16>
    %101 = arith.extf %100 : vector<1x256xbf16> to vector<1x256xf32>
    %102 = vector.broadcast %101 : vector<1x256xf32> to vector<48x256xf32>
    %103 = arith.mulf %98, %102 : vector<48x256xf32>
    %c8_52 = arith.constant 8 : index
    %c0_53 = arith.constant 0 : index
    %c0_54 = arith.constant 0 : index
    %104 = vector.load %arg5[%c8_52, %c0_53, %c0_54] : memref<27x48x1xf32, #tpu.memory_space<vmem>>, vector<1x48x1xf32>
    %105 = vector.shape_cast %104 : vector<1x48x1xf32> to vector<48x1xf32>
    %106 = vector.broadcast %105 : vector<48x1xf32> to vector<48x256xf32>
    %107 = arith.mulf %103, %106 : vector<48x256xf32>
    %108 = arith.addf %97, %107 : vector<48x256xf32>
    %c9_i32 = arith.constant 9 : i32
    %109 = tpu.dynamic_rotate %8 by %c9_i32 dim 1 : vector<48x256xf32>, i32 -> vector<48x256xf32>
    %c9 = arith.constant 9 : index
    %c0_55 = arith.constant 0 : index
    %c0_56 = arith.constant 0 : index
    %110 = vector.load %arg7[%c9, %c0_55, %c0_56] : memref<27x1x256xbf16, #tpu.memory_space<vmem>>, vector<1x1x256xbf16>
    %111 = vector.shape_cast %110 : vector<1x1x256xbf16> to vector<1x256xbf16>
    %112 = arith.extf %111 : vector<1x256xbf16> to vector<1x256xf32>
    %113 = vector.broadcast %112 : vector<1x256xf32> to vector<48x256xf32>
    %114 = arith.mulf %109, %113 : vector<48x256xf32>
    %c9_57 = arith.constant 9 : index
    %c0_58 = arith.constant 0 : index
    %c0_59 = arith.constant 0 : index
    %115 = vector.load %arg5[%c9_57, %c0_58, %c0_59] : memref<27x48x1xf32, #tpu.memory_space<vmem>>, vector<1x48x1xf32>
    %116 = vector.shape_cast %115 : vector<1x48x1xf32> to vector<48x1xf32>
    %117 = vector.broadcast %116 : vector<48x1xf32> to vector<48x256xf32>
    %118 = arith.mulf %114, %117 : vector<48x256xf32>
    %119 = arith.addf %108, %118 : vector<48x256xf32>
    %c8_i32 = arith.constant 8 : i32
    %120 = tpu.dynamic_rotate %8 by %c8_i32 dim 1 : vector<48x256xf32>, i32 -> vector<48x256xf32>
    %c10 = arith.constant 10 : index
    %c0_60 = arith.constant 0 : index
    %c0_61 = arith.constant 0 : index
    %121 = vector.load %arg7[%c10, %c0_60, %c0_61] : memref<27x1x256xbf16, #tpu.memory_space<vmem>>, vector<1x1x256xbf16>
    %122 = vector.shape_cast %121 : vector<1x1x256xbf16> to vector<1x256xbf16>
    %123 = arith.extf %122 : vector<1x256xbf16> to vector<1x256xf32>
    %124 = vector.broadcast %123 : vector<1x256xf32> to vector<48x256xf32>
    %125 = arith.mulf %120, %124 : vector<48x256xf32>
    %c10_62 = arith.constant 10 : index
    %c0_63 = arith.constant 0 : index
    %c0_64 = arith.constant 0 : index
    %126 = vector.load %arg5[%c10_62, %c0_63, %c0_64] : memref<27x48x1xf32, #tpu.memory_space<vmem>>, vector<1x48x1xf32>
    %127 = vector.shape_cast %126 : vector<1x48x1xf32> to vector<48x1xf32>
    %128 = vector.broadcast %127 : vector<48x1xf32> to vector<48x256xf32>
    %129 = arith.mulf %125, %128 : vector<48x256xf32>
    %130 = arith.addf %119, %129 : vector<48x256xf32>
    %c7_i32 = arith.constant 7 : i32
    %131 = tpu.dynamic_rotate %8 by %c7_i32 dim 1 : vector<48x256xf32>, i32 -> vector<48x256xf32>
    %c11 = arith.constant 11 : index
    %c0_65 = arith.constant 0 : index
    %c0_66 = arith.constant 0 : index
    %132 = vector.load %arg7[%c11, %c0_65, %c0_66] : memref<27x1x256xbf16, #tpu.memory_space<vmem>>, vector<1x1x256xbf16>
    %133 = vector.shape_cast %132 : vector<1x1x256xbf16> to vector<1x256xbf16>
    %134 = arith.extf %133 : vector<1x256xbf16> to vector<1x256xf32>
    %135 = vector.broadcast %134 : vector<1x256xf32> to vector<48x256xf32>
    %136 = arith.mulf %131, %135 : vector<48x256xf32>
    %c11_67 = arith.constant 11 : index
    %c0_68 = arith.constant 0 : index
    %c0_69 = arith.constant 0 : index
    %137 = vector.load %arg5[%c11_67, %c0_68, %c0_69] : memref<27x48x1xf32, #tpu.memory_space<vmem>>, vector<1x48x1xf32>
    %138 = vector.shape_cast %137 : vector<1x48x1xf32> to vector<48x1xf32>
    %139 = vector.broadcast %138 : vector<48x1xf32> to vector<48x256xf32>
    %140 = arith.mulf %136, %139 : vector<48x256xf32>
    %141 = arith.addf %130, %140 : vector<48x256xf32>
    %c1_i32 = arith.constant 1 : i32
    %142 = tpu.dynamic_rotate %8 by %c1_i32 dim 1 : vector<48x256xf32>, i32 -> vector<48x256xf32>
    %c12 = arith.constant 12 : index
    %c0_70 = arith.constant 0 : index
    %c0_71 = arith.constant 0 : index
    %143 = vector.load %arg7[%c12, %c0_70, %c0_71] : memref<27x1x256xbf16, #tpu.memory_space<vmem>>, vector<1x1x256xbf16>
    %144 = vector.shape_cast %143 : vector<1x1x256xbf16> to vector<1x256xbf16>
    %145 = arith.extf %144 : vector<1x256xbf16> to vector<1x256xf32>
    %146 = vector.broadcast %145 : vector<1x256xf32> to vector<48x256xf32>
    %147 = arith.mulf %142, %146 : vector<48x256xf32>
    %c12_72 = arith.constant 12 : index
    %c0_73 = arith.constant 0 : index
    %c0_74 = arith.constant 0 : index
    %148 = vector.load %arg5[%c12_72, %c0_73, %c0_74] : memref<27x48x1xf32, #tpu.memory_space<vmem>>, vector<1x48x1xf32>
    %149 = vector.shape_cast %148 : vector<1x48x1xf32> to vector<48x1xf32>
    %150 = vector.broadcast %149 : vector<48x1xf32> to vector<48x256xf32>
    %151 = arith.mulf %147, %150 : vector<48x256xf32>
    %152 = arith.addf %141, %151 : vector<48x256xf32>
    %c13 = arith.constant 13 : index
    %c0_75 = arith.constant 0 : index
    %c0_76 = arith.constant 0 : index
    %153 = vector.load %arg7[%c13, %c0_75, %c0_76] : memref<27x1x256xbf16, #tpu.memory_space<vmem>>, vector<1x1x256xbf16>
    %154 = vector.shape_cast %153 : vector<1x1x256xbf16> to vector<1x256xbf16>
    %155 = arith.extf %154 : vector<1x256xbf16> to vector<1x256xf32>
    %156 = vector.broadcast %155 : vector<1x256xf32> to vector<48x256xf32>
    %157 = arith.mulf %8, %156 : vector<48x256xf32>
    %c13_77 = arith.constant 13 : index
    %c0_78 = arith.constant 0 : index
    %c0_79 = arith.constant 0 : index
    %158 = vector.load %arg5[%c13_77, %c0_78, %c0_79] : memref<27x48x1xf32, #tpu.memory_space<vmem>>, vector<1x48x1xf32>
    %159 = vector.shape_cast %158 : vector<1x48x1xf32> to vector<48x1xf32>
    %160 = vector.broadcast %159 : vector<48x1xf32> to vector<48x256xf32>
    %161 = arith.mulf %157, %160 : vector<48x256xf32>
    %162 = arith.addf %152, %161 : vector<48x256xf32>
    %c255_i32 = arith.constant 255 : i32
    %163 = tpu.dynamic_rotate %8 by %c255_i32 dim 1 : vector<48x256xf32>, i32 -> vector<48x256xf32>
    %c14 = arith.constant 14 : index
    %c0_80 = arith.constant 0 : index
    %c0_81 = arith.constant 0 : index
    %164 = vector.load %arg7[%c14, %c0_80, %c0_81] : memref<27x1x256xbf16, #tpu.memory_space<vmem>>, vector<1x1x256xbf16>
    %165 = vector.shape_cast %164 : vector<1x1x256xbf16> to vector<1x256xbf16>
    %166 = arith.extf %165 : vector<1x256xbf16> to vector<1x256xf32>
    %167 = vector.broadcast %166 : vector<1x256xf32> to vector<48x256xf32>
    %168 = arith.mulf %163, %167 : vector<48x256xf32>
    %c14_82 = arith.constant 14 : index
    %c0_83 = arith.constant 0 : index
    %c0_84 = arith.constant 0 : index
    %169 = vector.load %arg5[%c14_82, %c0_83, %c0_84] : memref<27x48x1xf32, #tpu.memory_space<vmem>>, vector<1x48x1xf32>
    %170 = vector.shape_cast %169 : vector<1x48x1xf32> to vector<48x1xf32>
    %171 = vector.broadcast %170 : vector<48x1xf32> to vector<48x256xf32>
    %172 = arith.mulf %168, %171 : vector<48x256xf32>
    %173 = arith.addf %162, %172 : vector<48x256xf32>
    %c249_i32 = arith.constant 249 : i32
    %174 = tpu.dynamic_rotate %8 by %c249_i32 dim 1 : vector<48x256xf32>, i32 -> vector<48x256xf32>
    %c15 = arith.constant 15 : index
    %c0_85 = arith.constant 0 : index
    %c0_86 = arith.constant 0 : index
    %175 = vector.load %arg7[%c15, %c0_85, %c0_86] : memref<27x1x256xbf16, #tpu.memory_space<vmem>>, vector<1x1x256xbf16>
    %176 = vector.shape_cast %175 : vector<1x1x256xbf16> to vector<1x256xbf16>
    %177 = arith.extf %176 : vector<1x256xbf16> to vector<1x256xf32>
    %178 = vector.broadcast %177 : vector<1x256xf32> to vector<48x256xf32>
    %179 = arith.mulf %174, %178 : vector<48x256xf32>
    %c15_87 = arith.constant 15 : index
    %c0_88 = arith.constant 0 : index
    %c0_89 = arith.constant 0 : index
    %180 = vector.load %arg5[%c15_87, %c0_88, %c0_89] : memref<27x48x1xf32, #tpu.memory_space<vmem>>, vector<1x48x1xf32>
    %181 = vector.shape_cast %180 : vector<1x48x1xf32> to vector<48x1xf32>
    %182 = vector.broadcast %181 : vector<48x1xf32> to vector<48x256xf32>
    %183 = arith.mulf %179, %182 : vector<48x256xf32>
    %184 = arith.addf %173, %183 : vector<48x256xf32>
    %c248_i32 = arith.constant 248 : i32
    %185 = tpu.dynamic_rotate %8 by %c248_i32 dim 1 : vector<48x256xf32>, i32 -> vector<48x256xf32>
    %c16 = arith.constant 16 : index
    %c0_90 = arith.constant 0 : index
    %c0_91 = arith.constant 0 : index
    %186 = vector.load %arg7[%c16, %c0_90, %c0_91] : memref<27x1x256xbf16, #tpu.memory_space<vmem>>, vector<1x1x256xbf16>
    %187 = vector.shape_cast %186 : vector<1x1x256xbf16> to vector<1x256xbf16>
    %188 = arith.extf %187 : vector<1x256xbf16> to vector<1x256xf32>
    %189 = vector.broadcast %188 : vector<1x256xf32> to vector<48x256xf32>
    %190 = arith.mulf %185, %189 : vector<48x256xf32>
    %c16_92 = arith.constant 16 : index
    %c0_93 = arith.constant 0 : index
    %c0_94 = arith.constant 0 : index
    %191 = vector.load %arg5[%c16_92, %c0_93, %c0_94] : memref<27x48x1xf32, #tpu.memory_space<vmem>>, vector<1x48x1xf32>
    %192 = vector.shape_cast %191 : vector<1x48x1xf32> to vector<48x1xf32>
    %193 = vector.broadcast %192 : vector<48x1xf32> to vector<48x256xf32>
    %194 = arith.mulf %190, %193 : vector<48x256xf32>
    %195 = arith.addf %184, %194 : vector<48x256xf32>
    %c247_i32 = arith.constant 247 : i32
    %196 = tpu.dynamic_rotate %8 by %c247_i32 dim 1 : vector<48x256xf32>, i32 -> vector<48x256xf32>
    %c17 = arith.constant 17 : index
    %c0_95 = arith.constant 0 : index
    %c0_96 = arith.constant 0 : index
    %197 = vector.load %arg7[%c17, %c0_95, %c0_96] : memref<27x1x256xbf16, #tpu.memory_space<vmem>>, vector<1x1x256xbf16>
    %198 = vector.shape_cast %197 : vector<1x1x256xbf16> to vector<1x256xbf16>
    %199 = arith.extf %198 : vector<1x256xbf16> to vector<1x256xf32>
    %200 = vector.broadcast %199 : vector<1x256xf32> to vector<48x256xf32>
    %201 = arith.mulf %196, %200 : vector<48x256xf32>
    %c17_97 = arith.constant 17 : index
    %c0_98 = arith.constant 0 : index
    %c0_99 = arith.constant 0 : index
    %202 = vector.load %arg5[%c17_97, %c0_98, %c0_99] : memref<27x48x1xf32, #tpu.memory_space<vmem>>, vector<1x48x1xf32>
    %203 = vector.shape_cast %202 : vector<1x48x1xf32> to vector<48x1xf32>
    %204 = vector.broadcast %203 : vector<48x1xf32> to vector<48x256xf32>
    %205 = arith.mulf %201, %204 : vector<48x256xf32>
    %206 = arith.addf %195, %205 : vector<48x256xf32>
    %c201_i32 = arith.constant 201 : i32
    %207 = tpu.dynamic_rotate %8 by %c201_i32 dim 1 : vector<48x256xf32>, i32 -> vector<48x256xf32>
    %c18 = arith.constant 18 : index
    %c0_100 = arith.constant 0 : index
    %c0_101 = arith.constant 0 : index
    %208 = vector.load %arg7[%c18, %c0_100, %c0_101] : memref<27x1x256xbf16, #tpu.memory_space<vmem>>, vector<1x1x256xbf16>
    %209 = vector.shape_cast %208 : vector<1x1x256xbf16> to vector<1x256xbf16>
    %210 = arith.extf %209 : vector<1x256xbf16> to vector<1x256xf32>
    %211 = vector.broadcast %210 : vector<1x256xf32> to vector<48x256xf32>
    %212 = arith.mulf %207, %211 : vector<48x256xf32>
    %c18_102 = arith.constant 18 : index
    %c0_103 = arith.constant 0 : index
    %c0_104 = arith.constant 0 : index
    %213 = vector.load %arg5[%c18_102, %c0_103, %c0_104] : memref<27x48x1xf32, #tpu.memory_space<vmem>>, vector<1x48x1xf32>
    %214 = vector.shape_cast %213 : vector<1x48x1xf32> to vector<48x1xf32>
    %215 = vector.broadcast %214 : vector<48x1xf32> to vector<48x256xf32>
    %216 = arith.mulf %212, %215 : vector<48x256xf32>
    %217 = arith.addf %206, %216 : vector<48x256xf32>
    %c200_i32 = arith.constant 200 : i32
    %218 = tpu.dynamic_rotate %8 by %c200_i32 dim 1 : vector<48x256xf32>, i32 -> vector<48x256xf32>
    %c19 = arith.constant 19 : index
    %c0_105 = arith.constant 0 : index
    %c0_106 = arith.constant 0 : index
    %219 = vector.load %arg7[%c19, %c0_105, %c0_106] : memref<27x1x256xbf16, #tpu.memory_space<vmem>>, vector<1x1x256xbf16>
    %220 = vector.shape_cast %219 : vector<1x1x256xbf16> to vector<1x256xbf16>
    %221 = arith.extf %220 : vector<1x256xbf16> to vector<1x256xf32>
    %222 = vector.broadcast %221 : vector<1x256xf32> to vector<48x256xf32>
    %223 = arith.mulf %218, %222 : vector<48x256xf32>
    %c19_107 = arith.constant 19 : index
    %c0_108 = arith.constant 0 : index
    %c0_109 = arith.constant 0 : index
    %224 = vector.load %arg5[%c19_107, %c0_108, %c0_109] : memref<27x48x1xf32, #tpu.memory_space<vmem>>, vector<1x48x1xf32>
    %225 = vector.shape_cast %224 : vector<1x48x1xf32> to vector<48x1xf32>
    %226 = vector.broadcast %225 : vector<48x1xf32> to vector<48x256xf32>
    %227 = arith.mulf %223, %226 : vector<48x256xf32>
    %228 = arith.addf %217, %227 : vector<48x256xf32>
    %c199_i32 = arith.constant 199 : i32
    %229 = tpu.dynamic_rotate %8 by %c199_i32 dim 1 : vector<48x256xf32>, i32 -> vector<48x256xf32>
    %c20 = arith.constant 20 : index
    %c0_110 = arith.constant 0 : index
    %c0_111 = arith.constant 0 : index
    %230 = vector.load %arg7[%c20, %c0_110, %c0_111] : memref<27x1x256xbf16, #tpu.memory_space<vmem>>, vector<1x1x256xbf16>
    %231 = vector.shape_cast %230 : vector<1x1x256xbf16> to vector<1x256xbf16>
    %232 = arith.extf %231 : vector<1x256xbf16> to vector<1x256xf32>
    %233 = vector.broadcast %232 : vector<1x256xf32> to vector<48x256xf32>
    %234 = arith.mulf %229, %233 : vector<48x256xf32>
    %c20_112 = arith.constant 20 : index
    %c0_113 = arith.constant 0 : index
    %c0_114 = arith.constant 0 : index
    %235 = vector.load %arg5[%c20_112, %c0_113, %c0_114] : memref<27x48x1xf32, #tpu.memory_space<vmem>>, vector<1x48x1xf32>
    %236 = vector.shape_cast %235 : vector<1x48x1xf32> to vector<48x1xf32>
    %237 = vector.broadcast %236 : vector<48x1xf32> to vector<48x256xf32>
    %238 = arith.mulf %234, %237 : vector<48x256xf32>
    %239 = arith.addf %228, %238 : vector<48x256xf32>
    %c193_i32 = arith.constant 193 : i32
    %240 = tpu.dynamic_rotate %8 by %c193_i32 dim 1 : vector<48x256xf32>, i32 -> vector<48x256xf32>
    %c21 = arith.constant 21 : index
    %c0_115 = arith.constant 0 : index
    %c0_116 = arith.constant 0 : index
    %241 = vector.load %arg7[%c21, %c0_115, %c0_116] : memref<27x1x256xbf16, #tpu.memory_space<vmem>>, vector<1x1x256xbf16>
    %242 = vector.shape_cast %241 : vector<1x1x256xbf16> to vector<1x256xbf16>
    %243 = arith.extf %242 : vector<1x256xbf16> to vector<1x256xf32>
    %244 = vector.broadcast %243 : vector<1x256xf32> to vector<48x256xf32>
    %245 = arith.mulf %240, %244 : vector<48x256xf32>
    %c21_117 = arith.constant 21 : index
    %c0_118 = arith.constant 0 : index
    %c0_119 = arith.constant 0 : index
    %246 = vector.load %arg5[%c21_117, %c0_118, %c0_119] : memref<27x48x1xf32, #tpu.memory_space<vmem>>, vector<1x48x1xf32>
    %247 = vector.shape_cast %246 : vector<1x48x1xf32> to vector<48x1xf32>
    %248 = vector.broadcast %247 : vector<48x1xf32> to vector<48x256xf32>
    %249 = arith.mulf %245, %248 : vector<48x256xf32>
    %250 = arith.addf %239, %249 : vector<48x256xf32>
    %c192_i32 = arith.constant 192 : i32
    %251 = tpu.dynamic_rotate %8 by %c192_i32 dim 1 : vector<48x256xf32>, i32 -> vector<48x256xf32>
    %c22 = arith.constant 22 : index
    %c0_120 = arith.constant 0 : index
    %c0_121 = arith.constant 0 : index
    %252 = vector.load %arg7[%c22, %c0_120, %c0_121] : memref<27x1x256xbf16, #tpu.memory_space<vmem>>, vector<1x1x256xbf16>
    %253 = vector.shape_cast %252 : vector<1x1x256xbf16> to vector<1x256xbf16>
    %254 = arith.extf %253 : vector<1x256xbf16> to vector<1x256xf32>
    %255 = vector.broadcast %254 : vector<1x256xf32> to vector<48x256xf32>
    %256 = arith.mulf %251, %255 : vector<48x256xf32>
    %c22_122 = arith.constant 22 : index
    %c0_123 = arith.constant 0 : index
    %c0_124 = arith.constant 0 : index
    %257 = vector.load %arg5[%c22_122, %c0_123, %c0_124] : memref<27x48x1xf32, #tpu.memory_space<vmem>>, vector<1x48x1xf32>
    %258 = vector.shape_cast %257 : vector<1x48x1xf32> to vector<48x1xf32>
    %259 = vector.broadcast %258 : vector<48x1xf32> to vector<48x256xf32>
    %260 = arith.mulf %256, %259 : vector<48x256xf32>
    %261 = arith.addf %250, %260 : vector<48x256xf32>
    %c191_i32 = arith.constant 191 : i32
    %262 = tpu.dynamic_rotate %8 by %c191_i32 dim 1 : vector<48x256xf32>, i32 -> vector<48x256xf32>
    %c23 = arith.constant 23 : index
    %c0_125 = arith.constant 0 : index
    %c0_126 = arith.constant 0 : index
    %263 = vector.load %arg7[%c23, %c0_125, %c0_126] : memref<27x1x256xbf16, #tpu.memory_space<vmem>>, vector<1x1x256xbf16>
    %264 = vector.shape_cast %263 : vector<1x1x256xbf16> to vector<1x256xbf16>
    %265 = arith.extf %264 : vector<1x256xbf16> to vector<1x256xf32>
    %266 = vector.broadcast %265 : vector<1x256xf32> to vector<48x256xf32>
    %267 = arith.mulf %262, %266 : vector<48x256xf32>
    %c23_127 = arith.constant 23 : index
    %c0_128 = arith.constant 0 : index
    %c0_129 = arith.constant 0 : index
    %268 = vector.load %arg5[%c23_127, %c0_128, %c0_129] : memref<27x48x1xf32, #tpu.memory_space<vmem>>, vector<1x48x1xf32>
    %269 = vector.shape_cast %268 : vector<1x48x1xf32> to vector<48x1xf32>
    %270 = vector.broadcast %269 : vector<48x1xf32> to vector<48x256xf32>
    %271 = arith.mulf %267, %270 : vector<48x256xf32>
    %272 = arith.addf %261, %271 : vector<48x256xf32>
    %c185_i32 = arith.constant 185 : i32
    %273 = tpu.dynamic_rotate %8 by %c185_i32 dim 1 : vector<48x256xf32>, i32 -> vector<48x256xf32>
    %c24 = arith.constant 24 : index
    %c0_130 = arith.constant 0 : index
    %c0_131 = arith.constant 0 : index
    %274 = vector.load %arg7[%c24, %c0_130, %c0_131] : memref<27x1x256xbf16, #tpu.memory_space<vmem>>, vector<1x1x256xbf16>
    %275 = vector.shape_cast %274 : vector<1x1x256xbf16> to vector<1x256xbf16>
    %276 = arith.extf %275 : vector<1x256xbf16> to vector<1x256xf32>
    %277 = vector.broadcast %276 : vector<1x256xf32> to vector<48x256xf32>
    %278 = arith.mulf %273, %277 : vector<48x256xf32>
    %c24_132 = arith.constant 24 : index
    %c0_133 = arith.constant 0 : index
    %c0_134 = arith.constant 0 : index
    %279 = vector.load %arg5[%c24_132, %c0_133, %c0_134] : memref<27x48x1xf32, #tpu.memory_space<vmem>>, vector<1x48x1xf32>
    %280 = vector.shape_cast %279 : vector<1x48x1xf32> to vector<48x1xf32>
    %281 = vector.broadcast %280 : vector<48x1xf32> to vector<48x256xf32>
    %282 = arith.mulf %278, %281 : vector<48x256xf32>
    %283 = arith.addf %272, %282 : vector<48x256xf32>
    %c184_i32 = arith.constant 184 : i32
    %284 = tpu.dynamic_rotate %8 by %c184_i32 dim 1 : vector<48x256xf32>, i32 -> vector<48x256xf32>
    %c25 = arith.constant 25 : index
    %c0_135 = arith.constant 0 : index
    %c0_136 = arith.constant 0 : index
    %285 = vector.load %arg7[%c25, %c0_135, %c0_136] : memref<27x1x256xbf16, #tpu.memory_space<vmem>>, vector<1x1x256xbf16>
    %286 = vector.shape_cast %285 : vector<1x1x256xbf16> to vector<1x256xbf16>
    %287 = arith.extf %286 : vector<1x256xbf16> to vector<1x256xf32>
    %288 = vector.broadcast %287 : vector<1x256xf32> to vector<48x256xf32>
    %289 = arith.mulf %284, %288 : vector<48x256xf32>
    %c25_137 = arith.constant 25 : index
    %c0_138 = arith.constant 0 : index
    %c0_139 = arith.constant 0 : index
    %290 = vector.load %arg5[%c25_137, %c0_138, %c0_139] : memref<27x48x1xf32, #tpu.memory_space<vmem>>, vector<1x48x1xf32>
    %291 = vector.shape_cast %290 : vector<1x48x1xf32> to vector<48x1xf32>
    %292 = vector.broadcast %291 : vector<48x1xf32> to vector<48x256xf32>
    %293 = arith.mulf %289, %292 : vector<48x256xf32>
    %294 = arith.addf %283, %293 : vector<48x256xf32>
    %c183_i32 = arith.constant 183 : i32
    %295 = tpu.dynamic_rotate %8 by %c183_i32 dim 1 : vector<48x256xf32>, i32 -> vector<48x256xf32>
    %c26 = arith.constant 26 : index
    %c0_140 = arith.constant 0 : index
    %c0_141 = arith.constant 0 : index
    %296 = vector.load %arg7[%c26, %c0_140, %c0_141] : memref<27x1x256xbf16, #tpu.memory_space<vmem>>, vector<1x1x256xbf16>
    %297 = vector.shape_cast %296 : vector<1x1x256xbf16> to vector<1x256xbf16>
    %298 = arith.extf %297 : vector<1x256xbf16> to vector<1x256xf32>
    %299 = vector.broadcast %298 : vector<1x256xf32> to vector<48x256xf32>
    %300 = arith.mulf %295, %299 : vector<48x256xf32>
    %c26_142 = arith.constant 26 : index
    %c0_143 = arith.constant 0 : index
    %c0_144 = arith.constant 0 : index
    %301 = vector.load %arg5[%c26_142, %c0_143, %c0_144] : memref<27x48x1xf32, #tpu.memory_space<vmem>>, vector<1x48x1xf32>
    %302 = vector.shape_cast %301 : vector<1x48x1xf32> to vector<48x1xf32>
    %303 = vector.broadcast %302 : vector<48x1xf32> to vector<48x256xf32>
    %304 = arith.mulf %300, %303 : vector<48x256xf32>
    %305 = arith.addf %294, %304 : vector<48x256xf32>
    %c0_145 = arith.constant 0 : index
    %c0_146 = arith.constant 0 : index
    %306 = vector.load %arg6[%c0_145, %c0_146] : memref<48x1xf32, #tpu.memory_space<vmem>>, vector<48x1xf32>
    %307 = vector.broadcast %306 : vector<48x1xf32> to vector<48x256xf32>
    %308 = arith.addf %305, %307 : vector<48x256xf32>
    %309 = arith.truncf %308 : vector<48x256xf32> to vector<48x256xbf16>
    %c0_147 = arith.constant 0 : index
    %c0_148 = arith.constant 0 : index
    %c0_149 = arith.constant 0 : index
    %310 = vector.load %arg8[%c0_147, %c0_148, %c0_149] : memref<1x48x256xbf16, #tpu.memory_space<vmem>>, vector<1x48x256xbf16>
    %311 = vector.shape_cast %310 : vector<1x48x256xbf16> to vector<48x256xbf16>
    %312 = vector.shape_cast %309 : vector<48x256xbf16> to vector<1x48x256xbf16>
    tpu.vector_store %arg8[%c0_147, %c0_148, %c0_149], %312 {strides = array<i32>} : memref<1x48x256xbf16, #tpu.memory_space<vmem>>, vector<1x48x256xbf16>,
    return
  }
  func.func @transform_0(%arg0: i32, %arg1: i32) -> (i32, i32, i32) {
    %c0_i32 = arith.constant 0 : i32
    %c0_i32_0 = arith.constant 0 : i32
    %c0_i32_1 = arith.constant 0 : i32
    return %arg0, %c0_i32, %c0_i32_0 : i32, i32, i32
  }
  func.func @transform_1(%arg0: i32, %arg1: i32) -> (i32, i32, i32) {
    %c0_i32 = arith.constant 0 : i32
    %c0_i32_0 = arith.constant 0 : i32
    return %arg0, %arg1, %c0_i32 : i32, i32, i32
  }
  func.func @transform_2(%arg0: i32, %arg1: i32) -> (i32, i32, i32) {
    %c0_i32 = arith.constant 0 : i32
    %c0_i32_0 = arith.constant 0 : i32
    return %arg0, %arg1, %c0_i32 : i32, i32, i32
  }
  func.func @transform_3(%arg0: i32, %arg1: i32) -> (i32, i32, i32) {
    %c0_i32 = arith.constant 0 : i32
    %c0_i32_0 = arith.constant 0 : i32
    %c0_i32_1 = arith.constant 0 : i32
    return %c0_i32, %arg1, %c0_i32_0 : i32, i32, i32
  }
  func.func @transform_4(%arg0: i32, %arg1: i32) -> (i32, i32) {
    %c0_i32 = arith.constant 0 : i32
    %c0_i32_0 = arith.constant 0 : i32
    return %arg1, %c0_i32 : i32, i32
  }
  func.func @transform_5(%arg0: i32, %arg1: i32) -> (i32, i32, i32) {
    %c0_i32 = arith.constant 0 : i32
    %c0_i32_0 = arith.constant 0 : i32
    %c0_i32_1 = arith.constant 0 : i32
    %c0_i32_2 = arith.constant 0 : i32
    return %c0_i32, %c0_i32_0, %c0_i32_1 : i32, i32, i32
  }
  func.func @transform_6(%arg0: i32, %arg1: i32) -> (i32, i32, i32) {
    %c0_i32 = arith.constant 0 : i32
    %c0_i32_0 = arith.constant 0 : i32
    return %arg0, %arg1, %c0_i32 : i32, i32, i32
  }
}

</mosaic_0001>

<bundles_post_ra>
// kernel: attention3d_pallas.4
= control target key start
LH: loop header
LB: loop body
LE: loop exit
PB: predicated region body
PF: predicated region fallthrough
CT: control target
= control target key end

     0   :  { %9 = vsyncpa [#allocation3], 0  ;;  %s804_s15 = smov 0   ;;  %s806_s16 = smov 0   ;;  %s908_s0 = inlined_call_operand.vmem [shape: f32[2], index: 0, kind: input, shape index: {}]   ;;  %s909_s1 = inlined_call_operand.vmem [shape: bf16[2,48,256], index: 1, kind: input, shape index: {}, may-alias: {1,2,3}]   ;;  %s910_s2 = inlined_call_operand.vmem [shape: bf16[2,48,256], index: 2, kind: input, shape index: {}, may-alias: {1,2,3}]   ;;  %s911_s3 = inlined_call_operand.vmem [shape: bf16[2,48,256], index: 3, kind: input, shape index: {}, may-alias: {1,2,3}]   ;;  %s912_s4 = inlined_call_operand.vmem [shape: bf16[2,16,256], index: 4, kind: output, shape index: {}]  }
   0x1   :  { %s808_s17 = smov 0   ;;  %s810_s18 = smov 0  }
   0x2   :  { %s812_s19 = smov 0  }
   0x3 LB: > { %s631_s20 = sadd.s32 4294967295, %s775_s19   ;;  %s24_s21 = sadd.s32 1, %s767_s17  ;;  %s775_s19 = sphi %s812_s19, %s15_s19   ;;  %s771_s18 = sphi %s810_s18, %s918_s18   ;;  %s767_s17 = sphi %s808_s17, %s917_s17   ;;  %s763_s16 = sphi %s806_s16, %s916_s16   ;;  %s759_s15 = sphi %s804_s15, %s915_s15  }
   0x4   : > { %p25_p0 = scmp.ge.s32.totalorder %s24_s21, 2  ;;  %s27_s22 = sadd.s32 1, %s771_s18 }
   0x5   : > { %p633_p1 = scmp.ge.s32.totalorder %s775_s19, 1  ;;  %p169_p2 = scmp.lt.s32.totalorder %s775_s19, 5 }
   0x6   : > { %s920_s21 = smov (%p25_p0, %s24_s21), 0  ;;  %s922_s22 = smov (!%p25_p0, %s27_s22), %s771_s18 }
   0x7   : > { %p837_p3 = pnand %p633_p1, %p169_p2  ;;  %p29_p4 = scmp.ge.s32.totalorder %s922_s22, 2 }
   0x8   : > { %p841_p5 = scmp.eq.s32.totalorder %s631_s20, 0  ;;  %s182_s27 = sshll.u32 %s908_s0, 4  ;;  %s183_s27 = int_to_ptr.vmem [resolvable:$true] %s182_s27 }
   0x9   : > { %p660_p6 = pneg %p837_p3  ;;  %s924_s22 = smov (%p29_p4, %s922_s22), 0 }
   0xa   : > { %s718_s28 = scalar_lea.vmem %s183_s27, 16  ;;  %p726_p12 = scmp.lt.s32.totalorder %s183_s27, %s183_s27 }
   0xb   : > { %p661_p7 = pnand %p841_p5, %p660_p6  ;;  %p719_p8 = scmp.ne.s32.totalorder %s183_s27, %s718_s28 }
   0xc   : > { %p727_p13 = scmp.lt.s32.totalorder %s718_s28, %s718_s28 }
   0xd   : > { %p720_p9 = pneg %p661_p7 }
   0xe   : > { %p728_p0 = por %p727_p13, %p726_p12 }
   0xf   : > { %p721_p10 = pnand %p720_p9, %p719_p8 }
  0x11   : > { %p722_p11 = pneg %p721_p10 }
  0x13   : > { %p729_p1 = pnand %p728_p0, %p722_p11 }
  0x15   : > { %732 = shalt.err (!%p729_p1)
}
  0x16   : > { %s777_s29 = smov [#allocation2]   ;;  %235 = sbr.rel (%p837_p3) target bundleno = 919 (0x397), region = 36 }
  0x17   : > { %663 = dma.vmem_to_smem (!%p661_p7), %s183_s27, 16, %s777_s29, [#allocation3]  }
  0x1b   : > { %754 = dma.done.wait (%p841_p5), [#allocation3], 16  }
  0x1c   : > { %756 = vsyncadd (%p841_p5), [#allocation3], 4294967280 }
  0x1d   : > { %241 = sfence }
  0x1e   : > { %p290_p2 = scmp.lt.s32.totalorder %s763_s16, 1  ;;  %s299_s30 = sadd.s32 2, %s759_s15  ;;  %vm402_vm0 = vcmask 64512   ;;  %v778_v38 = vmov 0   ;;  %vm424_vm1 = vcmask 1043456  }
  0x1f   : > { %p302_p4 = scmp.lt.s32.totalorder %s299_s30, 5  ;;  %p292_p3 = scmp.lt.s32.totalorder %s759_s15, 5  ;;  %463 = vmatprep.mubr.bf16.mxu1 %v778_v38 }
  0x20   : > { %s926_s16 = smov (!%p290_p2, %s763_s16), 1  ;;  %s399_s26 = sld [smem:[#allocation2 + %s759_s15]] }
  0x21   : > { %s928_s30 = smov (!%p302_p4, %s299_s30), 5  ;;  %s866_s5 = smul.u32 12, %s926_s16 }
  0x22   : > { %s640_s6 = sshll.u32 %s928_s30, 1  ;;  %s310_s27 = sadd.s32 4, %s759_s15 }
  0x23   : > { %s306_s7 = sadd.s32 %s866_s5, %s640_s6  ;;  %p313_p5 = scmp.lt.s32.totalorder %s310_s27, 5 }
  0x24   : > { %s641_s8 = sshll.u32 %s306_s7, 2  ;;  %p323_p6 = scmp.lt.s32.totalorder %s759_s15, 1 }
  0x25   : > { %s308_s11 = scalar_lea.vmem %s910_s2, %s641_s8  ;;  %s930_s27 = smov (!%p313_p5, %s310_s27), 5 }
  0x26   : > { %v334_v0 = vld [vmem:[%s308_s11] sm:$0xff]  ;;  %s293_s12 = scalar_select %p292_p3, %s759_s15, 5  ;;  %v400_v26 = vstv %s399_s26 }
  0x27   : > { %v335_v1 = vunpack.c.l.bf16 %v334_v0  ;;  %v336_v2 = vunpack.c.h.bf16 %v334_v0  ;;  %s642_s28 = sshll.u32 %s930_s27, 1  ;;  %s932_s15 = smov (!%p323_p6, %s759_s15), 1 }
  0x28   : > { %s638_s13 = sshll.u32 %s293_s12, 1  ;;  %s317_s29 = sadd.s32 %s866_s5, %s642_s28 }
  0x29   : > { %v348_v3 = vmul.f32 %v335_v1, %v335_v1  ;;  %v349_v4 = vmul.f32 %v336_v2, %v336_v2  ;;  %s296_s14 = sadd.s32 %s866_s5, %s638_s13  ;;  %s643_s30 = sshll.u32 %s317_s29, 2 }
  0x2a   : > { %s639_s20 = sshll.u32 %s296_s14, 2  ;;  %s319_s8 = scalar_lea.vmem %s911_s3, %s643_s30 }
  0x2b   : > { %v350_v5 = vadd.f32 %v349_v4, %v348_v3  ;;  %s298_s25 = scalar_lea.vmem %s909_s1, %s639_s20  ;;  %v415_v39 = vld [vmem:[%s319_s8] sm:$0xff]  ;;  %s644_s5 = sshll.u32 %s932_s15, 1 }
  0x2c   : > { %v331_v6 = vld [vmem:[%s298_s25] sm:$0xff]  ;;  %v648_v40 = vcombine.high %v415_v39, %v415_v39  ;;  %v647_v41 = vcombine.low %v415_v39, %v415_v39  ;;  %s645_s9 = sshll.u32 %s926_s16, 2 }
  0x2d   : > { %351 = vadd.xlane.f32.xlu0 %v350_v5  ;;  %v332_v7 = vunpack.c.l.bf16 %v331_v6  ;;  %v333_v8 = vunpack.c.h.bf16 %v331_v6  ;;  %s327_s10 = sadd.s32 %s645_s9, %s644_s5 }
  0x2e   : > { %649 = vmatprep.subr.msk.bf16.mxu1 %vm424_vm1, %v648_v40  ;;  %v426_v42 = vsel %vm424_vm1, %v647_v41, 0  ;;  %s646_s11 = sshll.u32 %s327_s10, 2 }
  0x2f   : > { %v337_v9 = vmul.f32 %v332_v7, %v332_v7  ;;  %v338_v10 = vmul.f32 %v333_v8, %v333_v8  ;;  %446 = vmatpush1.bf16.msra.mxu1 %v426_v42  ;;  %s329_s14 = scalar_lea.vmem %s912_s4, %s646_s11 }
  0x31   : > { %v339_v11 = vadd.f32 %v338_v10, %v337_v9 }
  0x33   : > { %340 = vadd.xlane.f32.xlu0 %v339_v11 }
  0xb6   : > { %v352_v12 = vpop.xlane.xlu0 %351 }
  0xb7   : > { %v353_v13 = vmax.f32 %v352_v12, 1e-24 }
  0xb9   : > { %710 = vrsqrt.f32 %v353_v13 }
  0xbc   : > { %v341_v14 = vpop.xlane.xlu0 %340 }
  0xbd   : > { %v342_v15 = vmax.f32 %v341_v14, 1e-24 }
  0xbf   : > { %712 = vrsqrt.f32 %v342_v15 }
  0xc6   : > { %v711_v16 = vpop.eup %710 }
  0xc7   : > { %v356_v17 = vmul.f32 %v711_v16, %v336_v2  ;;  %v355_v18 = vmul.f32 %v711_v16, %v335_v1 }
  0xc9   : > { %v358_v19 = vpack.c.bf16 %v356_v17, %v356_v17  ;;  %v357_v20 = vpack.c.bf16 %v355_v18, %v355_v18 }
  0xcb   : > { %373 = vmatprep.subr.bf16.mxu0 %v358_v19 }
  0xcc   : > { %v713_v21 = vpop.eup %712  ;;  %374 = vmatpush1.bf16.xpose.msra.mxu0 %v357_v20 }
  0xcd   : > { %v345_v22 = vmul.f32 %v713_v21, %v333_v8  ;;  %v344_v23 = vmul.f32 %v713_v21, %v332_v7 }
  0xcf   : > { %v347_v24 = vpack.c.bf16 %v345_v22, %v345_v22  ;;  %v346_v25 = vpack.c.bf16 %v344_v23, %v344_v23 }
  0xd1   : > { %391 = vmatprep.mubr.bf16.mxu0 %v347_v24 }
  0xd3   : > { %392 = vmatmul.mubr.bf16.vlgmr.msra.gmra.mxu0 %v346_v25 }
 0x193   : > { %v393_v27 = vpop.f32.mrf.mxu0 }
 0x194   : > { %v401_v28 = vmul.f32 %v400_v26, %v393_v27 }
 0x195   : > { %v395_v29 = vpop.f32.mrf.mxu0 }
 0x196   : > { %v403_v30 = vsel %vm402_vm0, %v401_v28, -inf }
 0x197   : > { %404 = vmax.xlane.f32.xlu1 %v403_v30  ;;  %v396_v31 = vpop.f32.mrf.mxu0 }
 0x199   : > { %v397_v32 = vpop.f32.mrf.mxu0 }
 0x220   : > { %v405_v33 = vpop.xlane.xlu1 %404 }
 0x221   : > { %v406_v34 = vsub.f32 %v401_v28, %v405_v33 }
 0x223   : > { %v407_v35 = vmul.f32 1.442695, %v406_v34 }
 0x225   : > { %714 = vpow2.f32 %v407_v35 }
 0x232   : > { %v715_v36 = vpop.eup %714 }
 0x233   : > { %v409_v37 = vsel %vm402_vm0, %v715_v36, 0.0 }
 0x234   : > { %410 = vadd.xlane.f32.xlu1 %v409_v37 }
 0x2bd   : > { %v411_v43 = vpop.xlane.xlu1 %410 }
 0x2be   : > { %716 = vrcp.f32 %v411_v43 }
 0x2cb   : > { %v717_v44 = vpop.eup %716 }
 0x2cc   : > { %v413_v45 = vmul.f32 %v717_v44, %v715_v36 }
 0x2ce   : > { %v414_v46 = vpack.c.bf16 %v413_v45, %v413_v45 }
 0x2d0   : > { %650 = vmatmul.mubr.msk.bf16.vlgmr.msra.gmra.mxu1 %vm402_vm0, %v414_v46 }
 0x390   : > { %v465_v47 = vpop.f32.mrf.mxu1 }
 0x392   : > { %v467_v48 = vpop.f32.mrf.mxu1 }
 0x393   : > { %v654_v49 = vpack.c.bf16 %v467_v48, %v465_v47 }
 0x394   : > { %v469_v50 = vpop.f32.mrf.mxu1 }
 0x395   : > { %480 = vst [vmem:[%s329_s14] sm:$0xff] %v654_v49 }
 0x396   : > { %v470_v51 = vpop.f32.mrf.mxu1 }
 0x397 PF: > { %s15_s19 = sadd.s32 1, %s775_s19   ;;  %s915_s15 = smov %s767_s17 }
 0x398   : > { %p12_p7 = scmp.ge.s32.totalorder %s15_s19, 6   ;;  %s916_s16 = smov %s771_s18 }
 0x399   : > { %s917_s17 = smov %s920_s21  ;;  %s918_s18 = smov %s924_s22 }
 0x39a   :  { %14 = sbr.rel (!%p12_p7) target bundleno = 3 (0x3), region = 77 }
 0x39f   :  { %510 = vsyncpa [#allocation3], 1 }
 0x3a0   :  { %512 = vsyncpa [#allocation3 + $0x1], 1 }

// kernel: attention3d_pallas.5
= control target key start
LH: loop header
LB: loop body
LE: loop exit
PB: predicated region body
PF: predicated region fallthrough
CT: control target
= control target key end

     0   :  { %s472_s12 = smov 0   ;;  %s474_s13 = smov 0   ;;  %s514_s0 = inlined_call_operand.vmem [shape: bf16[2,16,256], index: 0, kind: input, shape index: {}]   ;;  %s515_s1 = inlined_call_operand.vmem [shape: bf16[16,16], index: 1, kind: input, shape index: {}]   ;;  %s516_s2 = inlined_call_operand.vmem [shape: f32[16,1], index: 2, kind: input, shape index: {}]   ;;  %s517_s3 = inlined_call_operand.vmem [shape: f32[2,16,256], index: 3, kind: output, shape index: {}]  }
   0x1   :  { %s476_s14 = smov 0  }
   0x2 LB: > { %s25_s15 = sadd.s32 1, %s445_s13  ;;  %p384_p0 = scmp.ge.s32.totalorder %s449_s14, 1  ;;  %s449_s14 = sphi %s476_s14, %s13_s14   ;;  %s445_s13 = sphi %s474_s13, %s519_s13   ;;  %s441_s12 = sphi %s472_s12, %s518_s12  }
   0x3   : > { %p27_p1 = scmp.ge.s32.totalorder %s25_s15, 2  ;;  %p158_p2 = scmp.lt.s32.totalorder %s449_s14, 3 }
   0x5   : > { %s521_s15 = smov (%p27_p1, %s25_s15), 0  ;;  %p159_p3 = pnand %p384_p0, %p158_p2 }
   0x6   : > { %p191_p4 = scmp.lt.s32.totalorder (!%p159_p3), %s441_s12, 1 }
   0x7   : > { %162 = sbr.rel (%p159_p3) target bundleno = 222 (0xde), region = 32 }
   0xc   : > { %v451_v0 = vmov 0   ;;  %v215_v1 = vld [vmem:[%s516_s2] sm:$0xff]  ;;  %s523_s12 = smov (!%p191_p4, %s441_s12), 1  ;;  %v216_v2 = vld [vmem:[%s516_s2 + $0x8] sm:$0xff]  ;;  %vm242_vm0 = vcmask 130048  }
   0xd   : > { %278 = vmatprep.mubr.bf16.mxu0 %v451_v0  ;;  %422 = vset.pattern.permute.xlu0 %v451_v0  ;;  %s395_s20 = sshll.u32 %s523_s12, 4  ;;  %v426_v5 = vld [vmem:[%s515_s1] sm:$0xff]   ;;  %s396_s26 = sshll.u32 %s523_s12, 5 }
   0xe   : > { %219 = vperm.xlu0 %422, %v215_v1   ;;  %s198_s23 = scalar_lea.vmem %s514_s0, %s395_s20  ;;  %s208_s29 = scalar_lea.vmem %s517_s3, %s396_s26 }
   0xf   : > { %v423_v3 = vld [vmem:[%s198_s23 + $0x4] ss:$8 sps:$4 sm:$0xff]   ;;  %v425_v4 = vld [vmem:[%s198_s23] ss:$8 sps:$4 sm:$0xff]  }
  0x10   : > { %260 = vmatprep.subr.bf16.mxu0 %v423_v3 }
  0x11   : > { %261 = vmatpush1.bf16.msra.mxu0 %v425_v4 }
  0x12   : > { %224 = vperm.xlu0 %422, %v216_v2  }
  0x14   : > { %392 = vmatmul.mubr.msk.bf16.vlgmr.msra.gmra.mxu0 %vm242_vm0, %v426_v5 }
  0x89   : > { %v220_v6 = vpop.permute.xlu0 %219 }
  0x8d   : > { %v225_v11 = vpop.permute.xlu0 %224 }
  0xd4   : > { %v280_v7 = vpop.f32.mrf.mxu0 }
  0xd5   : > { %v281_v8 = vadd.f32 %v280_v7, %v220_v6 }
  0xd6   : > { %v282_v9 = vpop.f32.mrf.mxu0 }
  0xd7   : > { %289 = vst [vmem:[%s208_s29] sm:$0xff] %v281_v8  ;;  %v283_v10 = vadd.f32 %v282_v9, %v220_v6 }
  0xd8   : > { %v284_v12 = vpop.f32.mrf.mxu0 }
  0xd9   : > { %290 = vst [vmem:[%s208_s29 + $0x8] sm:$0xff] %v283_v10  ;;  %v285_v13 = vadd.f32 %v284_v12, %v225_v11 }
  0xda   : > { %v286_v14 = vpop.f32.mrf.mxu0 }
  0xdb   : > { %291 = vst [vmem:[%s208_s29 + $0x10] sm:$0xff] %v285_v13  ;;  %v287_v15 = vadd.f32 %v286_v14, %v225_v11 }
  0xdd   : > { %292 = vst [vmem:[%s208_s29 + $0x18] sm:$0xff] %v287_v15 }
  0xde PF: > { %s13_s14 = sadd.s32 1, %s449_s14   ;;  %s518_s12 = smov %s445_s13 }
  0xdf   : > { %p10_p5 = scmp.ge.s32.totalorder %s13_s14, 4   ;;  %s519_s13 = smov %s521_s15 }
  0xe1   :  { %12 = sbr.rel (!%p10_p5) target bundleno = 2 (0x2), region = 62 }

// kernel: attention3d_pallas.3
= control target key start
LH: loop header
LB: loop body
LE: loop exit
PB: predicated region body
PF: predicated region fallthrough
CT: control target
= control target key end

     0   :  { %s4321_s21 = smov 0   ;;  %s4323_s22 = smov 0   ;;  %s8500_s0 = inlined_call_operand.vmem [shape: bf16[2,16,256], index: 0, kind: input, shape index: {}]   ;;  %s8501_s1 = inlined_call_operand.vmem [shape: bf16[2,48,16], index: 1, kind: input, shape index: {}]   ;;  %s8502_s2 = inlined_call_operand.vmem [shape: f32[2,48,1], index: 2, kind: input, shape index: {}]   ;;  %s8503_s3 = inlined_call_operand.vmem [shape: f32[27,48,1], index: 3, kind: input, shape index: {}]   ;;  %s8504_s4 = inlined_call_operand.vmem [shape: f32[48,1], index: 4, kind: input, shape index: {}]   ;;  %s8505_s5 = inlined_call_operand.vmem [shape: bf16[27,1,256], index: 5, kind: input, shape index: {}]   ;;  %s8506_s6 = inlined_call_operand.vmem [shape: bf16[2,48,256], index: 6, kind: output, shape index: {}]  }
   0x1   :  { %s4325_s23 = smov 0  }
   0x2 LB: > { %s28_s24 = sadd.s32 1, %s4262_s22  ;;  %p3979_p0 = scmp.ge.s32.totalorder %s4266_s23, 1  ;;  %s4266_s23 = sphi %s4325_s23, %s16_s23   ;;  %s4262_s22 = sphi %s4323_s22, %s9694_s22   ;;  %s4258_s21 = sphi %s4321_s21, %s9693_s21  }
   0x3   : > { %p30_p1 = scmp.ge.s32.totalorder %s28_s24, 2  ;;  %p282_p2 = scmp.lt.s32.totalorder %s4266_s23, 3 }
   0x5   : > { %s9696_s24 = smov (%p30_p1, %s28_s24), 0  ;;  %p283_p3 = pnand %p3979_p0, %p282_p2 }
   0x7   : > { %286 = sbr.rel (%p283_p3) target bundleno = 1041 (0x411), region = 44 }
   0xc   : > { %p345_p4 = scmp.lt.s32.totalorder %s4258_s21, 1  ;;  %v4268_v0 = vmov 0   ;;  %vm463_vm0 = vcmask 130048   ;;  %v608_v12 = vld [vmem:[%s8503_s3] sm:$0xff]  ;;  %v609_v13 = vld [vmem:[%s8503_s3 + $0x8] sm:$0xff]  ;;  %v610_v14 = vld [vmem:[%s8503_s3 + $0x10] sm:$0xff] }
   0xd   : > { %4236 = vset.pattern.permute.xlu0 %v4268_v0  ;;  %505 = vmatprep.mubr.bf16.mxu0 %v4268_v0  ;;  %v611_v15 = vld [vmem:[%s8503_s3 + $0x18] sm:$0xff]  ;;  %v612_v16 = vld [vmem:[%s8503_s3 + $0x20] sm:$0xff]  ;;  %v613_v17 = vld [vmem:[%s8503_s3 + $0x28] sm:$0xff]  ;;  %s4269_s20 = smov 73   ;;  %s4272_s27 = smov 65  }
   0xe   : > { %s9698_s21 = smov (!%p345_p4, %s4258_s21), 1  ;;  %515 = vmatprep.mubr.bf16.mxu1 %v4268_v0  ;;  %4237 = vset.pattern.permute.xlu1 %v4268_v0  ;;  %v3994_v18 = vld [vmem:[%s8503_s3 + $0x30] sm:$0xff]  ;;  %v3995_v19 = vld [vmem:[%s8503_s3 + $0x38] sm:$0xff]  ;;  %v3996_v20 = vld [vmem:[%s8503_s3 + $0x40] sm:$0xff]  ;;  %s4273_s28 = smov 64  }
   0xf   : > { %s4183_s25 = sshll.u32 %s9698_s21, 4  ;;  %s4192_s26 = smul.u32 24, %s9698_s21  ;;  %v3997_v21 = vld [vmem:[%s8503_s3 + $0x48] sm:$0xff]  ;;  %v3998_v22 = vld [vmem:[%s8503_s3 + $0x50] sm:$0xff]  ;;  %v3999_v23 = vld [vmem:[%s8503_s3 + $0x58] sm:$0xff] }
  0x10   : > { %s349_s29 = scalar_lea.vmem %s8500_s0, %s4183_s25  ;;  %s4193_s30 = smul.u32 48, %s9698_s21  ;;  %v4001_v24 = vld [vmem:[%s8503_s3 + $0x60] sm:$0xff]  ;;  %v4002_v25 = vld [vmem:[%s8503_s3 + $0x68] sm:$0xff]  ;;  %v4003_v26 = vld [vmem:[%s8503_s3 + $0x70] sm:$0xff] }
  0x11   : > { %s358_s9 = scalar_lea.vmem %s8501_s1, %s4192_s26  ;;  %v4238_v1 = vld [vmem:[%s349_s29 + $0x4] ss:$8 sps:$4 sm:$0xff]   ;;  %v4240_v2 = vld [vmem:[%s349_s29] ss:$8 sps:$4 sm:$0xff]   ;;  %v4004_v27 = vld [vmem:[%s8503_s3 + $0x78] sm:$0xff]  ;;  %s4270_s25 = smov 72  }
  0x12   : > { %s368_s12 = scalar_lea.vmem %s8502_s2, %s4193_s30  ;;  %487 = vmatprep.subr.bf16.mxu0 %v4238_v1  ;;  %4190 = vmatprep.subr.bf16.mxu1 %v4238_v1  ;;  %v4241_v4 = vld [vmem:[%s358_s9] sm:$0xff]   ;;  %v4242_v5 = vld [vmem:[%s358_s9 + $0x8] sm:$0xff]   ;;  %v4243_v11 = vld [vmem:[%s358_s9 + $0x10] sm:$0xff]   ;;  %s4271_s26 = smov 71  }
  0x13   : > { %v402_v3 = vld [vmem:[%s368_s12] sm:$0xff]  ;;  %488 = vmatpush1.bf16.msra.mxu0 %v4240_v2  ;;  %v404_v6 = vld [vmem:[%s368_s12 + $0x10] sm:$0xff]  ;;  %4191 = vmatpush1.bf16.msra.mxu1 %v4240_v2  ;;  %v403_v7 = vld [vmem:[%s368_s12 + $0x8] sm:$0xff]  ;;  %s4274_s29 = smov 63   ;;  %s4275_s15 = smov 57  }
  0x14   : > { %410 = vperm.xlu0 %4236, %v402_v3   ;;  %420 = vperm.xlu1 %4237, %v404_v6   ;;  %v405_v8 = vld [vmem:[%s368_s12 + $0x18] sm:$0xff]  ;;  %v406_v9 = vld [vmem:[%s368_s12 + $0x20] sm:$0xff]  ;;  %v407_v10 = vld [vmem:[%s368_s12 + $0x28] sm:$0xff]  ;;  %s4276_s9 = smov 56   ;;  %s4278_s16 = smov 9  }
  0x15   : > { %v4005_v28 = vld [vmem:[%s8503_s3 + $0x80] sm:$0xff]  ;;  %v4006_v29 = vld [vmem:[%s8503_s3 + $0x88] sm:$0xff]  ;;  %v4008_v30 = vld [vmem:[%s8503_s3 + $0x90] sm:$0xff]  ;;  %s4279_s10 = smov 8   ;;  %s4281_s17 = smov 1  }
  0x16   : > { %3990 = vmatmul.mubr.msk.bf16.vlgmr.msra.gmra.mxu0 %vm463_vm0, %v4241_v4  ;;  %3991 = vmatmul.mubr.msk.bf16.vlgmr.msra.gmra.mxu1 %vm463_vm0, %v4242_v5  ;;  %v4009_v31 = vld [vmem:[%s8503_s3 + $0x98] sm:$0xff]  ;;  %v4010_v32 = vld [vmem:[%s8503_s3 + $0xa0] sm:$0xff]  ;;  %v4011_v33 = vld [vmem:[%s8503_s3 + $0xa8] sm:$0xff]  ;;  %s4283_s14 = smov 121  }
  0x17   : > { %525 = vmatprep.mubr.bf16.mxu1 %v4268_v0  ;;  %v4012_v34 = vld [vmem:[%s8503_s3 + $0xb0] sm:$0xff]  ;;  %v4013_v35 = vld [vmem:[%s8503_s3 + $0xb8] sm:$0xff]  ;;  %v4015_v36 = vld [vmem:[%s8503_s3 + $0xc0] sm:$0xff] }
  0x18   : > { %415 = vperm.xlu0 %4236, %v403_v7   ;;  %425 = vperm.xlu1 %4237, %v405_v8   ;;  %v4016_v37 = vld [vmem:[%s8503_s3 + $0xc8] sm:$0xff]  ;;  %v4017_v38 = vld [vmem:[%s8503_s3 + $0xd0] sm:$0xff]  ;;  %v4018_v39 = vld [vmem:[%s8503_s3 + $0xd8] sm:$0xff] }
  0x19   : > { %v4019_v40 = vld [vmem:[%s8503_s3 + $0xe0] sm:$0xff]  ;;  %v4020_v41 = vld [vmem:[%s8503_s3 + $0xe8] sm:$0xff]  ;;  %v4022_v42 = vld [vmem:[%s8503_s3 + $0xf0] sm:$0xff] }
  0x1a   : > { %v4023_v43 = vld [vmem:[%s8503_s3 + $0xf8] sm:$0xff] }
  0x1c   : > { %430 = vperm.xlu0 %4236, %v406_v9   ;;  %435 = vperm.xlu1 %4237, %v407_v10  }
  0x1e   : > { %3992 = vmatmul.mubr.msk.bf16.gmra.mxu1 %vm463_vm0, %v4243_v11 }
  0x20   : > { %616 = vperm.xlu0 %4236, %v608_v12   ;;  %621 = vperm.xlu1 %4237, %v609_v13  }
  0x24   : > { %626 = vperm.xlu0 %4236, %v610_v14   ;;  %631 = vperm.xlu1 %4237, %v611_v15  }
  0x28   : > { %636 = vperm.xlu0 %4236, %v612_v16   ;;  %641 = vperm.xlu1 %4237, %v613_v17  }
  0x2c   : > { %748 = vperm.xlu0 %4236, %v3994_v18   ;;  %753 = vperm.xlu1 %4237, %v3995_v19  }
  0x30   : > { %758 = vperm.xlu0 %4236, %v3996_v20   ;;  %763 = vperm.xlu1 %4237, %v3997_v21  }
  0x34   : > { %768 = vperm.xlu0 %4236, %v3998_v22   ;;  %773 = vperm.xlu1 %4237, %v3999_v23  }
  0x38   : > { %880 = vperm.xlu0 %4236, %v4001_v24   ;;  %885 = vperm.xlu1 %4237, %v4002_v25  }
  0x3c   : > { %890 = vperm.xlu0 %4236, %v4003_v26   ;;  %895 = vperm.xlu1 %4237, %v4004_v27  }
  0x40   : > { %900 = vperm.xlu0 %4236, %v4005_v28   ;;  %905 = vperm.xlu1 %4237, %v4006_v29  }
  0x44   : > { %1012 = vperm.xlu0 %4236, %v4008_v30   ;;  %1017 = vperm.xlu1 %4237, %v4009_v31   ;;  %v4025_v31 = vld [vmem:[%s8503_s3 + $0x108] sm:$0xff] }
  0x48   : > { %1022 = vperm.xlu0 %4236, %v4010_v32   ;;  %1027 = vperm.xlu1 %4237, %v4011_v33  }
  0x4c   : > { %1032 = vperm.xlu0 %4236, %v4012_v34   ;;  %1037 = vperm.xlu1 %4237, %v4013_v35  }
  0x50   : > { %1144 = vperm.xlu0 %4236, %v4015_v36   ;;  %1149 = vperm.xlu1 %4237, %v4016_v37  }
  0x54   : > { %1154 = vperm.xlu0 %4236, %v4017_v38   ;;  %1159 = vperm.xlu1 %4237, %v4018_v39  }
  0x58   : > { %1164 = vperm.xlu0 %4236, %v4019_v40   ;;  %1169 = vperm.xlu1 %4237, %v4020_v41  }
  0x5c   : > { %1276 = vperm.xlu0 %4236, %v4022_v42   ;;  %1281 = vperm.xlu1 %4237, %v4023_v43  }
  0x8f   : > { %v411_v44 = vpop.permute.xlu0 %410  ;;  %v421_v48 = vpop.permute.xlu1 %420 }
  0x93   : > { %v416_v52 = vpop.permute.xlu0 %415  ;;  %v426_v56 = vpop.permute.xlu1 %425 }
  0x97   : > { %v4476_v58 = vpop.permute.xlu0 %430  ;;  %v4482_v59 = vpop.permute.xlu1 %435 }
  0x9b   : > { %v4484_v60 = vpop.permute.xlu0 %616  ;;  %v4490_v61 = vpop.permute.xlu1 %621 }
  0x9f   : > { %v4496_v62 = vpop.permute.xlu0 %626  ;;  %v4502_v63 = vpop.permute.xlu1 %631 }
  0xa3   : > { %v4504_v0 = vpop.permute.xlu0 %636  ;;  %v4510_v1 = vpop.permute.xlu1 %641 }
  0xa4   : > { %8872 = vst [vmem:[#allocation5_spill] sm:$0xff] %v4504_v0  ;;  %8873 = vst [vmem:[#allocation6_spill] sm:$0xff] %v4510_v1 }
  0xa7   : > { %v4516_v2 = vpop.permute.xlu0 %748  ;;  %v4522_v3 = vpop.permute.xlu1 %753 }
  0xab   : > { %v4524_v4 = vpop.permute.xlu0 %758  ;;  %v4532_v7 = vpop.permute.xlu1 %763 }
  0xaf   : > { %v4538_v8 = vpop.permute.xlu0 %768  ;;  %v4548_v12 = vpop.permute.xlu1 %773 }
  0xb0   : > { %8874 = vst [vmem:[#allocation7_spill] sm:$0xff] %v4538_v8  ;;  %8875 = vst [vmem:[#allocation8_spill] sm:$0xff] %v4548_v12 }
  0xb3   : > { %v4552_v14 = vpop.permute.xlu0 %880  ;;  %v4558_v15 = vpop.permute.xlu1 %885 }
  0xb4   : > { %8876 = vst [vmem:[#allocation9_spill] sm:$0xff] %v4552_v14  ;;  %8877 = vst [vmem:[#allocation10_spill] sm:$0xff] %v4558_v15 }
  0xb7   : > { %v4564_v16 = vpop.permute.xlu0 %890  ;;  %v4570_v17 = vpop.permute.xlu1 %895 }
  0xb8   : > { %8878 = vst [vmem:[#allocation11_spill] sm:$0xff] %v4564_v16  ;;  %8879 = vst [vmem:[#allocation12_spill] sm:$0xff] %v4570_v17  ;;  %v4087_v17 = vld [vmem:[%s8503_s3 + $0x2b0] sm:$0xff] }
  0xbb   : > { %v4572_v18 = vpop.permute.xlu0 %900  ;;  %v4578_v19 = vpop.permute.xlu1 %905 }
  0xbc   : > { %8880 = vst [vmem:[#allocation13_spill] sm:$0xff] %v4572_v18  ;;  %8881 = vst [vmem:[#allocation14_spill] sm:$0xff] %v4578_v19 }
  0xbf   : > { %v4584_v20 = vpop.permute.xlu0 %1012  ;;  %v4590_v21 = vpop.permute.xlu1 %1017 }
  0xc0   : > { %8882 = vst [vmem:[#allocation15_spill] sm:$0xff] %v4584_v20  ;;  %8883 = vst [vmem:[#allocation16_spill] sm:$0xff] %v4590_v21 }
  0xc3   : > { %v4592_v22 = vpop.permute.xlu0 %1022  ;;  %v4598_v23 = vpop.permute.xlu1 %1027 }
  0xc4   : > { %8884 = vst [vmem:[#allocation17_spill] sm:$0xff] %v4592_v22  ;;  %8885 = vst [vmem:[#allocation18_spill] sm:$0xff] %v4598_v23 }
  0xc7   : > { %v4604_v24 = vpop.permute.xlu0 %1032  ;;  %v4610_v25 = vpop.permute.xlu1 %1037 }
  0xc8   : > { %8886 = vst [vmem:[#allocation19_spill] sm:$0xff] %v4604_v24  ;;  %8887 = vst [vmem:[#allocation20_spill] sm:$0xff] %v4610_v25 }
  0xcb   : > { %v4612_v27 = vpop.permute.xlu0 %1144  ;;  %v4621_v30 = vpop.permute.xlu1 %1149 }
  0xcc   : > { %8888 = vst [vmem:[#allocation21_spill] sm:$0xff] %v4612_v27  ;;  %8889 = vst [vmem:[#allocation22_spill] sm:$0xff] %v4621_v30  ;;  %v4033_v30 = vld [vmem:[%s8503_s3 + $0x140] sm:$0xff]  ;;  %v4034_v27 = vld [vmem:[%s8503_s3 + $0x148] sm:$0xff] }
  0xcf   : > { %v4630_v32 = vpop.permute.xlu0 %1154  ;;  %v4634_v34 = vpop.permute.xlu1 %1159 }
  0xd0   : > { %8890 = vst [vmem:[#allocation23_spill] sm:$0xff] %v4630_v32  ;;  %8891 = vst [vmem:[#allocation24_spill] sm:$0xff] %v4634_v34  ;;  %v4032_v32 = vld [vmem:[%s8503_s3 + $0x138] sm:$0xff] }
  0xd3   : > { %v4639_v36 = vpop.permute.xlu0 %1164  ;;  %v4645_v37 = vpop.permute.xlu1 %1169 }
  0xd4   : > { %8892 = vst [vmem:[#allocation25_spill] sm:$0xff] %v4639_v36  ;;  %8893 = vst [vmem:[#allocation26_spill] sm:$0xff] %v4645_v37 }
  0xd6   : > { %v507_v45 = vpop.f32.mrf.mxu0  ;;  %v517_v47 = vpop.f32.mrf.mxu1 }
  0xd7   : > { %v4454_v46 = vadd.f32 %v507_v45, %v411_v44  ;;  %v4456_v50 = vadd.f32 %v517_v47, %v421_v48  ;;  %v4651_v38 = vpop.permute.xlu0 %1276  ;;  %v4657_v39 = vpop.permute.xlu1 %1281 }
  0xd8   : > { %v509_v49 = vpop.f32.mrf.mxu0  ;;  %v519_v51 = vpop.f32.mrf.mxu1  ;;  %8894 = vst [vmem:[#allocation27_spill] sm:$0xff] %v4651_v38  ;;  %8895 = vst [vmem:[#allocation28_spill] sm:$0xff] %v4657_v39  ;;  %v4029_v38 = vld [vmem:[%s8503_s3 + $0x120] sm:$0xff] }
  0xd9   : > { %8869 = vst [vmem:[#allocation2_spill] sm:$0xff] %v4454_v46  ;;  %8870 = vst [vmem:[#allocation3_spill] sm:$0xff] %v4456_v50  ;;  %536 = vrot.lane.b32.xlu0 %v4454_v46, %s4269_s20  ;;  %v4530_v5 = vadd.f32 %v509_v49, %v411_v44  ;;  %v4540_v9 = vadd.f32 %v519_v51, %v421_v48 }
  0xda   : > { %v511_v53 = vpop.f32.mrf.mxu0  ;;  %v521_v55 = vpop.f32.mrf.mxu1 }
  0xdb   : > { %v4460_v54 = vadd.f32 %v511_v53, %v416_v52  ;;  %v4466_v57 = vadd.f32 %v521_v55, %v426_v56 }
  0xdc   : > { %v513_v6 = vpop.f32.mrf.mxu0  ;;  %v523_v11 = vpop.f32.mrf.mxu1 }
  0xdd   : > { %8871 = vst [vmem:[#allocation4_spill] sm:$0xff] %v4460_v54  ;;  %538 = vrot.lane.b32.xlu1 %v4460_v54, %s4269_s20  ;;  %540 = vrot.lane.b32.xlu0 %v4456_v50, %s4269_s20  ;;  %v4542_v10 = vadd.f32 %v513_v6, %v416_v52  ;;  %v4550_v13 = vadd.f32 %v523_v11, %v426_v56  ;;  %v4024_v6 = vld [vmem:[%s8503_s3 + $0x100] sm:$0xff] }
  0xde   : > { %v527_v26 = vpop.f32.mrf.mxu1 }
  0xdf   : > { %v4619_v28 = vadd.f32 %v527_v26, %v4476_v58 }
  0xe0   : > { %v529_v29 = vpop.f32.mrf.mxu1 }
  0xe1   : > { %542 = vrot.lane.b32.xlu1 %v4466_v57, %s4269_s20  ;;  %668 = vrot.lane.b32.xlu0 %v4454_v46, %s4270_s25  ;;  %v4666_v41 = vadd.f32 %v529_v29, %v4476_v58  ;;  %v4026_v29 = vld [vmem:[%s8503_s3 + $0x110] sm:$0xff] }
  0xe2   : > { %v531_v33 = vpop.f32.mrf.mxu1 }
  0xe3   : > { %v4637_v35 = vadd.f32 %v531_v33, %v4482_v59 }
  0xe4   : > { %v533_v47 = vpop.f32.mrf.mxu1 }
  0xe5   : > { %670 = vrot.lane.b32.xlu1 %v4460_v54, %s4270_s25  ;;  %672 = vrot.lane.b32.xlu0 %v4456_v50, %s4270_s25  ;;  %v4685_v48 = vadd.f32 %v533_v47, %v4482_v59  ;;  %v4027_v47 = vld [vmem:[%s8503_s3 + $0x118] sm:$0xff] }
  0xe7   : > { %8896 = vst [vmem:[#allocation29_spill] sm:$0xff] %v4685_v48 }
  0xe9   : > { %674 = vrot.lane.b32.xlu1 %v4466_v57, %s4270_s25  ;;  %800 = vrot.lane.b32.xlu0 %v4454_v46, %s4271_s26 }
  0xed   : > { %802 = vrot.lane.b32.xlu1 %v4460_v54, %s4271_s26  ;;  %804 = vrot.lane.b32.xlu0 %v4456_v50, %s4271_s26 }
  0xf1   : > { %806 = vrot.lane.b32.xlu1 %v4466_v57, %s4271_s26  ;;  %932 = vrot.lane.b32.xlu0 %v4454_v46, %s4272_s27 }
  0xf5   : > { %934 = vrot.lane.b32.xlu1 %v4460_v54, %s4272_s27  ;;  %936 = vrot.lane.b32.xlu0 %v4456_v50, %s4272_s27 }
  0xf9   : > { %938 = vrot.lane.b32.xlu1 %v4466_v57, %s4272_s27  ;;  %1064 = vrot.lane.b32.xlu0 %v4454_v46, %s4273_s28 }
  0xfd   : > { %1066 = vrot.lane.b32.xlu1 %v4460_v54, %s4273_s28  ;;  %1068 = vrot.lane.b32.xlu0 %v4456_v50, %s4273_s28 }
 0x101   : > { %1070 = vrot.lane.b32.xlu1 %v4466_v57, %s4273_s28  ;;  %1196 = vrot.lane.b32.xlu0 %v4454_v46, %s4274_s29 }
 0x105   : > { %1198 = vrot.lane.b32.xlu1 %v4460_v54, %s4274_s29  ;;  %1200 = vrot.lane.b32.xlu0 %v4456_v50, %s4274_s29 }
 0x109   : > { %1202 = vrot.lane.b32.xlu1 %v4466_v57, %s4274_s29  ;;  %548 = vrot.lane.b32.xlu0 %v4530_v5, %s4269_s20 }
 0x10d   : > { %550 = vrot.lane.b32.xlu1 %v4542_v10, %s4269_s20  ;;  %552 = vrot.lane.b32.xlu0 %v4540_v9, %s4269_s20 }
 0x111   : > { %554 = vrot.lane.b32.xlu1 %v4550_v13, %s4269_s20  ;;  %680 = vrot.lane.b32.xlu0 %v4530_v5, %s4270_s25 }
 0x115   : > { %682 = vrot.lane.b32.xlu1 %v4542_v10, %s4270_s25  ;;  %684 = vrot.lane.b32.xlu0 %v4540_v9, %s4270_s25 }
 0x119   : > { %686 = vrot.lane.b32.xlu1 %v4550_v13, %s4270_s25  ;;  %812 = vrot.lane.b32.xlu0 %v4530_v5, %s4271_s26 }
 0x11d   : > { %814 = vrot.lane.b32.xlu1 %v4542_v10, %s4271_s26  ;;  %816 = vrot.lane.b32.xlu0 %v4540_v9, %s4271_s26 }
 0x121   : > { %818 = vrot.lane.b32.xlu1 %v4550_v13, %s4271_s26  ;;  %944 = vrot.lane.b32.xlu0 %v4530_v5, %s4272_s27 }
 0x125   : > { %946 = vrot.lane.b32.xlu1 %v4542_v10, %s4272_s27  ;;  %948 = vrot.lane.b32.xlu0 %v4540_v9, %s4272_s27 }
 0x129   : > { %950 = vrot.lane.b32.xlu1 %v4550_v13, %s4272_s27  ;;  %1076 = vrot.lane.b32.xlu0 %v4530_v5, %s4273_s28 }
 0x12d   : > { %1078 = vrot.lane.b32.xlu1 %v4542_v10, %s4273_s28  ;;  %1080 = vrot.lane.b32.xlu0 %v4540_v9, %s4273_s28 }
 0x131   : > { %1082 = vrot.lane.b32.xlu1 %v4550_v13, %s4273_s28  ;;  %1208 = vrot.lane.b32.xlu0 %v4530_v5, %s4274_s29 }
 0x135   : > { %1210 = vrot.lane.b32.xlu1 %v4542_v10, %s4274_s29  ;;  %1212 = vrot.lane.b32.xlu0 %v4540_v9, %s4274_s29 }
 0x139   : > { %1214 = vrot.lane.b32.xlu1 %v4550_v13, %s4274_s29  ;;  %544 = vrot.lane.b32.xlu0 %v4619_v28, %s4269_s20 }
 0x13d   : > { %1291 = vperm.xlu1 %4237, %v4025_v31   ;;  %676 = vrot.lane.b32.xlu0 %v4619_v28, %s4270_s25 }
 0x141   : > { %546 = vrot.lane.b32.xlu1 %v4637_v35, %s4269_s20  ;;  %808 = vrot.lane.b32.xlu0 %v4619_v28, %s4271_s26 }
 0x145   : > { %678 = vrot.lane.b32.xlu1 %v4637_v35, %s4270_s25  ;;  %940 = vrot.lane.b32.xlu0 %v4619_v28, %s4272_s27 }
 0x149   : > { %810 = vrot.lane.b32.xlu1 %v4637_v35, %s4271_s26  ;;  %1072 = vrot.lane.b32.xlu0 %v4619_v28, %s4273_s28 }
 0x14b   : > { %v4659_v40 = vpop.permute.xlu0 %536 }
 0x14d   : > { %942 = vrot.lane.b32.xlu1 %v4637_v35, %s4272_s27  ;;  %1204 = vrot.lane.b32.xlu0 %v4619_v28, %s4274_s29 }
 0x14f   : > { %v4668_v42 = vpop.permute.xlu1 %538  ;;  %v4670_v43 = vpop.permute.xlu0 %540 }
 0x151   : > { %1074 = vrot.lane.b32.xlu1 %v4637_v35, %s4273_s28  ;;  %556 = vrot.lane.b32.xlu0 %v4666_v41, %s4269_s20 }
 0x153   : > { %v4676_v44 = vpop.permute.xlu1 %542  ;;  %v4678_v45 = vpop.permute.xlu0 %668 }
 0x155   : > { %1206 = vrot.lane.b32.xlu1 %v4637_v35, %s4274_s29  ;;  %688 = vrot.lane.b32.xlu0 %v4666_v41, %s4270_s25 }
 0x157   : > { %v4687_v49 = vpop.permute.xlu1 %670  ;;  %v4689_v51 = vpop.permute.xlu0 %672 }
 0x159   : > { %558 = vrot.lane.b32.xlu1 %v4685_v48, %s4269_s20  ;;  %820 = vrot.lane.b32.xlu0 %v4666_v41, %s4271_s26 }
 0x15b   : > { %v4695_v52 = vpop.permute.xlu1 %674  ;;  %v4697_v53 = vpop.permute.xlu0 %800 }
 0x15d   : > { %690 = vrot.lane.b32.xlu1 %v4685_v48, %s4270_s25  ;;  %952 = vrot.lane.b32.xlu0 %v4666_v41, %s4272_s27 }
 0x15f   : > { %v4703_v55 = vpop.permute.xlu1 %802  ;;  %v4705_v56 = vpop.permute.xlu0 %804 }
 0x161   : > { %822 = vrot.lane.b32.xlu1 %v4685_v48, %s4271_s26  ;;  %1084 = vrot.lane.b32.xlu0 %v4666_v41, %s4273_s28  ;;  %s4277_s26 = smov 55  }
 0x163   : > { %v4711_v58 = vpop.permute.xlu1 %806  ;;  %v4713_v59 = vpop.permute.xlu0 %932 }
 0x164   : > { %8897 = vst [vmem:[#allocation30_spill] sm:$0xff] %v4711_v58  ;;  %8898 = vst [vmem:[#allocation31_spill] sm:$0xff] %v4713_v59 }
 0x165   : > { %954 = vrot.lane.b32.xlu1 %v4685_v48, %s4272_s27  ;;  %1216 = vrot.lane.b32.xlu0 %v4666_v41, %s4274_s29  ;;  %s4280_s27 = smov 7  }
 0x167   : > { %v4722_v11 = vpop.permute.xlu1 %934  ;;  %v4724_v26 = vpop.permute.xlu0 %936 }
 0x168   : > { %8899 = vst [vmem:[#allocation32_spill] sm:$0xff] %v4722_v11  ;;  %8900 = vst [vmem:[#allocation33_spill] sm:$0xff] %v4724_v26 }
 0x169   : > { %1086 = vrot.lane.b32.xlu1 %v4685_v48, %s4273_s28  ;;  %1286 = vperm.xlu0 %4236, %v4024_v6  }
 0x16b   : > { %v4731_v31 = vpop.permute.xlu1 %938  ;;  %v4733_v33 = vpop.permute.xlu0 %1064 }
 0x16c   : > { %8901 = vst [vmem:[#allocation34_spill] sm:$0xff] %v4731_v31  ;;  %8902 = vst [vmem:[#allocation35_spill] sm:$0xff] %v4733_v33 }
 0x16d   : > { %1218 = vrot.lane.b32.xlu1 %v4685_v48, %s4274_s29  ;;  %1296 = vperm.xlu0 %4236, %v4026_v29  }
 0x16f   : > { %v4740_v37 = vpop.permute.xlu1 %1066  ;;  %v4742_v25 = vpop.permute.xlu0 %1068 }
 0x170   : > { %8903 = vst [vmem:[#allocation36_spill] sm:$0xff] %v4740_v37  ;;  %8904 = vst [vmem:[#allocation37_spill] sm:$0xff] %v4742_v25 }
 0x171   : > { %1301 = vperm.xlu1 %4237, %v4027_v47   ;;  %1328 = vrot.lane.b32.xlu0 %v4454_v46, %s4275_s15 }
 0x173   : > { %v4745_v6 = vpop.permute.xlu1 %1070  ;;  %v4747_v36 = vpop.permute.xlu0 %1196 }
 0x174   : > { %8905 = vst [vmem:[#allocation38_spill] sm:$0xff] %v4745_v6  ;;  %8906 = vst [vmem:[#allocation39_spill] sm:$0xff] %v4747_v36 }
 0x175   : > { %1330 = vrot.lane.b32.xlu1 %v4460_v54, %s4275_s15  ;;  %1332 = vrot.lane.b32.xlu0 %v4456_v50, %s4275_s15 }
 0x177   : > { %v4751_v29 = vpop.permute.xlu1 %1198  ;;  %v4753_v19 = vpop.permute.xlu0 %1200 }
 0x178   : > { %8907 = vst [vmem:[#allocation40_spill] sm:$0xff] %v4751_v29  ;;  %8908 = vst [vmem:[#allocation41_spill] sm:$0xff] %v4753_v19  ;;  %v4031_v29 = vld [vmem:[%s8503_s3 + $0x130] sm:$0xff] }
 0x179   : > { %1334 = vrot.lane.b32.xlu1 %v4466_v57, %s4275_s15  ;;  %1336 = vrot.lane.b32.xlu0 %v4619_v28, %s4275_s15 }
 0x17b   : > { %v4757_v47 = vpop.permute.xlu1 %1202  ;;  %v4759_v1 = vpop.permute.xlu0 %548 }
 0x17c   : > { %8909 = vst [vmem:[#allocation42_spill] sm:$0xff] %v4757_v47  ;;  %v4030_v47 = vld [vmem:[%s8503_s3 + $0x128] sm:$0xff] }
 0x17d   : > { %1338 = vrot.lane.b32.xlu1 %v4637_v35, %s4275_s15  ;;  %1340 = vrot.lane.b32.xlu0 %v4530_v5, %s4275_s15 }
 0x17f   : > { %v4763_v12 = vpop.permute.xlu1 %550  ;;  %v4765_v24 = vpop.permute.xlu0 %552 }
 0x181   : > { %1342 = vrot.lane.b32.xlu1 %v4542_v10, %s4275_s15  ;;  %1344 = vrot.lane.b32.xlu0 %v4540_v9, %s4275_s15 }
 0x183   : > { %v4769_v18 = vpop.permute.xlu1 %554  ;;  %v4771_v0 = vpop.permute.xlu0 %680 }
 0x185   : > { %1346 = vrot.lane.b32.xlu1 %v4550_v13, %s4275_s15  ;;  %1348 = vrot.lane.b32.xlu0 %v4666_v41, %s4275_s15 }
 0x187   : > { %v4775_v8 = vpop.permute.xlu1 %682  ;;  %v4777_v39 = vpop.permute.xlu0 %684 }
 0x189   : > { %1350 = vrot.lane.b32.xlu1 %v4685_v48, %s4275_s15  ;;  %1408 = vperm.xlu0 %4236, %v4029_v38  }
 0x18b   : > { %v4786_v19 = vpop.permute.xlu1 %686  ;;  %v4788_v34 = vpop.permute.xlu0 %812 }
 0x18d   : > { %1413 = vperm.xlu1 %4237, %v4030_v47   ;;  %1418 = vperm.xlu0 %4236, %v4031_v29  }
 0x18f   : > { %v4796_v36 = vpop.permute.xlu1 %814  ;;  %v4798_v38 = vpop.permute.xlu0 %816 }
 0x191   : > { %1423 = vperm.xlu1 %4237, %v4032_v32   ;;  %1428 = vperm.xlu0 %4236, %v4033_v30  }
 0x193   : > { %v4806_v47 = vpop.permute.xlu1 %818  ;;  %v4808_v29 = vpop.permute.xlu0 %944 }
 0x194   : > { %8910 = vst [vmem:[#allocation43_spill] sm:$0xff] %v4806_v47  ;;  %8911 = vst [vmem:[#allocation44_spill] sm:$0xff] %v4808_v29 }
 0x195   : > { %1433 = vperm.xlu1 %4237, %v4034_v27   ;;  %1460 = vrot.lane.b32.xlu0 %v4454_v46, %s4276_s9 }
 0x197   : > { %v4811_v23 = vpop.permute.xlu1 %946  ;;  %v4813_v6 = vpop.permute.xlu0 %948 }
 0x198   : > { %8912 = vst [vmem:[#allocation45_spill] sm:$0xff] %v4811_v23  ;;  %8913 = vst [vmem:[#allocation46_spill] sm:$0xff] %v4813_v6 }
 0x199   : > { %1462 = vrot.lane.b32.xlu1 %v4460_v54, %s4276_s9  ;;  %1464 = vrot.lane.b32.xlu0 %v4456_v50, %s4276_s9 }
 0x19b   : > { %v4817_v30 = vpop.permute.xlu0 %1076  ;;  %v4819_v32 = vpop.permute.xlu1 %950 }
 0x19c   : > { %8914 = vst [vmem:[#allocation47_spill] sm:$0xff] %v4817_v30  ;;  %8915 = vst [vmem:[#allocation48_spill] sm:$0xff] %v4819_v32  ;;  %v4038_v30 = vld [vmem:[%s8503_s3 + $0x160] sm:$0xff] }
 0x19d   : > { %1466 = vrot.lane.b32.xlu1 %v4466_v57, %s4276_s9  ;;  %1468 = vrot.lane.b32.xlu0 %v4619_v28, %s4276_s9 }
 0x19f   : > { %v4823_v27 = vpop.permute.xlu0 %1080  ;;  %v4826_v22 = vpop.permute.xlu1 %1078 }
 0x1a0   : > { %8916 = vst [vmem:[#allocation49_spill] sm:$0xff] %v4823_v27  ;;  %8917 = vst [vmem:[#allocation50_spill] sm:$0xff] %v4826_v22  ;;  %v4036_v22 = vld [vmem:[%s8503_s3 + $0x150] sm:$0xff] }
 0x1a1   : > { %1470 = vrot.lane.b32.xlu1 %v4637_v35, %s4276_s9  ;;  %1472 = vrot.lane.b32.xlu0 %v4530_v5, %s4276_s9 }
 0x1a3   : > { %v4829_v25 = vpop.permute.xlu0 %1208  ;;  %v4835_v21 = vpop.permute.xlu1 %1082 }
 0x1a4   : > { %8918 = vst [vmem:[#allocation51_spill] sm:$0xff] %v4829_v25  ;;  %8920 = vst [vmem:[#allocation53_spill] sm:$0xff] %v4835_v21 }
 0x1a5   : > { %1474 = vrot.lane.b32.xlu1 %v4542_v10, %s4276_s9  ;;  %1476 = vrot.lane.b32.xlu0 %v4540_v9, %s4276_s9 }
 0x1a7   : > { %v4833_v37 = vpop.permute.xlu0 %1212  ;;  %v4845_v25 = vpop.permute.xlu1 %1210 }
 0x1a8   : > { %8919 = vst [vmem:[#allocation52_spill] sm:$0xff] %v4833_v37  ;;  %8922 = vst [vmem:[#allocation55_spill] sm:$0xff] %v4845_v25  ;;  %v4037_v37 = vld [vmem:[%s8503_s3 + $0x158] sm:$0xff] }
 0x1a9   : > { %1478 = vrot.lane.b32.xlu1 %v4550_v13, %s4276_s9  ;;  %1480 = vrot.lane.b32.xlu0 %v4666_v41, %s4276_s9 }
 0x1ab   : > { %v4839_v27 = vpop.permute.xlu0 %544  ;;  %v4863_v25 = vpop.permute.xlu1 %1214 }
 0x1ac   : > { %8921 = vst [vmem:[#allocation54_spill] sm:$0xff] %v4839_v27  ;;  %v4039_v27 = vld [vmem:[%s8503_s3 + $0x168] sm:$0xff]  ;;  %8925 = vst [vmem:[#allocation58_spill] sm:$0xff] %v4863_v25 }
 0x1ad   : > { %1482 = vrot.lane.b32.xlu1 %v4685_v48, %s4276_s9  ;;  %1540 = vperm.xlu0 %4236, %v4036_v22   ;;  %v4040_v22 = vld [vmem:[%s8503_s3 + $0x170] sm:$0xff] }
 0x1af   : > { %v4850_v21 = vpop.permute.xlu0 %676 }
 0x1b0   : > { %8923 = vst [vmem:[#allocation56_spill] sm:$0xff] %v4850_v21  ;;  %v4041_v21 = vld [vmem:[%s8503_s3 + $0x178] sm:$0xff] }
 0x1b1   : > { %1545 = vperm.xlu1 %4237, %v4037_v37   ;;  %1550 = vperm.xlu0 %4236, %v4038_v30  }
 0x1b3   : > { %v4858_v33 = vpop.permute.xlu0 %808 }
 0x1b4   : > { %8924 = vst [vmem:[#allocation57_spill] sm:$0xff] %v4858_v33 }
 0x1b5   : > { %1555 = vperm.xlu1 %4237, %v4039_v27   ;;  %1560 = vperm.xlu0 %4236, %v4040_v22  }
 0x1b7   : > { %v4868_v37 = vpop.permute.xlu0 %940 }
 0x1b8   : > { %8926 = vst [vmem:[#allocation59_spill] sm:$0xff] %v4868_v37  ;;  %v4870_v30 = vpop.permute.xlu1 %1291 }
 0x1b9   : > { %8927 = vst [vmem:[#allocation60_spill] sm:$0xff] %v4870_v30  ;;  %1565 = vperm.xlu1 %4237, %v4041_v21   ;;  %1592 = vrot.lane.b32.xlu0 %v4454_v46, %s4277_s26 }
 0x1bb   : > { %v4873_v33 = vpop.permute.xlu0 %1072 }
 0x1bc   : > { %8928 = vst [vmem:[#allocation61_spill] sm:$0xff] %v4873_v33  ;;  %v4875_v32 = vpop.permute.xlu1 %546 }
 0x1bd   : > { %8929 = vst [vmem:[#allocation62_spill] sm:$0xff] %v4875_v32  ;;  %1594 = vrot.lane.b32.xlu1 %v4460_v54, %s4277_s26  ;;  %1596 = vrot.lane.b32.xlu0 %v4456_v50, %s4277_s26 }
 0x1bf   : > { %v4879_v27 = vpop.permute.xlu0 %1204 }
 0x1c0   : > { %8930 = vst [vmem:[#allocation63_spill] sm:$0xff] %v4879_v27  ;;  %v4881_v22 = vpop.permute.xlu1 %678 }
 0x1c1   : > { %8931 = vst [vmem:[#allocation64_spill] sm:$0xff] %v4881_v22  ;;  %1598 = vrot.lane.b32.xlu1 %v4466_v57, %s4277_s26  ;;  %1600 = vrot.lane.b32.xlu0 %v4619_v28, %s4277_s26 }
 0x1c3   : > { %v4885_v21 = vpop.permute.xlu0 %556 }
 0x1c4   : > { %8932 = vst [vmem:[#allocation65_spill] sm:$0xff] %v4885_v21  ;;  %v4887_v37 = vpop.permute.xlu1 %810 }
 0x1c5   : > { %8933 = vst [vmem:[#allocation66_spill] sm:$0xff] %v4887_v37  ;;  %1602 = vrot.lane.b32.xlu1 %v4637_v35, %s4277_s26  ;;  %1604 = vrot.lane.b32.xlu0 %v4530_v5, %s4277_s26  ;;  %v4043_v37 = vld [vmem:[%s8503_s3 + $0x180] sm:$0xff] }
 0x1c7   : > { %v4891_v33 = vpop.permute.xlu0 %688 }
 0x1c8   : > { %8934 = vst [vmem:[#allocation67_spill] sm:$0xff] %v4891_v33  ;;  %v4893_v32 = vpop.permute.xlu1 %942 }
 0x1c9   : > { %8935 = vst [vmem:[#allocation68_spill] sm:$0xff] %v4893_v32  ;;  %1606 = vrot.lane.b32.xlu1 %v4542_v10, %s4277_s26  ;;  %1608 = vrot.lane.b32.xlu0 %v4540_v9, %s4277_s26  ;;  %v4044_v32 = vld [vmem:[%s8503_s3 + $0x188] sm:$0xff] }
 0x1cb   : > { %v4900_v22 = vpop.permute.xlu0 %820 }
 0x1cc   : > { %v4897_v27 = vpop.permute.xlu1 %1074  ;;  %8937 = vst [vmem:[#allocation70_spill] sm:$0xff] %v4900_v22 }
 0x1cd   : > { %8936 = vst [vmem:[#allocation69_spill] sm:$0xff] %v4897_v27  ;;  %1610 = vrot.lane.b32.xlu1 %v4550_v13, %s4277_s26  ;;  %1612 = vrot.lane.b32.xlu0 %v4666_v41, %s4277_s26  ;;  %v4045_v27 = vld [vmem:[%s8503_s3 + $0x190] sm:$0xff] }
 0x1cf   : > { %v4915_v22 = vpop.permute.xlu0 %952 }
 0x1d0   : > { %v4906_v30 = vpop.permute.xlu1 %1206  ;;  %8939 = vst [vmem:[#allocation72_spill] sm:$0xff] %v4915_v22 }
 0x1d1   : > { %8938 = vst [vmem:[#allocation71_spill] sm:$0xff] %v4906_v30  ;;  %1614 = vrot.lane.b32.xlu1 %v4685_v48, %s4277_s26  ;;  %1672 = vperm.xlu0 %4236, %v4043_v37   ;;  %v4046_v30 = vld [vmem:[%s8503_s3 + $0x198] sm:$0xff]  ;;  %v4047_v37 = vld [vmem:[%s8503_s3 + $0x1a0] sm:$0xff] }
 0x1d3   : > { %v4927_v25 = vpop.permute.xlu0 %1084 }
 0x1d4   : > { %v4917_v21 = vpop.permute.xlu1 %558  ;;  %8942 = vst [vmem:[#allocation75_spill] sm:$0xff] %v4927_v25 }
 0x1d5   : > { %8940 = vst [vmem:[#allocation73_spill] sm:$0xff] %v4917_v21  ;;  %1677 = vperm.xlu1 %4237, %v4044_v32   ;;  %1682 = vperm.xlu0 %4236, %v4045_v27   ;;  %v4048_v21 = vld [vmem:[%s8503_s3 + $0x1a8] sm:$0xff] }
 0x1d7   : > { %v4935_v27 = vpop.permute.xlu0 %1216 }
 0x1d8   : > { %v4925_v33 = vpop.permute.xlu1 %690  ;;  %8944 = vst [vmem:[#allocation77_spill] sm:$0xff] %v4935_v27 }
 0x1d9   : > { %8941 = vst [vmem:[#allocation74_spill] sm:$0xff] %v4925_v33  ;;  %1687 = vperm.xlu1 %4237, %v4046_v30   ;;  %1692 = vperm.xlu0 %4236, %v4047_v37  }
 0x1dc   : > { %v4932_v32 = vpop.permute.xlu1 %822 }
 0x1dd   : > { %8943 = vst [vmem:[#allocation76_spill] sm:$0xff] %v4932_v32  ;;  %1697 = vperm.xlu1 %4237, %v4048_v21   ;;  %1724 = vrot.lane.b32.xlu0 %v4454_v46, %s4278_s16 }
 0x1e0   : > { %v4937_v22 = vpop.permute.xlu1 %954 }
 0x1e1   : > { %8945 = vst [vmem:[#allocation78_spill] sm:$0xff] %v4937_v22  ;;  %1726 = vrot.lane.b32.xlu1 %v4460_v54, %s4278_s16  ;;  %1728 = vrot.lane.b32.xlu0 %v4456_v50, %s4278_s16 }
 0x1e4   : > { %v4941_v30 = vpop.permute.xlu1 %1086  ;;  %v4943_v37 = vpop.permute.xlu0 %1286 }
 0x1e5   : > { %8946 = vst [vmem:[#allocation79_spill] sm:$0xff] %v4941_v30  ;;  %8947 = vst [vmem:[#allocation80_spill] sm:$0xff] %v4943_v37  ;;  %1730 = vrot.lane.b32.xlu1 %v4466_v57, %s4278_s16  ;;  %1732 = vrot.lane.b32.xlu0 %v4619_v28, %s4278_s16 }
 0x1e8   : > { %v4947_v21 = vpop.permute.xlu1 %1218  ;;  %v4949_v25 = vpop.permute.xlu0 %1296 }
 0x1e9   : > { %8948 = vst [vmem:[#allocation81_spill] sm:$0xff] %v4947_v21  ;;  %8949 = vst [vmem:[#allocation82_spill] sm:$0xff] %v4949_v25  ;;  %1734 = vrot.lane.b32.xlu1 %v4637_v35, %s4278_s16  ;;  %1736 = vrot.lane.b32.xlu0 %v4530_v5, %s4278_s16  ;;  %v4050_v25 = vld [vmem:[%s8503_s3 + $0x1b0] sm:$0xff] }
 0x1ec   : > { %v4953_v27 = vpop.permute.xlu1 %1301  ;;  %v4955_v22 = vpop.permute.xlu0 %1328 }
 0x1ed   : > { %8950 = vst [vmem:[#allocation83_spill] sm:$0xff] %v4953_v27  ;;  %8951 = vst [vmem:[#allocation84_spill] sm:$0xff] %v4955_v22  ;;  %1738 = vrot.lane.b32.xlu1 %v4542_v10, %s4278_s16  ;;  %1740 = vrot.lane.b32.xlu0 %v4540_v9, %s4278_s16 }
 0x1f0   : > { %v4959_v37 = vpop.permute.xlu1 %1330  ;;  %v4961_v30 = vpop.permute.xlu0 %1332 }
 0x1f1   : > { %8952 = vst [vmem:[#allocation85_spill] sm:$0xff] %v4959_v37  ;;  %8953 = vst [vmem:[#allocation86_spill] sm:$0xff] %v4961_v30  ;;  %1742 = vrot.lane.b32.xlu1 %v4550_v13, %s4278_s16  ;;  %1744 = vrot.lane.b32.xlu0 %v4666_v41, %s4278_s16  ;;  %v4051_v37 = vld [vmem:[%s8503_s3 + $0x1b8] sm:$0xff]  ;;  %v4052_v30 = vld [vmem:[%s8503_s3 + $0x1c0] sm:$0xff] }
 0x1f4   : > { %v4968_v21 = vpop.permute.xlu1 %1334  ;;  %v4970_v27 = vpop.permute.xlu0 %1336 }
 0x1f5   : > { %8954 = vst [vmem:[#allocation87_spill] sm:$0xff] %v4968_v21  ;;  %8955 = vst [vmem:[#allocation88_spill] sm:$0xff] %v4970_v27  ;;  %1746 = vrot.lane.b32.xlu1 %v4685_v48, %s4278_s16  ;;  %1804 = vperm.xlu0 %4236, %v4050_v25   ;;  %v4053_v27 = vld [vmem:[%s8503_s3 + $0x1c8] sm:$0xff]  ;;  %v4054_v25 = vld [vmem:[%s8503_s3 + $0x1d0] sm:$0xff] }
 0x1f8   : > { %v4979_v22 = vpop.permute.xlu1 %1338  ;;  %v4981_v32 = vpop.permute.xlu0 %1340 }
 0x1f9   : > { %8956 = vst [vmem:[#allocation89_spill] sm:$0xff] %v4979_v22  ;;  %8957 = vst [vmem:[#allocation90_spill] sm:$0xff] %v4981_v32  ;;  %1809 = vperm.xlu1 %4237, %v4051_v37   ;;  %1814 = vperm.xlu0 %4236, %v4052_v30   ;;  %v4055_v22 = vld [vmem:[%s8503_s3 + $0x1d8] sm:$0xff] }
 0x1fc   : > { %v4989_v21 = vpop.permute.xlu1 %1342  ;;  %v4991_v33 = vpop.permute.xlu0 %1344 }
 0x1fd   : > { %8958 = vst [vmem:[#allocation91_spill] sm:$0xff] %v4989_v21  ;;  %8959 = vst [vmem:[#allocation92_spill] sm:$0xff] %v4991_v33  ;;  %1819 = vperm.xlu1 %4237, %v4053_v27   ;;  %1824 = vperm.xlu0 %4236, %v4054_v25  }
 0x200   : > { %v4996_v37 = vpop.permute.xlu1 %1346  ;;  %v4998_v30 = vpop.permute.xlu0 %1348 }
 0x201   : > { %8960 = vst [vmem:[#allocation93_spill] sm:$0xff] %v4996_v37  ;;  %8961 = vst [vmem:[#allocation94_spill] sm:$0xff] %v4998_v30  ;;  %1829 = vperm.xlu1 %4237, %v4055_v22   ;;  %1856 = vrot.lane.b32.xlu0 %v4454_v46, %s4279_s10 }
 0x204   : > { %v5001_v32 = vpop.permute.xlu1 %1350  ;;  %v5003_v31 = vpop.permute.xlu0 %1408 }
 0x205   : > { %8962 = vst [vmem:[#allocation95_spill] sm:$0xff] %v5001_v32  ;;  %8963 = vst [vmem:[#allocation96_spill] sm:$0xff] %v5003_v31  ;;  %1858 = vrot.lane.b32.xlu1 %v4460_v54, %s4279_s10  ;;  %1860 = vrot.lane.b32.xlu0 %v4456_v50, %s4279_s10 }
 0x208   : > { %v5007_v27 = vpop.permute.xlu1 %1413  ;;  %v5009_v25 = vpop.permute.xlu0 %1418 }
 0x209   : > { %8964 = vst [vmem:[#allocation97_spill] sm:$0xff] %v5007_v27  ;;  %8965 = vst [vmem:[#allocation98_spill] sm:$0xff] %v5009_v25  ;;  %1862 = vrot.lane.b32.xlu1 %v4466_v57, %s4279_s10  ;;  %1864 = vrot.lane.b32.xlu0 %v4619_v28, %s4279_s10 }
 0x20c   : > { %v5013_v22 = vpop.permute.xlu1 %1423  ;;  %v5015_v30 = vpop.permute.xlu0 %1428 }
 0x20d   : > { %8966 = vst [vmem:[#allocation99_spill] sm:$0xff] %v5013_v22  ;;  %8967 = vst [vmem:[#allocation100_spill] sm:$0xff] %v5015_v30  ;;  %1866 = vrot.lane.b32.xlu1 %v4637_v35, %s4279_s10  ;;  %1868 = vrot.lane.b32.xlu0 %v4530_v5, %s4279_s10  ;;  %v4057_v30 = vld [vmem:[%s8503_s3 + $0x1e0] sm:$0xff] }
 0x210   : > { %v5019_v31 = vpop.permute.xlu1 %1433  ;;  %v5021_v32 = vpop.permute.xlu0 %1460 }
 0x211   : > { %8968 = vst [vmem:[#allocation101_spill] sm:$0xff] %v5019_v31  ;;  %8969 = vst [vmem:[#allocation102_spill] sm:$0xff] %v5021_v32  ;;  %1870 = vrot.lane.b32.xlu1 %v4542_v10, %s4279_s10  ;;  %1872 = vrot.lane.b32.xlu0 %v4540_v9, %s4279_s10 }
 0x214   : > { %v5025_v25 = vpop.permute.xlu1 %1462  ;;  %v5027_v27 = vpop.permute.xlu0 %1464 }
 0x215   : > { %8970 = vst [vmem:[#allocation103_spill] sm:$0xff] %v5025_v25  ;;  %8971 = vst [vmem:[#allocation104_spill] sm:$0xff] %v5027_v27  ;;  %1874 = vrot.lane.b32.xlu1 %v4550_v13, %s4279_s10  ;;  %1876 = vrot.lane.b32.xlu0 %v4666_v41, %s4279_s10  ;;  %v4058_v25 = vld [vmem:[%s8503_s3 + $0x1e8] sm:$0xff]  ;;  %v4059_v27 = vld [vmem:[%s8503_s3 + $0x1f0] sm:$0xff] }
 0x218   : > { %v5034_v22 = vpop.permute.xlu1 %1466  ;;  %v5036_v31 = vpop.permute.xlu0 %1468 }
 0x219   : > { %8972 = vst [vmem:[#allocation105_spill] sm:$0xff] %v5034_v22  ;;  %8973 = vst [vmem:[#allocation106_spill] sm:$0xff] %v5036_v31  ;;  %1878 = vrot.lane.b32.xlu1 %v4685_v48, %s4279_s10  ;;  %1936 = vperm.xlu0 %4236, %v4057_v30   ;;  %v4060_v31 = vld [vmem:[%s8503_s3 + $0x1f8] sm:$0xff]  ;;  %v4061_v30 = vld [vmem:[%s8503_s3 + $0x200] sm:$0xff]  ;;  %s4284_s10 = smov 120  }
 0x21c   : > { %v5045_v32 = vpop.permute.xlu1 %1470  ;;  %v5047_v37 = vpop.permute.xlu0 %1472 }
 0x21d   : > { %8974 = vst [vmem:[#allocation107_spill] sm:$0xff] %v5045_v32  ;;  %8975 = vst [vmem:[#allocation108_spill] sm:$0xff] %v5047_v37  ;;  %1941 = vperm.xlu1 %4237, %v4058_v25   ;;  %1946 = vperm.xlu0 %4236, %v4059_v27   ;;  %v4062_v32 = vld [vmem:[%s8503_s3 + $0x208] sm:$0xff] }
 0x220   : > { %v5055_v22 = vpop.permute.xlu1 %1474  ;;  %v5057_v33 = vpop.permute.xlu0 %1476 }
 0x221   : > { %8976 = vst [vmem:[#allocation109_spill] sm:$0xff] %v5055_v22  ;;  %8977 = vst [vmem:[#allocation110_spill] sm:$0xff] %v5057_v33  ;;  %1951 = vperm.xlu1 %4237, %v4060_v31   ;;  %1956 = vperm.xlu0 %4236, %v4061_v30  }
 0x224   : > { %v5062_v25 = vpop.permute.xlu1 %1478  ;;  %v5064_v27 = vpop.permute.xlu0 %1480 }
 0x225   : > { %8978 = vst [vmem:[#allocation111_spill] sm:$0xff] %v5062_v25  ;;  %8979 = vst [vmem:[#allocation112_spill] sm:$0xff] %v5064_v27  ;;  %1961 = vperm.xlu1 %4237, %v4062_v32   ;;  %1988 = vrot.lane.b32.xlu0 %v4454_v46, %s4280_s27 }
 0x228   : > { %v5067_v37 = vpop.permute.xlu1 %1482  ;;  %v5069_v21 = vpop.permute.xlu0 %1540 }
 0x229   : > { %8980 = vst [vmem:[#allocation113_spill] sm:$0xff] %v5067_v37  ;;  %8981 = vst [vmem:[#allocation114_spill] sm:$0xff] %v5069_v21  ;;  %1990 = vrot.lane.b32.xlu1 %v4460_v54, %s4280_s27  ;;  %1992 = vrot.lane.b32.xlu0 %v4456_v50, %s4280_s27 }
 0x22c   : > { %v5073_v31 = vpop.permute.xlu1 %1545  ;;  %v5075_v30 = vpop.permute.xlu0 %1550 }
 0x22d   : > { %8982 = vst [vmem:[#allocation115_spill] sm:$0xff] %v5073_v31  ;;  %8983 = vst [vmem:[#allocation116_spill] sm:$0xff] %v5075_v30  ;;  %1994 = vrot.lane.b32.xlu1 %v4466_v57, %s4280_s27  ;;  %1996 = vrot.lane.b32.xlu0 %v4619_v28, %s4280_s27 }
 0x230   : > { %v5079_v32 = vpop.permute.xlu1 %1555  ;;  %v5081_v27 = vpop.permute.xlu0 %1560 }
 0x231   : > { %8984 = vst [vmem:[#allocation117_spill] sm:$0xff] %v5079_v32  ;;  %8985 = vst [vmem:[#allocation118_spill] sm:$0xff] %v5081_v27  ;;  %1998 = vrot.lane.b32.xlu1 %v4637_v35, %s4280_s27  ;;  %2000 = vrot.lane.b32.xlu0 %v4530_v5, %s4280_s27  ;;  %v4064_v27 = vld [vmem:[%s8503_s3 + $0x210] sm:$0xff] }
 0x234   : > { %v5085_v21 = vpop.permute.xlu1 %1565  ;;  %v5087_v37 = vpop.permute.xlu0 %1592 }
 0x235   : > { %8986 = vst [vmem:[#allocation119_spill] sm:$0xff] %v5085_v21  ;;  %8987 = vst [vmem:[#allocation120_spill] sm:$0xff] %v5087_v37  ;;  %2002 = vrot.lane.b32.xlu1 %v4542_v10, %s4280_s27  ;;  %2004 = vrot.lane.b32.xlu0 %v4540_v9, %s4280_s27 }
 0x238   : > { %v5091_v30 = vpop.permute.xlu1 %1594  ;;  %v5093_v31 = vpop.permute.xlu0 %1596 }
 0x239   : > { %8988 = vst [vmem:[#allocation121_spill] sm:$0xff] %v5091_v30  ;;  %8989 = vst [vmem:[#allocation122_spill] sm:$0xff] %v5093_v31  ;;  %2006 = vrot.lane.b32.xlu1 %v4550_v13, %s4280_s27  ;;  %2008 = vrot.lane.b32.xlu0 %v4666_v41, %s4280_s27  ;;  %v4065_v30 = vld [vmem:[%s8503_s3 + $0x218] sm:$0xff]  ;;  %v4066_v31 = vld [vmem:[%s8503_s3 + $0x220] sm:$0xff] }
 0x23c   : > { %v5100_v32 = vpop.permute.xlu1 %1598  ;;  %v5102_v21 = vpop.permute.xlu0 %1600 }
 0x23d   : > { %8990 = vst [vmem:[#allocation123_spill] sm:$0xff] %v5100_v32  ;;  %8991 = vst [vmem:[#allocation124_spill] sm:$0xff] %v5102_v21  ;;  %2010 = vrot.lane.b32.xlu1 %v4685_v48, %s4280_s27  ;;  %2068 = vperm.xlu0 %4236, %v4064_v27   ;;  %v4067_v21 = vld [vmem:[%s8503_s3 + $0x228] sm:$0xff]  ;;  %v4068_v27 = vld [vmem:[%s8503_s3 + $0x230] sm:$0xff]  ;;  %s4282_s27 = smov 127  }
 0x240   : > { %v5111_v37 = vpop.permute.xlu1 %1602  ;;  %v5113_v25 = vpop.permute.xlu0 %1604 }
 0x241   : > { %8992 = vst [vmem:[#allocation125_spill] sm:$0xff] %v5111_v37  ;;  %8993 = vst [vmem:[#allocation126_spill] sm:$0xff] %v5113_v25  ;;  %2073 = vperm.xlu1 %4237, %v4065_v30   ;;  %2078 = vperm.xlu0 %4236, %v4066_v31   ;;  %v4069_v37 = vld [vmem:[%s8503_s3 + $0x238] sm:$0xff] }
 0x244   : > { %v5121_v32 = vpop.permute.xlu1 %1606  ;;  %v5123_v33 = vpop.permute.xlu0 %1608 }
 0x245   : > { %8994 = vst [vmem:[#allocation127_spill] sm:$0xff] %v5121_v32  ;;  %8995 = vst [vmem:[#allocation128_spill] sm:$0xff] %v5123_v33  ;;  %2083 = vperm.xlu1 %4237, %v4067_v21   ;;  %2088 = vperm.xlu0 %4236, %v4068_v27  }
 0x248   : > { %v5128_v30 = vpop.permute.xlu1 %1610  ;;  %v5130_v31 = vpop.permute.xlu0 %1612 }
 0x249   : > { %8996 = vst [vmem:[#allocation129_spill] sm:$0xff] %v5128_v30  ;;  %8997 = vst [vmem:[#allocation130_spill] sm:$0xff] %v5130_v31  ;;  %2093 = vperm.xlu1 %4237, %v4069_v37   ;;  %2120 = vrot.lane.b32.xlu0 %v4454_v46, %s4281_s17 }
 0x24c   : > { %v5133_v25 = vpop.permute.xlu1 %1614  ;;  %v5135_v22 = vpop.permute.xlu0 %1672 }
 0x24d   : > { %8998 = vst [vmem:[#allocation131_spill] sm:$0xff] %v5133_v25  ;;  %8999 = vst [vmem:[#allocation132_spill] sm:$0xff] %v5135_v22  ;;  %2122 = vrot.lane.b32.xlu1 %v4460_v54, %s4281_s17  ;;  %2124 = vrot.lane.b32.xlu0 %v4456_v50, %s4281_s17 }
 0x250   : > { %v5139_v21 = vpop.permute.xlu1 %1677  ;;  %v5141_v27 = vpop.permute.xlu0 %1682 }
 0x251   : > { %9000 = vst [vmem:[#allocation133_spill] sm:$0xff] %v5139_v21  ;;  %9001 = vst [vmem:[#allocation134_spill] sm:$0xff] %v5141_v27  ;;  %2126 = vrot.lane.b32.xlu1 %v4466_v57, %s4281_s17  ;;  %2128 = vrot.lane.b32.xlu0 %v4619_v28, %s4281_s17 }
 0x254   : > { %v5145_v37 = vpop.permute.xlu1 %1687  ;;  %v5147_v31 = vpop.permute.xlu0 %1692 }
 0x255   : > { %9002 = vst [vmem:[#allocation135_spill] sm:$0xff] %v5145_v37  ;;  %9003 = vst [vmem:[#allocation136_spill] sm:$0xff] %v5147_v31  ;;  %2130 = vrot.lane.b32.xlu1 %v4637_v35, %s4281_s17  ;;  %2132 = vrot.lane.b32.xlu0 %v4530_v5, %s4281_s17  ;;  %v4071_v31 = vld [vmem:[%s8503_s3 + $0x240] sm:$0xff] }
 0x258   : > { %v5151_v22 = vpop.permute.xlu1 %1697  ;;  %v5153_v25 = vpop.permute.xlu0 %1724 }
 0x259   : > { %9004 = vst [vmem:[#allocation137_spill] sm:$0xff] %v5151_v22  ;;  %9005 = vst [vmem:[#allocation138_spill] sm:$0xff] %v5153_v25  ;;  %2134 = vrot.lane.b32.xlu1 %v4542_v10, %s4281_s17  ;;  %2136 = vrot.lane.b32.xlu0 %v4540_v9, %s4281_s17 }
 0x25c   : > { %v5157_v27 = vpop.permute.xlu1 %1726  ;;  %v5159_v21 = vpop.permute.xlu0 %1728 }
 0x25d   : > { %9006 = vst [vmem:[#allocation139_spill] sm:$0xff] %v5157_v27  ;;  %9007 = vst [vmem:[#allocation140_spill] sm:$0xff] %v5159_v21  ;;  %2138 = vrot.lane.b32.xlu1 %v4550_v13, %s4281_s17  ;;  %2140 = vrot.lane.b32.xlu0 %v4666_v41, %s4281_s17  ;;  %v4072_v27 = vld [vmem:[%s8503_s3 + $0x248] sm:$0xff]  ;;  %v4073_v21 = vld [vmem:[%s8503_s3 + $0x250] sm:$0xff] }
 0x260   : > { %v5166_v37 = vpop.permute.xlu1 %1730  ;;  %v5168_v22 = vpop.permute.xlu0 %1732 }
 0x261   : > { %9008 = vst [vmem:[#allocation141_spill] sm:$0xff] %v5166_v37  ;;  %9009 = vst [vmem:[#allocation142_spill] sm:$0xff] %v5168_v22  ;;  %2142 = vrot.lane.b32.xlu1 %v4685_v48, %s4281_s17  ;;  %2200 = vperm.xlu0 %4236, %v4071_v31   ;;  %v4074_v22 = vld [vmem:[%s8503_s3 + $0x258] sm:$0xff]  ;;  %v4075_v31 = vld [vmem:[%s8503_s3 + $0x260] sm:$0xff] }
 0x264   : > { %v5177_v25 = vpop.permute.xlu1 %1734  ;;  %v5179_v30 = vpop.permute.xlu0 %1736 }
 0x265   : > { %9010 = vst [vmem:[#allocation143_spill] sm:$0xff] %v5177_v25  ;;  %9011 = vst [vmem:[#allocation144_spill] sm:$0xff] %v5179_v30  ;;  %2205 = vperm.xlu1 %4237, %v4072_v27   ;;  %2210 = vperm.xlu0 %4236, %v4073_v21   ;;  %v4076_v25 = vld [vmem:[%s8503_s3 + $0x268] sm:$0xff]  ;;  %v4078_v21 = vld [vmem:[%s8503_s3 + $0x270] sm:$0xff] }
 0x268   : > { %v5187_v37 = vpop.permute.xlu1 %1738  ;;  %v5189_v33 = vpop.permute.xlu0 %1740 }
 0x269   : > { %9012 = vst [vmem:[#allocation145_spill] sm:$0xff] %v5187_v37  ;;  %9013 = vst [vmem:[#allocation146_spill] sm:$0xff] %v5189_v33  ;;  %2215 = vperm.xlu1 %4237, %v4074_v22   ;;  %2220 = vperm.xlu0 %4236, %v4075_v31   ;;  %v4079_v33 = vld [vmem:[%s8503_s3 + $0x278] sm:$0xff]  ;;  %v4080_v22 = vld [vmem:[%s8503_s3 + $0x280] sm:$0xff] }
 0x26c   : > { %v5197_v27 = vpop.permute.xlu1 %1742  ;;  %v5199_v30 = vpop.permute.xlu0 %1744 }
 0x26d   : > { %9014 = vst [vmem:[#allocation147_spill] sm:$0xff] %v5197_v27  ;;  %9015 = vst [vmem:[#allocation148_spill] sm:$0xff] %v5199_v30  ;;  %2225 = vperm.xlu1 %4237, %v4076_v25   ;;  %2295 = vperm.xlu0 %4236, %v4078_v21   ;;  %v4081_v30 = vld [vmem:[%s8503_s3 + $0x288] sm:$0xff]  ;;  %v4082_v25 = vld [vmem:[%s8503_s3 + $0x290] sm:$0xff] }
 0x270   : > { %v5207_v31 = vpop.permute.xlu1 %1746  ;;  %v5209_v37 = vpop.permute.xlu0 %1804 }
 0x271   : > { %9016 = vst [vmem:[#allocation149_spill] sm:$0xff] %v5207_v31  ;;  %9017 = vst [vmem:[#allocation150_spill] sm:$0xff] %v5209_v37  ;;  %2300 = vperm.xlu1 %4237, %v4079_v33   ;;  %2305 = vperm.xlu0 %4236, %v4080_v22   ;;  %v4083_v37 = vld [vmem:[%s8503_s3 + $0x298] sm:$0xff] }
 0x274   : > { %v5217_v21 = vpop.permute.xlu1 %1809  ;;  %v5219_v27 = vpop.permute.xlu0 %1814 }
 0x275   : > { %9018 = vst [vmem:[#allocation151_spill] sm:$0xff] %v5217_v21  ;;  %9019 = vst [vmem:[#allocation152_spill] sm:$0xff] %v5219_v27  ;;  %2310 = vperm.xlu1 %4237, %v4081_v30   ;;  %2315 = vperm.xlu0 %4236, %v4082_v25  }
 0x278   : > { %v5224_v33 = vpop.permute.xlu1 %1819  ;;  %v5226_v22 = vpop.permute.xlu0 %1824 }
 0x279   : > { %9020 = vst [vmem:[#allocation153_spill] sm:$0xff] %v5224_v33  ;;  %9021 = vst [vmem:[#allocation154_spill] sm:$0xff] %v5226_v22  ;;  %2320 = vperm.xlu1 %4237, %v4083_v37   ;;  %2347 = vrot.lane.b32.xlu0 %v4454_v46, %s4282_s27 }
 0x27c   : > { %v5230_v31 = vpop.permute.xlu1 %1829  ;;  %v5232_v21 = vpop.permute.xlu0 %1856 }
 0x27d   : > { %9022 = vst [vmem:[#allocation155_spill] sm:$0xff] %v5230_v31  ;;  %9023 = vst [vmem:[#allocation156_spill] sm:$0xff] %v5232_v21  ;;  %2349 = vrot.lane.b32.xlu1 %v4460_v54, %s4282_s27  ;;  %2351 = vrot.lane.b32.xlu0 %v4456_v50, %s4282_s27  ;;  %v560_v21 = vlaneseq }
 0x27f   : > { %v5345_v59 = vand.u32 127, %v560_v21 }
 0x280   : > { %v5238_v30 = vpop.permute.xlu1 %1858  ;;  %v5240_v25 = vpop.permute.xlu0 %1860 }
 0x281   : > { %9024 = vst [vmem:[#allocation157_spill] sm:$0xff] %v5238_v30  ;;  %9025 = vst [vmem:[#allocation158_spill] sm:$0xff] %v5240_v25  ;;  %2353 = vrot.lane.b32.xlu1 %v4466_v57, %s4282_s27  ;;  %2355 = vrot.lane.b32.xlu0 %v4619_v28, %s4282_s27  ;;  %vm562_vm1 = vcmp.lt.s32.totalorder %v5345_v59, 73  ;;  %vm692_vm2 = vcmp.lt.s32.totalorder %v5345_v59, 72  ;;  %vm824_vm3 = vcmp.lt.s32.totalorder %v5345_v59, 71  ;;  %vm956_vm4 = vcmp.lt.s32.totalorder %v5345_v59, 65 }
 0x282   : > { %vm1088_vm5 = vcmp.lt.s32.totalorder %v5345_v59, 64  ;;  %vm1220_vm6 = vcmp.lt.s32.totalorder %v5345_v59, 63  ;;  %vm1352_vm7 = vcmp.lt.s32.totalorder %v5345_v59, 57  ;;  %vm1484_vm8 = vcmp.lt.s32.totalorder %v5345_v59, 56 }
 0x283   : > { %vm1616_vm9 = vcmp.lt.s32.totalorder %v5345_v59, 55  ;;  %vm1748_vm10 = vcmp.lt.s32.totalorder %v5345_v59, 9  ;;  %vm1880_vm11 = vcmp.lt.s32.totalorder %v5345_v59, 8  ;;  %vm2012_vm12 = vcmp.lt.s32.totalorder %v5345_v59, 7 }
 0x284   : > { %v5246_v37 = vpop.permute.xlu1 %1862  ;;  %v5248_v31 = vpop.permute.xlu0 %1864  ;;  %vm2144_vm13 = vcmp.lt.s32.totalorder %v5345_v59, 1  ;;  %vm2635_vm14 = vcmp.lt.s32.totalorder %v5345_v59, 120  ;;  %vm2371_vm15 = vcmp.lt.s32.totalorder %v5345_v59, 127  ;;  %vm2503_vm0 = vcmp.lt.s32.totalorder %v5345_v59, 121 }
 0x285   : > { %9026 = vst [vmem:[#allocation159_spill] sm:$0xff] %v5246_v37  ;;  %9027 = vst [vmem:[#allocation160_spill] sm:$0xff] %v5248_v31  ;;  %2357 = vrot.lane.b32.xlu1 %v4637_v35, %s4282_s27  ;;  %2359 = vrot.lane.b32.xlu0 %v4530_v5, %s4282_s27  ;;  %v579_v37 = vshrl.u32 %v560_v21, 7  ;;  %v4077_v31 = vld [vmem:[%s8505_s5 + $0x1a] sm:$0x3] }
 0x286   : > { %v2254_v27 = vunpack.c.l.bf16 %v4077_v31 }
 0x288   : > { %v5254_v30 = vpop.permute.xlu1 %1866  ;;  %v5256_v25 = vpop.permute.xlu0 %1868 }
 0x289   : > { %9028 = vst [vmem:[#allocation161_spill] sm:$0xff] %v5254_v30  ;;  %9029 = vst [vmem:[#allocation162_spill] sm:$0xff] %v5256_v25  ;;  %2361 = vrot.lane.b32.xlu1 %v4542_v10, %s4282_s27  ;;  %2363 = vrot.lane.b32.xlu0 %v4540_v9, %s4282_s27  ;;  %v5273_v30 = vsub.s32 0, %v579_v37  ;;  %v4085_v25 = vld [vmem:[%s8503_s3 + $0x2a0] sm:$0xff] }
 0x28b   : > { %v2259_v31 = vrot.slane %v2254_v27, %v5273_v30 }
 0x28c   : > { %v5262_v22 = vpop.permute.xlu1 %1870  ;;  %v5267_v33 = vpop.permute.xlu0 %1872 }
 0x28d   : > { %9030 = vst [vmem:[#allocation163_spill] sm:$0xff] %v5262_v22  ;;  %9031 = vst [vmem:[#allocation164_spill] sm:$0xff] %v5267_v33  ;;  %2365 = vrot.lane.b32.xlu1 %v4550_v13, %s4282_s27  ;;  %2367 = vrot.lane.b32.xlu0 %v4666_v41, %s4282_s27  ;;  %v5278_v22 = vsub.s32 2, %v579_v37  ;;  %v4086_v33 = vld [vmem:[%s8503_s3 + $0x2a8] sm:$0xff]  ;;  %v2269_v6 = vrot.slane %v2259_v31, %v5273_v30 }
 0x28e   : > { %v4090_v31 = vld [vmem:[%s8503_s3 + $0x2c8] sm:$0xff] }
 0x28f   : > { %9032 = vst [vmem:[#allocation165_spill] sm:$0xff] %v5278_v22  ;;  %v5350_v58 = vmul.f32 %v2269_v6, %v4460_v54 }
 0x290   : > { %v5280_v32 = vpop.permute.xlu1 %1874  ;;  %v5282_v20 = vpop.permute.xlu0 %1876 }
 0x291   : > { %9033 = vst [vmem:[#allocation166_spill] sm:$0xff] %v5280_v32  ;;  %9034 = vst [vmem:[#allocation167_spill] sm:$0xff] %v5282_v20  ;;  %2369 = vrot.lane.b32.xlu1 %v4685_v48, %s4282_s27  ;;  %2427 = vperm.xlu0 %4236, %v4085_v25   ;;  %v2263_v32 = vrot.slane %v2254_v27, %v5278_v22  ;;  %v4088_v25 = vld [vmem:[%s8503_s3 + $0x2b8] sm:$0xff]  ;;  %v4089_v20 = vld [vmem:[%s8503_s3 + $0x2c0] sm:$0xff]  ;;  %s8474_s27 = scalar_lea.vmem %s8506_s6, %s4193_s30 }
 0x292   : > { %9045 = vst [vmem:[#allocation178_spill] sm:$0xff] %v5350_v58 }
 0x293   : > { %v2273_v27 = vrot.slane %v2263_v32, %v5273_v30  ;;  %v4000_v32 = vld [vmem:[%s8505_s5 + $0x4] sm:$0x3] }
 0x294   : > { %v5293_v37 = vpop.permute.xlu1 %1878  ;;  %v5296_v26 = vpop.permute.xlu0 %1936 }
 0x295   : > { %9035 = vst [vmem:[#allocation168_spill] sm:$0xff] %v5293_v37  ;;  %9036 = vst [vmem:[#allocation169_spill] sm:$0xff] %v5296_v26  ;;  %2432 = vperm.xlu1 %4237, %v4086_v33   ;;  %2437 = vperm.xlu0 %4236, %v4087_v17   ;;  %v575_v37 = vld [vmem:[%s8505_s5] sm:$0x3]  ;;  %v4112_v17 = vld [vmem:[%s8505_s5 + $0x24] sm:$0x3]  ;;  %v5337_v16 = vmul.f32 %v2273_v27, %v4530_v5  ;;  %v5343_v15 = vmul.f32 %v2273_v27, %v4540_v9 }
 0x296   : > { %v3993_v26 = vld [vmem:[%s8505_s5 + $0x2] sm:$0x3]  ;;  %v576_v11 = vunpack.c.l.bf16 %v575_v37  ;;  %v5340_v37 = vmul.f32 %v2269_v6, %v4456_v50  ;;  %v5364_v21 = vmul.f32 %v2273_v27, %v4550_v13  ;;  %v5374_v58 = vmul.f32 %v2273_v27, %v4666_v41 }
 0x297   : > { %9041 = vst [vmem:[#allocation174_spill] sm:$0xff] %v5337_v16  ;;  %9043 = vst [vmem:[#allocation176_spill] sm:$0xff] %v5343_v15  ;;  %v707_v29 = vunpack.c.l.bf16 %v3993_v26  ;;  %v839_v16 = vunpack.c.l.bf16 %v4000_v32  ;;  %v5361_v26 = vmul.f32 %v2273_v27, %v4542_v10  ;;  %v4028_v15 = vld [vmem:[%s8505_s5 + $0xc] sm:$0x3] }
 0x298   : > { %v5308_v23 = vpop.permute.xlu1 %1941  ;;  %v5311_v33 = vpop.permute.xlu0 %1946  ;;  %9042 = vst [vmem:[#allocation175_spill] sm:$0xff] %v5340_v37  ;;  %v4021_v37 = vld [vmem:[%s8505_s5 + $0xa] sm:$0x3]  ;;  %9048 = vst [vmem:[#allocation181_spill] sm:$0xff] %v5364_v21  ;;  %v5380_v21 = vmul.f32 %v2269_v6, %v4637_v35 }
 0x299   : > { %9037 = vst [vmem:[#allocation170_spill] sm:$0xff] %v5308_v23  ;;  %9038 = vst [vmem:[#allocation171_spill] sm:$0xff] %v5311_v33  ;;  %2442 = vperm.xlu1 %4237, %v4088_v25   ;;  %2447 = vperm.xlu0 %4236, %v4089_v20   ;;  %v5326_v25 = vmul.f32 %v2269_v6, %v4454_v46  ;;  %v4007_v33 = vld [vmem:[%s8505_s5 + $0x6] sm:$0x3]  ;;  %v4014_v20 = vld [vmem:[%s8505_s5 + $0x8] sm:$0x3] }
 0x29a   : > { %9047 = vst [vmem:[#allocation180_spill] sm:$0xff] %v5361_v26  ;;  %v971_v32 = vunpack.c.l.bf16 %v4007_v33  ;;  %9050 = vst [vmem:[#allocation183_spill] sm:$0xff] %v5374_v58  ;;  %v712_v33 = vrot.slane %v707_v29, %v5273_v30  ;;  %v848_v58 = vrot.slane %v839_v16, %v5278_v22 }
 0x29b   : > { %9039 = vst [vmem:[#allocation172_spill] sm:$0xff] %v5326_v25  ;;  %v2877_v25 = vunpack.c.l.bf16 %v4112_v17  ;;  %v5367_v17 = vmul.f32 %v2269_v6, %v4619_v28  ;;  %9052 = vst [vmem:[#allocation185_spill] sm:$0xff] %v5380_v21  ;;  %v844_v21 = vrot.slane %v839_v16, %v5273_v30 }
 0x29c   : > { %v5334_v23 = vpop.permute.xlu1 %1951  ;;  %v5347_v14 = vpop.permute.xlu0 %1956 }
 0x29d   : > { %9040 = vst [vmem:[#allocation173_spill] sm:$0xff] %v5334_v23  ;;  %9044 = vst [vmem:[#allocation177_spill] sm:$0xff] %v5347_v14  ;;  %2452 = vperm.xlu1 %4237, %v4090_v31   ;;  %v5353_v23 = vmul.f32 %v2269_v6, %v4466_v57  ;;  %2479 = vrot.lane.b32.xlu0 %v4454_v46, %s4283_s14  ;;  %v581_v31 = vrot.slane %v576_v11, %v5273_v30 }
 0x29e   : > { %9049 = vst [vmem:[#allocation182_spill] sm:$0xff] %v5367_v17  ;;  %v585_v14 = vrot.slane %v576_v11, %v5278_v22  ;;  %v2882_v17 = vrot.slane %v2877_v25, %v5273_v30  ;;  %v2886_v46 = vrot.slane %v2877_v25, %v5278_v22  ;;  %v5391_v11 = vmul.f32 %v2273_v27, %v4685_v48 }
 0x29f   : > { %9046 = vst [vmem:[#allocation179_spill] sm:$0xff] %v5353_v23  ;;  %v1103_v23 = vunpack.c.l.bf16 %v4014_v20  ;;  %v1235_v20 = vunpack.c.l.bf16 %v4021_v37  ;;  %v716_v6 = vrot.slane %v707_v29, %v5278_v22  ;;  %v1367_v25 = vunpack.c.l.bf16 %v4028_v15 }
 0x2a0   : > { %v5377_v26 = vpop.permute.xlu1 %1961  ;;  %v5386_v47 = vpop.permute.xlu0 %1988  ;;  %9054 = vst [vmem:[#allocation187_spill] sm:$0xff] %v5391_v11  ;;  %v5399_v37 = vrot.slane %v581_v31, %v5273_v30  ;;  %v5405_v11 = vrot.slane %v585_v14, %v5273_v30  ;;  %v5411_v15 = vrot.slane %v2882_v17, %v5273_v30  ;;  %v5414_v16 = vrot.slane %v2886_v46, %v5273_v30 }
 0x2a1   : > { %9051 = vst [vmem:[#allocation184_spill] sm:$0xff] %v5377_v26  ;;  %9053 = vst [vmem:[#allocation186_spill] sm:$0xff] %v5386_v47  ;;  %2481 = vrot.lane.b32.xlu1 %v4460_v54, %s4283_s14  ;;  %2483 = vrot.lane.b32.xlu0 %v4456_v50, %s4283_s14  ;;  %v976_v47 = vrot.slane %v971_v32, %v5273_v30  ;;  %v980_v26 = vrot.slane %v971_v32, %v5278_v22 }
 0x2a2   : > { %v1108_v27 = vrot.slane %v1103_v23, %v5273_v30  ;;  %v1112_v29 = vrot.slane %v1103_v23, %v5278_v22  ;;  %9056 = vst [vmem:[#allocation189_spill] sm:$0xff] %v5411_v15  ;;  %9057 = vst [vmem:[#allocation190_spill] sm:$0xff] %v5414_v16  ;;  %v5418_v31 = vrot.slane %v712_v33, %v5273_v30 }
 0x2a3   : > { %v1240_v32 = vrot.slane %v1235_v20, %v5273_v30  ;;  %v1244_v14 = vrot.slane %v1235_v20, %v5278_v22  ;;  %v5427_v23 = vrot.slane %v716_v6, %v5273_v30  ;;  %v5430_v46 = vrot.slane %v844_v21, %v5273_v30 }
 0x2a4   : > { %v5408_v54 = vpop.permute.xlu1 %1990  ;;  %v5422_v50 = vpop.permute.xlu0 %1992  ;;  %v5433_v17 = vrot.slane %v848_v58, %v5273_v30  ;;  %v1372_v33 = vrot.slane %v1367_v25, %v5273_v30  ;;  %v5442_v20 = vsel %vm562_vm1, %v4759_v1, %v4659_v40  ;;  %v5445_v6 = vrot.slane %v976_v47, %v5273_v30 }
 0x2a5   : > { %9055 = vst [vmem:[#allocation188_spill] sm:$0xff] %v5408_v54  ;;  %9058 = vst [vmem:[#allocation191_spill] sm:$0xff] %v5422_v50  ;;  %2485 = vrot.lane.b32.xlu1 %v4466_v57, %s4283_s14  ;;  %2487 = vrot.lane.b32.xlu0 %v4619_v28, %s4283_s14  ;;  %v5448_v21 = vrot.slane %v980_v26, %v5273_v30  ;;  %v5451_v58 = vrot.slane %v1108_v27, %v5273_v30 }
 0x2a6   : > { %9059 = vst [vmem:[#allocation192_spill] sm:$0xff] %v5442_v20  ;;  %v5457_v16 = vsel %vm562_vm1, %v4659_v40, %v4759_v1  ;;  %v5463_v15 = vsel %vm562_vm1, %v4763_v12, %v4668_v42  ;;  %v5467_v47 = vrot.slane %v1112_v29, %v5273_v30  ;;  %v1376_v26 = vrot.slane %v1367_v25, %v5278_v22 }
 0x2a7   : > { %9060 = vst [vmem:[#allocation193_spill] sm:$0xff] %v5457_v16  ;;  %9061 = vst [vmem:[#allocation194_spill] sm:$0xff] %v5463_v15  ;;  %v5476_v1 = vsel %vm562_vm1, %v4668_v42, %v4763_v12  ;;  %v5482_v40 = vsel %vm692_vm2, %v4771_v0, %v4678_v45  ;;  %v5485_v50 = vrot.slane %v1240_v32, %v5273_v30 }
 0x2a8   : > { %v5470_v27 = vpop.permute.xlu1 %1994  ;;  %9063 = vst [vmem:[#allocation196_spill] sm:$0xff] %v5476_v1  ;;  %9064 = vst [vmem:[#allocation197_spill] sm:$0xff] %v5482_v40  ;;  %v5488_v29 = vrot.slane %v1244_v14, %v5273_v30  ;;  %v5490_v25 = vpop.permute.xlu0 %1996  ;;  %v596_v12 = vmul.f32 %v5399_v37, %v5442_v20  ;;  %v5500_v42 = vsel %vm562_vm1, %v4670_v43, %v4765_v24 }
 0x2a9   : > { %9062 = vst [vmem:[#allocation195_spill] sm:$0xff] %v5470_v27  ;;  %9065 = vst [vmem:[#allocation198_spill] sm:$0xff] %v5490_v25  ;;  %2489 = vrot.lane.b32.xlu1 %v4637_v35, %s4283_s14  ;;  %v5506_v32 = vsel %vm562_vm1, %v4765_v24, %v4670_v43  ;;  %v5509_v14 = vrot.slane %v1372_v33, %v5273_v30  ;;  %2491 = vrot.lane.b32.xlu0 %v4530_v5, %s4283_s14 }
 0x2aa   : > { %9066 = vst [vmem:[#allocation199_spill] sm:$0xff] %v5500_v42  ;;  %9067 = vst [vmem:[#allocation200_spill] sm:$0xff] %v5506_v32  ;;  %v597_v20 = vmul.f32 %v5405_v11, %v5457_v16  ;;  %v598_v25 = vmul.f32 %v5399_v37, %v5463_v15  ;;  %v5521_v27 = vsel %vm562_vm1, %v4769_v18, %v4676_v44 }
 0x2ab   : > { %9068 = vst [vmem:[#allocation201_spill] sm:$0xff] %v5521_v27  ;;  %v5527_v24 = vsel %vm692_vm2, %v4678_v45, %v4771_v0  ;;  %v599_v43 = vmul.f32 %v5405_v11, %v5476_v1  ;;  %v727_v33 = vmul.f32 %v5418_v31, %v5482_v40  ;;  %v5537_v15 = vsel %vm692_vm2, %v4775_v8, %v4687_v49 }
 0x2ac   : > { %9069 = vst [vmem:[#allocation202_spill] sm:$0xff] %v5527_v24  ;;  %9070 = vst [vmem:[#allocation203_spill] sm:$0xff] %v5537_v15  ;;  %v5540_v16 = vrot.slane %v1376_v26, %v5273_v30  ;;  %v5542_v54 = vpop.permute.xlu1 %1998  ;;  %v600_v0 = vmul.f32 %v5399_v37, %v5506_v32  ;;  %v601_v45 = vmul.f32 %v5405_v11, %v5500_v42  ;;  %v5560_v1 = vpop.permute.xlu0 %2000 }
 0x2ad   : > { %9072 = vst [vmem:[#allocation205_spill] sm:$0xff] %v5542_v54  ;;  %v5552_v40 = vsel %vm562_vm1, %v4676_v44, %v4769_v18  ;;  %v5558_v26 = vsel %vm692_vm2, %v4687_v49, %v4775_v8  ;;  %9075 = vst [vmem:[#allocation208_spill] sm:$0xff] %v5560_v1  ;;  %2493 = vrot.lane.b32.xlu1 %v4542_v10, %s4283_s14  ;;  %v644_v32 = vmul.f32 %v4484_v60, %v596_v12 }
 0x2ae   : > { %9071 = vst [vmem:[#allocation204_spill] sm:$0xff] %v5540_v16  ;;  %9073 = vst [vmem:[#allocation206_spill] sm:$0xff] %v5552_v40  ;;  %v602_v42 = vmul.f32 %v5399_v37, %v5521_v27  ;;  %v728_v18 = vmul.f32 %v5427_v23, %v5527_v24  ;;  %v5573_v44 = vsel %vm692_vm2, %v4777_v39, %v4689_v51  ;;  %2495 = vrot.lane.b32.xlu0 %v4540_v9, %s4283_s14 }
 0x2af   : > { %9074 = vst [vmem:[#allocation207_spill] sm:$0xff] %v5558_v26  ;;  %9076 = vst [vmem:[#allocation209_spill] sm:$0xff] %v5573_v44  ;;  %v645_v8 = vmul.f32 %v4484_v60, %v597_v20  ;;  %v646_v49 = vmul.f32 %v4490_v61, %v598_v25  ;;  %v729_v12 = vmul.f32 %v5418_v31, %v5537_v15 }
 0x2b0   : > { %v5585_v24 = vsel %vm692_vm2, %v4689_v51, %v4777_v39  ;;  %v603_v27 = vmul.f32 %v5405_v11, %v5552_v40  ;;  %v776_v54 = vmul.f32 %v4516_v2, %v727_v33  ;;  %v730_v60 = vmul.f32 %v5427_v23, %v5558_v26  ;;  %v5599_v25 = vpop.permute.xlu1 %2002  ;;  %v5606_v40 = vpop.permute.xlu0 %2004 }
 0x2b1   : > { %9077 = vst [vmem:[#allocation210_spill] sm:$0xff] %v5585_v24  ;;  %v5597_v20 = vsel %vm692_vm2, %v4786_v19, %v4695_v52  ;;  %9079 = vst [vmem:[#allocation212_spill] sm:$0xff] %v5599_v25  ;;  %v647_v39 = vmul.f32 %v4490_v61, %v599_v43  ;;  %v648_v51 = vmul.f32 %v4496_v62, %v600_v0  ;;  %2497 = vrot.lane.b32.xlu1 %v4550_v13, %s4283_s14 }
 0x2b2   : > { %9078 = vst [vmem:[#allocation211_spill] sm:$0xff] %v5597_v20  ;;  %v649_v15 = vmul.f32 %v4496_v62, %v601_v45  ;;  %v731_v33 = vmul.f32 %v5418_v31, %v5573_v44  ;;  %9080 = vst [vmem:[#allocation213_spill] sm:$0xff] %v5606_v40  ;;  %v650_v26 = vmul.f32 %v4502_v63, %v602_v42  ;;  %2499 = vrot.lane.b32.xlu0 %v4666_v41, %s4283_s14  ;;  %v9146_v40 = vld [vmem:[#allocation21_spill] sm:$0xff] }
 0x2b3   : > { %v777_v1 = vmul.f32 %v4516_v2, %v728_v18  ;;  %v732_v25 = vmul.f32 %v5427_v23, %v5585_v24  ;;  %v5618_v61 = vsel %vm692_vm2, %v4695_v52, %v4786_v19  ;;  %v778_v62 = vmul.f32 %v4522_v3, %v729_v12  ;;  %v4092_v52 = vld [vmem:[%s8503_s3 + $0x2d0] sm:$0xff] }
 0x2b4   : > { %9081 = vst [vmem:[#allocation214_spill] sm:$0xff] %v5618_v61  ;;  %v733_v43 = vmul.f32 %v5418_v31, %v5597_v20  ;;  %v5629_v2 = vsel %vm824_vm3, %v4697_v53, %v4788_v34  ;;  %v5635_v19 = vsel %vm824_vm3, %v4788_v34, %v4697_v53  ;;  %v651_v42 = vmul.f32 %v4502_v63, %v603_v27  ;;  %v5648_v12 = vpop.permute.xlu1 %2006 }
 0x2b5   : > { %9082 = vst [vmem:[#allocation215_spill] sm:$0xff] %v5629_v2  ;;  %9083 = vst [vmem:[#allocation216_spill] sm:$0xff] %v5635_v19  ;;  %v788_v0 = vadd.f32 %v776_v54, %v644_v32  ;;  %v779_v45 = vmul.f32 %v4522_v3, %v730_v60  ;;  %v5646_v18 = vsel %vm824_vm3, %v4796_v36, %v4703_v55  ;;  %v5665_v3 = vpop.permute.xlu0 %2008  ;;  %2501 = vrot.lane.b32.xlu1 %v4685_v48, %s4283_s14 }
 0x2b6   : > { %9084 = vst [vmem:[#allocation217_spill] sm:$0xff] %v5646_v18  ;;  %9085 = vst [vmem:[#allocation218_spill] sm:$0xff] %v5648_v12  ;;  %v780_v34 = vmul.f32 %v4524_v4, %v731_v33  ;;  %v734_v53 = vmul.f32 %v5427_v23, %v5618_v61  ;;  %v5657_v54 = vsel %vm824_vm3, %v4703_v55, %v4796_v36  ;;  %2559 = vperm.xlu0 %4236, %v4092_v52   ;;  %v4093_v55 = vld [vmem:[%s8503_s3 + $0x2d8] sm:$0xff]  ;;  %v9098_v12 = vld [vmem:[#allocation31_spill] sm:$0xff] }
 0x2b7   : > { %9086 = vst [vmem:[#allocation219_spill] sm:$0xff] %v5657_v54  ;;  %v5663_v63 = vsel %vm824_vm3, %v4798_v38, %v4705_v56  ;;  %9088 = vst [vmem:[#allocation221_spill] sm:$0xff] %v5665_v3  ;;  %v789_v27 = vadd.f32 %v777_v1, %v645_v8  ;;  %v859_v32 = vmul.f32 %v5430_v46, %v5635_v19  ;;  %v9096_v61 = vld [vmem:[#allocation9_spill] sm:$0xff]  ;;  %v9097_v3 = vld [vmem:[#allocation44_spill] sm:$0xff] }
 0x2b8   : > { %9087 = vst [vmem:[#allocation220_spill] sm:$0xff] %v5663_v63  ;;  %v860_v60 = vmul.f32 %v5433_v17, %v5629_v2  ;;  %v5677_v36 = vsel %vm824_vm3, %v4705_v56, %v4798_v38  ;;  %v790_v33 = vadd.f32 %v778_v62, %v646_v49  ;;  %v781_v1 = vmul.f32 %v4524_v4, %v732_v25  ;;  %v4094_v56 = vld [vmem:[%s8503_s3 + $0x2e0] sm:$0xff]  ;;  %v9090_v49 = vld [vmem:[#allocation43_spill] sm:$0xff] }
 0x2b9   : > { %9089 = vst [vmem:[#allocation222_spill] sm:$0xff] %v5677_v36  ;;  %v782_v8 = vmul.f32 %v4532_v7, %v733_v43  ;;  %v861_v19 = vmul.f32 %v5430_v46, %v5646_v18  ;;  %v862_v38 = vmul.f32 %v5433_v17, %v5657_v54  ;;  %v863_v52 = vmul.f32 %v5430_v46, %v5663_v63  ;;  %v9091_v62 = vld [vmem:[#allocation30_spill] sm:$0xff]  ;;  %v5706_v43 = vpop.permute.xlu1 %2010  ;;  %v5711_v20 = vpop.permute.xlu0 %2068 }
 0x2ba   : > { %v5698_v4 = vsel %vm824_vm3, %v9091_v62, %v9090_v49  ;;  %v5704_v25 = vsel %vm824_vm3, %v9090_v49, %v9091_v62  ;;  %9094 = vst [vmem:[#allocation223_spill] sm:$0xff] %v5706_v43  ;;  %v791_v18 = vadd.f32 %v779_v45, %v647_v39  ;;  %v792_v2 = vadd.f32 %v780_v34, %v648_v51  ;;  %v4095_v39 = vld [vmem:[%s8503_s3 + $0x2e8] sm:$0xff]  ;;  %v9104_v62 = vld [vmem:[#allocation45_spill] sm:$0xff] }
 0x2bb   : > { %9092 = vst [vmem:[#allocation43_spill] sm:$0xff] %v5698_v4  ;;  %9093 = vst [vmem:[#allocation30_spill] sm:$0xff] %v5704_v25  ;;  %v783_v54 = vmul.f32 %v4532_v7, %v734_v53  ;;  %v864_v63 = vmul.f32 %v5433_v17, %v5677_v36  ;;  %2564 = vperm.xlu1 %4237, %v4093_v55   ;;  %v908_v44 = vmul.f32 %v9096_v61, %v859_v32  ;;  %v4096_v53 = vld [vmem:[%s8503_s3 + $0x2f0] sm:$0xff]  ;;  %v9101_v32 = vld [vmem:[#allocation10_spill] sm:$0xff] }
 0x2bc   : > { %9095 = vst [vmem:[#allocation224_spill] sm:$0xff] %v5711_v20  ;;  %v909_v24 = vmul.f32 %v9096_v61, %v860_v60  ;;  %v5719_v49 = vsel %vm956_vm4, %v9098_v12, %v9097_v3  ;;  %v5725_v7 = vsel %vm956_vm4, %v9097_v3, %v9098_v12  ;;  %2569 = vperm.xlu0 %4236, %v4094_v56   ;;  %v9102_v60 = vld [vmem:[#allocation11_spill] sm:$0xff]  ;;  %v9103_v56 = vld [vmem:[#allocation32_spill] sm:$0xff]  ;;  %v9109_v36 = vld [vmem:[#allocation46_spill] sm:$0xff] }
 0x2bd   : > { %9099 = vst [vmem:[#allocation9_spill] sm:$0xff] %v5719_v49  ;;  %9100 = vst [vmem:[#allocation44_spill] sm:$0xff] %v5725_v7  ;;  %v793_v51 = vadd.f32 %v781_v1, %v649_v15  ;;  %v794_v45 = vadd.f32 %v782_v8, %v650_v26  ;;  %v865_v61 = vmul.f32 %v5430_v46, %v5704_v25  ;;  %v5746_v26 = vpop.permute.xlu1 %2073 }
 0x2be   : > { %v866_v34 = vmul.f32 %v5433_v17, %v5698_v4  ;;  %v910_v12 = vmul.f32 %v9101_v32, %v861_v19  ;;  %v911_v3 = vmul.f32 %v9101_v32, %v862_v38  ;;  %v912_v55 = vmul.f32 %v9102_v60, %v863_v52  ;;  %9106 = vst [vmem:[#allocation10_spill] sm:$0xff] %v5746_v26  ;;  %v5759_v52 = vpop.permute.xlu0 %2078  ;;  %v9145_v26 = vld [vmem:[#allocation18_spill] sm:$0xff] }
 0x2bf   : > { %v5744_v15 = vsel %vm956_vm4, %v9104_v62, %v9103_v56  ;;  %v913_v1 = vmul.f32 %v9102_v60, %v864_v63  ;;  %v991_v8 = vmul.f32 %v5445_v6, %v5725_v7  ;;  %v992_v19 = vmul.f32 %v5448_v21, %v5719_v49  ;;  %9108 = vst [vmem:[#allocation32_spill] sm:$0xff] %v5759_v52  ;;  %v9110_v63 = vld [vmem:[#allocation33_spill] sm:$0xff]  ;;  %v9112_v49 = vld [vmem:[#allocation12_spill] sm:$0xff] }
 0x2c0   : > { %9105 = vst [vmem:[#allocation31_spill] sm:$0xff] %v5744_v15  ;;  %v5757_v38 = vsel %vm956_vm4, %v9103_v56, %v9104_v62  ;;  %2574 = vperm.xlu1 %4237, %v4095_v39   ;;  %v795_v32 = vadd.f32 %v783_v54, %v651_v42  ;;  %v920_v25 = vadd.f32 %v908_v44, %v788_v0  ;;  %v4097_v7 = vld [vmem:[%s8503_s3 + $0x2f8] sm:$0xff]  ;;  %v9117_v52 = vld [vmem:[#allocation48_spill] sm:$0xff] }
 0x2c1   : > { %9107 = vst [vmem:[#allocation11_spill] sm:$0xff] %v5757_v38  ;;  %v921_v4 = vadd.f32 %v909_v24, %v789_v27  ;;  %v5765_v60 = vsel %vm956_vm4, %v9110_v63, %v9109_v36  ;;  %2579 = vperm.xlu0 %4236, %v4096_v53   ;;  %v914_v56 = vmul.f32 %v9112_v49, %v865_v61  ;;  %v5783_v39 = vpop.permute.xlu1 %2083  ;;  %v9115_v61 = vld [vmem:[#allocation15_spill] sm:$0xff] }
 0x2c2   : > { %9111 = vst [vmem:[#allocation45_spill] sm:$0xff] %v5765_v60  ;;  %v915_v62 = vmul.f32 %v9112_v49, %v866_v34  ;;  %v993_v42 = vmul.f32 %v5445_v6, %v5744_v15  ;;  %v5778_v24 = vsel %vm956_vm4, %v9109_v36, %v9110_v63  ;;  %v922_v44 = vadd.f32 %v910_v12, %v790_v33  ;;  %v9116_v15 = vld [vmem:[#allocation34_spill] sm:$0xff]  ;;  %v9121_v12 = vld [vmem:[#allocation35_spill] sm:$0xff] }
 0x2c3   : > { %9113 = vst [vmem:[#allocation46_spill] sm:$0xff] %v5778_v24  ;;  %v923_v0 = vadd.f32 %v911_v3, %v791_v18  ;;  %v924_v54 = vadd.f32 %v912_v55, %v792_v2  ;;  %v994_v27 = vmul.f32 %v5448_v21, %v5757_v38  ;;  %9114 = vst [vmem:[#allocation33_spill] sm:$0xff] %v5783_v39  ;;  %v5793_v18 = vpop.permute.xlu0 %2088  ;;  %v9122_v3 = vld [vmem:[#allocation47_spill] sm:$0xff] }
 0x2c4   : > { %v925_v49 = vadd.f32 %v913_v1, %v793_v51  ;;  %v1040_v34 = vmul.f32 %v9115_v61, %v991_v8  ;;  %v1041_v53 = vmul.f32 %v9115_v61, %v992_v19  ;;  %v5791_v36 = vsel %vm956_vm4, %v9117_v52, %v9116_v15  ;;  %9119 = vst [vmem:[#allocation15_spill] sm:$0xff] %v5793_v18  ;;  %v9125_v19 = vld [vmem:[#allocation16_spill] sm:$0xff]  ;;  %v9139_v18 = vld [vmem:[#allocation3_spill] sm:$0xff] }
 0x2c5   : > { %9118 = vst [vmem:[#allocation12_spill] sm:$0xff] %v5791_v36  ;;  %2584 = vperm.xlu1 %4237, %v4097_v7   ;;  %v995_v2 = vmul.f32 %v5445_v6, %v5778_v24  ;;  %v996_v33 = vmul.f32 %v5448_v21, %v5765_v60  ;;  %v5803_v51 = vsel %vm956_vm4, %v9116_v15, %v9117_v52  ;;  %v9124_v7 = vld [vmem:[#allocation2_spill] sm:$0xff]  ;;  %v9128_v60 = vld [vmem:[#allocation36_spill] sm:$0xff] }
 0x2c6   : > { %9120 = vst [vmem:[#allocation34_spill] sm:$0xff] %v5803_v51  ;;  %v5809_v55 = vsel %vm1088_vm5, %v9122_v3, %v9121_v12  ;;  %2611 = vrot.lane.b32.xlu0 %v9124_v7, %s4284_s10  ;;  %v926_v1 = vadd.f32 %v914_v56, %v794_v45  ;;  %v927_v8 = vadd.f32 %v915_v62, %v795_v32  ;;  %v9127_v24 = vld [vmem:[#allocation50_spill] sm:$0xff]  ;;  %v5835_v32 = vpop.permute.xlu1 %2093 }
 0x2c7   : > { %9123 = vst [vmem:[#allocation48_spill] sm:$0xff] %v5809_v55  ;;  %v1042_v63 = vmul.f32 %v9125_v19, %v993_v42  ;;  %v5818_v15 = vsel %vm1088_vm5, %v9121_v12, %v9122_v3  ;;  %v1043_v52 = vmul.f32 %v9125_v19, %v994_v27  ;;  %v997_v61 = vmul.f32 %v5445_v6, %v5791_v36  ;;  %v9132_v42 = vld [vmem:[#allocation49_spill] sm:$0xff]  ;;  %v9137_v3 = vld [vmem:[#allocation4_spill] sm:$0xff] }
 0x2c8   : > { %9126 = vst [vmem:[#allocation35_spill] sm:$0xff] %v5818_v15  ;;  %v5827_v38 = vsel %vm1088_vm5, %v9128_v60, %v9127_v24  ;;  %v5833_v45 = vsel %vm1088_vm5, %v9127_v24, %v9128_v60  ;;  %9131 = vst [vmem:[#allocation16_spill] sm:$0xff] %v5835_v32  ;;  %v998_v56 = vmul.f32 %v5448_v21, %v5803_v51  ;;  %v9133_v27 = vld [vmem:[#allocation37_spill] sm:$0xff]  ;;  %v5853_v24 = vpop.permute.xlu0 %2120 }
 0x2c9   : > { %9129 = vst [vmem:[#allocation47_spill] sm:$0xff] %v5827_v38  ;;  %9130 = vst [vmem:[#allocation2_spill] sm:$0xff] %v5833_v45  ;;  %v1123_v62 = vmul.f32 %v5451_v58, %v5809_v55  ;;  %v5845_v12 = vsel %vm1088_vm5, %v9133_v27, %v9132_v42  ;;  %v5851_v60 = vsel %vm1088_vm5, %v9132_v42, %v9133_v27  ;;  %2613 = vrot.lane.b32.xlu1 %v9137_v3, %s4284_s10  ;;  %v9138_v55 = vld [vmem:[#allocation17_spill] sm:$0xff] }
 0x2ca   : > { %9134 = vst [vmem:[#allocation50_spill] sm:$0xff] %v5845_v12  ;;  %9135 = vst [vmem:[#allocation36_spill] sm:$0xff] %v5851_v60  ;;  %v1052_v19 = vadd.f32 %v1040_v34, %v920_v25  ;;  %v1053_v36 = vadd.f32 %v1041_v53, %v921_v4  ;;  %v1044_v51 = vmul.f32 %v9138_v55, %v995_v2  ;;  %2615 = vrot.lane.b32.xlu0 %v9139_v18, %s4284_s10  ;;  %v9140_v27 = vld [vmem:[#allocation53_spill] sm:$0xff] }
 0x2cb   : > { %9136 = vst [vmem:[#allocation49_spill] sm:$0xff] %v5853_v24  ;;  %v1124_v32 = vmul.f32 %v5467_v47, %v5818_v15  ;;  %v1125_v39 = vmul.f32 %v5451_v58, %v5833_v45  ;;  %v1126_v42 = vmul.f32 %v5467_v47, %v5827_v38  ;;  %v9141_v24 = vld [vmem:[#allocation38_spill] sm:$0xff]  ;;  %v1054_v34 = vadd.f32 %v1042_v63, %v922_v44  ;;  %v5883_v38 = vpop.permute.xlu1 %2122 }
 0x2cc   : > { %v5870_v25 = vsel %vm1088_vm5, %v9141_v24, %v9140_v27  ;;  %v5876_v4 = vsel %vm1088_vm5, %v9140_v27, %v9141_v24  ;;  %v1045_v53 = vmul.f32 %v9138_v55, %v996_v33  ;;  %v1127_v2 = vmul.f32 %v5451_v58, %v5851_v60  ;;  %9144 = vst [vmem:[#allocation17_spill] sm:$0xff] %v5883_v38  ;;  %v5888_v24 = vpop.permute.xlu0 %2124  ;;  %v9154_v27 = vld [vmem:[#allocation55_spill] sm:$0xff]  ;;  %v9189_v38 = vld [vmem:[#allocation72_spill] sm:$0xff] }
 0x2cd   : > { %9142 = vst [vmem:[#allocation37_spill] sm:$0xff] %v5870_v25  ;;  %9143 = vst [vmem:[#allocation4_spill] sm:$0xff] %v5876_v4  ;;  %v1128_v45 = vmul.f32 %v5467_v47, %v5845_v12  ;;  %v1055_v15 = vadd.f32 %v1043_v52, %v923_v0  ;;  %v1046_v20 = vmul.f32 %v9145_v26, %v997_v61  ;;  %2617 = vrot.lane.b32.xlu1 %v4466_v57, %s4284_s10  ;;  %v9149_v61 = vld [vmem:[#allocation51_spill] sm:$0xff] }
 0x2ce   : > { %v1047_v43 = vmul.f32 %v9145_v26, %v998_v56  ;;  %v1172_v16 = vmul.f32 %v9146_v40, %v1123_v62  ;;  %9147 = vst [vmem:[#allocation3_spill] sm:$0xff] %v5888_v24  ;;  %v1056_v44 = vadd.f32 %v1044_v51, %v924_v54  ;;  %v1173_v33 = vmul.f32 %v9146_v40, %v1124_v32  ;;  %v9148_v26 = vld [vmem:[#allocation22_spill] sm:$0xff]  ;;  %v9150_v56 = vld [vmem:[#allocation39_spill] sm:$0xff] }
 0x2cf   : > { %v1129_v55 = vmul.f32 %v5451_v58, %v5876_v4  ;;  %v1130_v0 = vmul.f32 %v5467_v47, %v5870_v25  ;;  %2619 = vrot.lane.b32.xlu0 %v4619_v28, %s4284_s10  ;;  %v1174_v63 = vmul.f32 %v9148_v26, %v1125_v39  ;;  %v1175_v52 = vmul.f32 %v9148_v26, %v1126_v42  ;;  %v9153_v51 = vld [vmem:[#allocation23_spill] sm:$0xff]  ;;  %v9155_v39 = vld [vmem:[#allocation40_spill] sm:$0xff]  ;;  %v5927_v4 = vpop.permute.xlu1 %2126 }
 0x2d0   : > { %v5905_v54 = vsel %vm1220_vm6, %v9150_v56, %v9149_v61  ;;  %v5911_v40 = vsel %vm1220_vm6, %v9149_v61, %v9150_v56  ;;  %v1176_v32 = vmul.f32 %v9153_v51, %v1127_v2  ;;  %v1177_v62 = vmul.f32 %v9153_v51, %v1128_v45  ;;  %9158 = vst [vmem:[#allocation22_spill] sm:$0xff] %v5927_v4  ;;  %v5929_v60 = vpop.permute.xlu0 %2128  ;;  %v9160_v45 = vld [vmem:[#allocation24_spill] sm:$0xff] }
 0x2d1   : > { %9151 = vst [vmem:[#allocation53_spill] sm:$0xff] %v5905_v54  ;;  %9152 = vst [vmem:[#allocation38_spill] sm:$0xff] %v5911_v40  ;;  %v5919_v42 = vsel %vm1220_vm6, %v9155_v39, %v9154_v27  ;;  %v5925_v26 = vsel %vm1220_vm6, %v9154_v27, %v9155_v39  ;;  %v1057_v61 = vadd.f32 %v1045_v53, %v925_v49  ;;  %2621 = vrot.lane.b32.xlu1 %v4637_v35, %s4284_s10  ;;  %v9162_v53 = vld [vmem:[#allocation41_spill] sm:$0xff] }
 0x2d2   : > { %9156 = vst [vmem:[#allocation18_spill] sm:$0xff] %v5919_v42  ;;  %9157 = vst [vmem:[#allocation21_spill] sm:$0xff] %v5925_v26  ;;  %v1058_v56 = vadd.f32 %v1046_v20, %v926_v1  ;;  %v1059_v25 = vadd.f32 %v1047_v43, %v927_v8  ;;  %v1184_v2 = vadd.f32 %v1172_v16, %v1052_v19  ;;  %v4035_v20 = vld [vmem:[%s8505_s5 + $0xe] sm:$0x3]  ;;  %v9161_v19 = vld [vmem:[#allocation52_spill] sm:$0xff] }
 0x2d3   : > { %9159 = vst [vmem:[#allocation51_spill] sm:$0xff] %v5929_v60  ;;  %v1178_v51 = vmul.f32 %v9160_v45, %v1129_v55  ;;  %v1179_v12 = vmul.f32 %v9160_v45, %v1130_v0  ;;  %v1255_v24 = vmul.f32 %v5485_v50, %v5911_v40  ;;  %v1256_v27 = vmul.f32 %v5488_v29, %v5905_v54  ;;  %v5958_v45 = vpop.permute.xlu1 %2130  ;;  %v9183_v54 = vld [vmem:[#allocation70_spill] sm:$0xff] }
 0x2d4   : > { %2623 = vrot.lane.b32.xlu0 %v4530_v5, %s4284_s10  ;;  %v1185_v16 = vadd.f32 %v1173_v33, %v1053_v36  ;;  %v1186_v43 = vadd.f32 %v1174_v63, %v1054_v34  ;;  %v1257_v49 = vmul.f32 %v5485_v50, %v5925_v26  ;;  %v1258_v1 = vmul.f32 %v5488_v29, %v5919_v42  ;;  %v9166_v34 = vld [vmem:[#allocation58_spill] sm:$0xff]  ;;  %v9172_v26 = vld [vmem:[#allocation28_spill] sm:$0xff] }
 0x2d5   : > { %v1187_v8 = vadd.f32 %v1175_v52, %v1055_v15  ;;  %v5952_v55 = vsel %vm1220_vm6, %v9162_v53, %v9161_v19  ;;  %v5954_v0 = vadd.f32 %v1176_v32, %v1056_v44  ;;  %v5956_v39 = vadd.f32 %v1177_v62, %v1057_v61  ;;  %9164 = vst [vmem:[#allocation23_spill] sm:$0xff] %v5958_v45  ;;  %v9167_v15 = vld [vmem:[#allocation42_spill] sm:$0xff]  ;;  %v5978_v52 = vpop.permute.xlu0 %2132  ;;  %v9171_v32 = vld [vmem:[#allocation27_spill] sm:$0xff]  ;;  %v9184_v45 = vld [vmem:[#allocation57_spill] sm:$0xff] }
 0x2d6   : > { %9163 = vst [vmem:[#allocation39_spill] sm:$0xff] %v5952_v55  ;;  %v5964_v36 = vsel %vm1220_vm6, %v9161_v19, %v9162_v53  ;;  %v5970_v33 = vsel %vm1220_vm6, %v9167_v15, %v9166_v34  ;;  %v5976_v44 = vsel %vm1220_vm6, %v9166_v34, %v9167_v15  ;;  %v1499_v63 = vunpack.c.l.bf16 %v4035_v20  ;;  %9170 = vst [vmem:[#allocation52_spill] sm:$0xff] %v5978_v52  ;;  %v9173_v15 = vld [vmem:[#allocation67_spill] sm:$0xff]  ;;  %v9174_v20 = vld [vmem:[#allocation56_spill] sm:$0xff] }
 0x2d7   : > { %9165 = vst [vmem:[#allocation55_spill] sm:$0xff] %v5964_v36  ;;  %9168 = vst [vmem:[#allocation40_spill] sm:$0xff] %v5970_v33  ;;  %2625 = vrot.lane.b32.xlu1 %v4542_v10, %s4284_s10  ;;  %v1304_v62 = vmul.f32 %v9171_v32, %v1255_v24  ;;  %v1305_v61 = vmul.f32 %v9171_v32, %v1256_v27  ;;  %v1190_v19 = vadd.f32 %v1178_v51, %v1058_v56  ;;  %v4042_v51 = vld [vmem:[%s8505_s5 + $0x10] sm:$0x3]  ;;  %v6015_v27 = vpop.permute.xlu1 %2134  ;;  %v9193_v52 = vld [vmem:[#allocation7_spill] sm:$0xff] }
 0x2d8   : > { %9169 = vst [vmem:[#allocation24_spill] sm:$0xff] %v5976_v44  ;;  %v1191_v53 = vadd.f32 %v1179_v12, %v1059_v25  ;;  %2627 = vrot.lane.b32.xlu0 %v4540_v9, %s4284_s10  ;;  %v1306_v42 = vmul.f32 %v9172_v26, %v1257_v49  ;;  %v1307_v34 = vmul.f32 %v9172_v26, %v1258_v1  ;;  %9177 = vst [vmem:[#allocation42_spill] sm:$0xff] %v6015_v27  ;;  %v9178_v49 = vld [vmem:[#allocation65_spill] sm:$0xff]  ;;  %v9179_v1 = vld [vmem:[#allocation54_spill] sm:$0xff] }
 0x2d9   : > { %v5992_v40 = vsel %vm692_vm2, %v9174_v20, %v9173_v15  ;;  %v5998_v24 = vsel %vm692_vm2, %v9173_v15, %v9174_v20  ;;  %v6002_v12 = vmul.f32 %v5485_v50, %v5964_v36  ;;  %v6006_v25 = vmul.f32 %v5488_v29, %v5952_v55 }
 0x2da   : > { %9175 = vst [vmem:[#allocation41_spill] sm:$0xff] %v5992_v40  ;;  %9176 = vst [vmem:[#allocation58_spill] sm:$0xff] %v5998_v24  ;;  %v1261_v26 = vmul.f32 %v5485_v50, %v5976_v44  ;;  %v1262_v56 = vmul.f32 %v5488_v29, %v5970_v33  ;;  %v6021_v32 = vsel %vm562_vm1, %v9179_v1, %v9178_v49  ;;  %v6031_v33 = vpop.permute.xlu0 %2136  ;;  %v1631_v4 = vunpack.c.l.bf16 %v4042_v51 }
 0x2db   : > { %9180 = vst [vmem:[#allocation27_spill] sm:$0xff] %v6021_v32  ;;  %v6027_v15 = vsel %vm562_vm1, %v9178_v49, %v9179_v1  ;;  %v1504_v20 = vrot.slane %v1499_v63, %v5273_v30  ;;  %v1508_v44 = vrot.slane %v1499_v63, %v5278_v22  ;;  %9182 = vst [vmem:[#allocation67_spill] sm:$0xff] %v6031_v33  ;;  %2629 = vrot.lane.b32.xlu1 %v4550_v13, %s4284_s10  ;;  %v9187_v1 = vld [vmem:[#allocation60_spill] sm:$0xff]  ;;  %v4099_v33 = vld [vmem:[%s8503_s3 + $0x300] sm:$0xff] }
 0x2dc   : > { %9181 = vst [vmem:[#allocation28_spill] sm:$0xff] %v6027_v15  ;;  %v735_v36 = vmul.f32 %v5418_v31, %v5998_v24  ;;  %v736_v55 = vmul.f32 %v5427_v23, %v5992_v40  ;;  %v6043_v49 = vsel %vm824_vm3, %v9184_v45, %v9183_v54  ;;  %v6049_v63 = vsel %vm824_vm3, %v9183_v54, %v9184_v45  ;;  %v9188_v45 = vld [vmem:[#allocation59_spill] sm:$0xff] }
 0x2dd   : > { %9185 = vst [vmem:[#allocation56_spill] sm:$0xff] %v6043_v49  ;;  %9186 = vst [vmem:[#allocation65_spill] sm:$0xff] %v6049_v63  ;;  %2631 = vrot.lane.b32.xlu0 %v4666_v41, %s4284_s10  ;;  %v1310_v24 = vmul.f32 %v9187_v1, %v1261_v26  ;;  %v1311_v60 = vmul.f32 %v9187_v1, %v1262_v56  ;;  %v6055_v40 = vadd.f32 %v1304_v62, %v1184_v2  ;;  %v6072_v2 = vpop.permute.xlu1 %2138 }
 0x2de   : > { %v604_v27 = vmul.f32 %v5399_v37, %v6027_v15  ;;  %v605_v54 = vmul.f32 %v5405_v11, %v6021_v32  ;;  %v6068_v26 = vsel %vm956_vm4, %v9189_v38, %v9188_v45  ;;  %v6070_v56 = vadd.f32 %v1305_v61, %v1185_v16  ;;  %9191 = vst [vmem:[#allocation70_spill] sm:$0xff] %v6072_v2  ;;  %v6082_v32 = vpop.permute.xlu0 %2140 }
 0x2df   : > { %9190 = vst [vmem:[#allocation54_spill] sm:$0xff] %v6068_v26  ;;  %v867_v62 = vmul.f32 %v5430_v46, %v6049_v63  ;;  %v868_v51 = vmul.f32 %v5433_v17, %v6043_v49  ;;  %v6078_v1 = vadd.f32 %v1306_v42, %v1186_v43  ;;  %v6080_v15 = vadd.f32 %v1307_v34, %v1187_v8  ;;  %v4100_v42 = vld [vmem:[%s8503_s3 + $0x308] sm:$0xff]  ;;  %v9202_v49 = vld [vmem:[#allocation74_spill] sm:$0xff] }
 0x2e0   : > { %9192 = vst [vmem:[#allocation57_spill] sm:$0xff] %v6082_v32  ;;  %2633 = vrot.lane.b32.xlu1 %v4685_v48, %s4284_s10  ;;  %v784_v16 = vmul.f32 %v9193_v52, %v735_v36  ;;  %v785_v61 = vmul.f32 %v9193_v52, %v736_v55  ;;  %v6089_v2 = vrot.slane %v1504_v20, %v5273_v30  ;;  %v9198_v52 = vld [vmem:[#allocation5_spill] sm:$0xff]  ;;  %v9203_v32 = vld [vmem:[#allocation64_spill] sm:$0xff]  ;;  %s4285_s10 = smov 119  }
 0x2e1   : > { %v6092_v63 = vrot.slane %v1508_v44, %v5273_v30  ;;  %2691 = vperm.xlu0 %4236, %v4099_v33   ;;  %v6097_v43 = vadd.f32 %v1310_v24, %v1190_v19  ;;  %v6099_v8 = vadd.f32 %v1311_v60, %v1191_v53  ;;  %v999_v36 = vmul.f32 %v5445_v6, %v6068_v26  ;;  %v4101_v44 = vld [vmem:[%s8503_s3 + $0x310] sm:$0xff]  ;;  %v6120_v53 = vpop.permute.xlu1 %2142  ;;  %v9201_v24 = vld [vmem:[#allocation13_spill] sm:$0xff] }
 0x2e2   : > { %9194 = vst [vmem:[#allocation60_spill] sm:$0xff] %v6089_v2  ;;  %v6104_v55 = vrot.slane %v1631_v4, %v5273_v30  ;;  %v652_v33 = vmul.f32 %v9198_v52, %v604_v27  ;;  %v653_v34 = vmul.f32 %v9198_v52, %v605_v54  ;;  %v6115_v60 = vsel %vm956_vm4, %v9188_v45, %v9189_v38  ;;  %v9208_v52 = vld [vmem:[#allocation62_spill] sm:$0xff] }
 0x2e3   : > { %9195 = vst [vmem:[#allocation59_spill] sm:$0xff] %v6092_v63  ;;  %9196 = vst [vmem:[#allocation72_spill] sm:$0xff] %v6097_v43  ;;  %v6118_v19 = vrot.slane %v1631_v4, %v5278_v22  ;;  %v916_v20 = vmul.f32 %v9201_v24, %v867_v62  ;;  %v917_v26 = vmul.f32 %v9201_v24, %v868_v51  ;;  %v6136_v4 = vpop.permute.xlu0 %2200  ;;  %v9207_v62 = vld [vmem:[#allocation73_spill] sm:$0xff] }
 0x2e4   : > { %9197 = vst [vmem:[#allocation7_spill] sm:$0xff] %v6099_v8  ;;  %9199 = vst [vmem:[#allocation5_spill] sm:$0xff] %v6115_v60  ;;  %v6128_v27 = vsel %vm692_vm2, %v9203_v32, %v9202_v49  ;;  %v6134_v38 = vsel %vm692_vm2, %v9202_v49, %v9203_v32  ;;  %2696 = vperm.xlu1 %4237, %v4100_v42   ;;  %v796_v54 = vadd.f32 %v784_v16, %v652_v33  ;;  %v4102_v32 = vld [vmem:[%s8503_s3 + $0x318] sm:$0xff]  ;;  %v9211_v16 = vld [vmem:[#allocation19_spill] sm:$0xff] }
 0x2e5   : > { %9200 = vst [vmem:[#allocation225_spill] sm:$0xff] %v6120_v53  ;;  %9204 = vst [vmem:[#allocation13_spill] sm:$0xff] %v6128_v27  ;;  %v797_v45 = vadd.f32 %v785_v61, %v653_v34  ;;  %v6142_v51 = vsel %vm562_vm1, %v9208_v52, %v9207_v62  ;;  %v6148_v24 = vsel %vm562_vm1, %v9207_v62, %v9208_v52  ;;  %2701 = vperm.xlu0 %4236, %v4101_v44   ;;  %v9212_v42 = vld [vmem:[#allocation76_spill] sm:$0xff]  ;;  %v9213_v33 = vld [vmem:[#allocation66_spill] sm:$0xff] }
 0x2e6   : > { %9205 = vst [vmem:[#allocation74_spill] sm:$0xff] %v6134_v38  ;;  %9206 = vst [vmem:[#allocation64_spill] sm:$0xff] %v6136_v4  ;;  %v1000_v49 = vmul.f32 %v5448_v21, %v6115_v60  ;;  %v1048_v61 = vmul.f32 %v9211_v16, %v999_v36  ;;  %v6160_v34 = vsel %vm824_vm3, %v9213_v33, %v9212_v42  ;;  %v4103_v62 = vld [vmem:[%s8503_s3 + $0x320] sm:$0xff]  ;;  %v9216_v52 = vld [vmem:[#allocation75_spill] sm:$0xff]  ;;  %v6187_v4 = vpop.permute.xlu1 %2205  ;;  %vm2767_vm1 = vcmp.lt.s32.totalorder %v5345_v59, 119 }
 0x2e7   : > { %9209 = vst [vmem:[#allocation73_spill] sm:$0xff] %v6142_v51  ;;  %9210 = vst [vmem:[#allocation62_spill] sm:$0xff] %v6148_v24  ;;  %v6166_v44 = vsel %vm824_vm3, %v9212_v42, %v9213_v33  ;;  %v9217_v60 = vld [vmem:[#allocation61_spill] sm:$0xff]  ;;  %v737_v42 = vmul.f32 %v5418_v31, %v6134_v38  ;;  %v738_v33 = vmul.f32 %v5427_v23, %v6128_v27  ;;  %v6193_v43 = vpop.permute.xlu0 %2210  ;;  %v9220_v23 = vld [vmem:[#allocation78_spill] sm:$0xff] }
 0x2e8   : > { %9214 = vst [vmem:[#allocation19_spill] sm:$0xff] %v6160_v34  ;;  %9215 = vst [vmem:[#allocation76_spill] sm:$0xff] %v6166_v44  ;;  %v6175_v36 = vsel %vm1088_vm5, %v9217_v60, %v9216_v52  ;;  %v6181_v53 = vsel %vm1088_vm5, %v9216_v52, %v9217_v60  ;;  %v928_v63 = vadd.f32 %v916_v20, %v796_v54  ;;  %2706 = vperm.xlu1 %4237, %v4102_v32   ;;  %v9221_v52 = vld [vmem:[#allocation68_spill] sm:$0xff]  ;;  %v9234_v27 = vld [vmem:[#allocation14_spill] sm:$0xff] }
 0x2e9   : > { %9218 = vst [vmem:[#allocation66_spill] sm:$0xff] %v6175_v36  ;;  %9219 = vst [vmem:[#allocation75_spill] sm:$0xff] %v6181_v53  ;;  %v929_v2 = vadd.f32 %v917_v26, %v797_v45  ;;  %v606_v48 = vmul.f32 %v5399_v37, %v6148_v24  ;;  %v607_v8 = vmul.f32 %v5405_v11, %v6142_v51  ;;  %2711 = vperm.xlu0 %4236, %v4103_v62   ;;  %v4104_v37 = vld [vmem:[%s8503_s3 + $0x328] sm:$0xff]  ;;  %v9224_v45 = vld [vmem:[#allocation8_spill] sm:$0xff] }
 0x2ea   : > { %v869_v60 = vmul.f32 %v5430_v46, %v6166_v44  ;;  %v870_v31 = vmul.f32 %v5433_v17, %v6160_v34  ;;  %v6203_v26 = vsel %vm956_vm4, %v9221_v52, %v9220_v23  ;;  %v6209_v11 = vsel %vm956_vm4, %v9220_v23, %v9221_v52  ;;  %v9225_v23 = vld [vmem:[#allocation79_spill] sm:$0xff]  ;;  %v9226_v52 = vld [vmem:[#allocation69_spill] sm:$0xff] }
 0x2eb   : > { %9222 = vst [vmem:[#allocation61_spill] sm:$0xff] %v6203_v26  ;;  %9223 = vst [vmem:[#allocation78_spill] sm:$0xff] %v6209_v11  ;;  %v1049_v46 = vmul.f32 %v9211_v16, %v1000_v49  ;;  %v1060_v17 = vadd.f32 %v1048_v61, %v928_v63  ;;  %v1131_v20 = vmul.f32 %v5451_v58, %v6181_v53  ;;  %v4049_v49 = vld [vmem:[%s8505_s5 + $0x12] sm:$0x3]  ;;  %v6236_v16 = vpop.permute.xlu1 %2215  ;;  %v9229_v61 = vld [vmem:[#allocation77_spill] sm:$0xff]  ;;  %v6254_v53 = vpop.permute.xlu0 %2220 }
 0x2ec   : > { %v1132_v54 = vmul.f32 %v5467_v47, %v6175_v36  ;;  %v786_v32 = vmul.f32 %v9224_v45, %v737_v42  ;;  %v787_v44 = vmul.f32 %v9224_v45, %v738_v33  ;;  %v6225_v62 = vsel %vm1088_vm5, %v9226_v52, %v9225_v23  ;;  %v9230_v42 = vld [vmem:[#allocation63_spill] sm:$0xff]  ;;  %2716 = vperm.xlu1 %4237, %v4104_v37   ;;  %v9233_v36 = vld [vmem:[#allocation6_spill] sm:$0xff] }
 0x2ed   : > { %9227 = vst [vmem:[#allocation68_spill] sm:$0xff] %v6225_v62  ;;  %v6231_v63 = vsel %vm1088_vm5, %v9225_v23, %v9226_v52  ;;  %v6242_v33 = vsel %vm1220_vm6, %v9230_v42, %v9229_v61  ;;  %v6248_v45 = vsel %vm1220_vm6, %v9229_v61, %v9230_v42  ;;  %v1001_v23 = vmul.f32 %v5445_v6, %v6209_v11  ;;  %v9235_v61 = vld [vmem:[#allocation25_spill] sm:$0xff]  ;;  %v9279_v11 = vld [vmem:[#allocation100_spill] sm:$0xff] }
 0x2ee   : > { %9228 = vst [vmem:[#allocation8_spill] sm:$0xff] %v6231_v63  ;;  %9231 = vst [vmem:[#allocation79_spill] sm:$0xff] %v6242_v33  ;;  %v1002_v52 = vmul.f32 %v5448_v21, %v6203_v26  ;;  %v654_v34 = vmul.f32 %v9233_v36, %v606_v48  ;;  %v655_v38 = vmul.f32 %v9233_v36, %v607_v8  ;;  %2743 = vrot.lane.b32.xlu0 %v9124_v7, %s4285_s10 }
 0x2ef   : > { %9232 = vst [vmem:[#allocation69_spill] sm:$0xff] %v6248_v45  ;;  %v918_v24 = vmul.f32 %v9234_v27, %v869_v60  ;;  %v919_v51 = vmul.f32 %v9234_v27, %v870_v31  ;;  %v1061_v6 = vadd.f32 %v1049_v46, %v929_v2  ;;  %v1133_v21 = vmul.f32 %v5451_v58, %v6231_v63  ;;  %v6269_v31 = vpop.permute.xlu1 %2225  ;;  %v9236_v2 = vld [vmem:[#allocation20_spill] sm:$0xff] }
 0x2f0   : > { %v1134_v37 = vmul.f32 %v5467_v47, %v6225_v62  ;;  %v1763_v48 = vunpack.c.l.bf16 %v4049_v49  ;;  %v1180_v8 = vmul.f32 %v9235_v61, %v1131_v20  ;;  %v1181_v36 = vmul.f32 %v9235_v61, %v1132_v54  ;;  %v6277_v47 = vpop.permute.xlu0 %2295  ;;  %2745 = vrot.lane.b32.xlu1 %v9137_v3, %s4285_s10  ;;  %v9238_v54 = vld [vmem:[#allocation71_spill] sm:$0xff] }
 0x2f1   : > { %v798_v60 = vadd.f32 %v786_v32, %v654_v34  ;;  %v799_v27 = vadd.f32 %v787_v44, %v655_v38  ;;  %v1263_v42 = vmul.f32 %v5485_v50, %v6248_v45  ;;  %v1264_v7 = vmul.f32 %v5488_v29, %v6242_v33  ;;  %v9237_v38 = vld [vmem:[#allocation80_spill] sm:$0xff]  ;;  %v9239_v32 = vld [vmem:[#allocation81_spill] sm:$0xff] }
 0x2f2   : > { %v1050_v58 = vmul.f32 %v9236_v2, %v1001_v23  ;;  %v1051_v46 = vmul.f32 %v9236_v2, %v1002_v52  ;;  %v1308_v44 = vmul.f32 %v9237_v38, %v6002_v12  ;;  %v6287_v49 = vsel %vm1220_vm6, %v9239_v32, %v9238_v54  ;;  %2747 = vrot.lane.b32.xlu0 %v9139_v18, %s4285_s10  ;;  %v9241_v23 = vld [vmem:[#allocation26_spill] sm:$0xff] }
 0x2f3   : > { %v930_v20 = vadd.f32 %v918_v24, %v798_v60  ;;  %v931_v34 = vadd.f32 %v919_v51, %v799_v27  ;;  %9240 = vst [vmem:[#allocation77_spill] sm:$0xff] %v6287_v49  ;;  %v1182_v52 = vmul.f32 %v9241_v23, %v1133_v21  ;;  %v1183_v61 = vmul.f32 %v9241_v23, %v1134_v37  ;;  %v9243_v24 = vld [vmem:[#allocation82_spill] sm:$0xff]  ;;  %v6305_v21 = vpop.permute.xlu1 %2300 }
 0x2f4   : > { %v1309_v3 = vmul.f32 %v9237_v38, %v6006_v25  ;;  %v1768_v51 = vrot.slane %v1763_v48, %v5273_v30  ;;  %v6300_v12 = vsel %vm1220_vm6, %v9238_v54, %v9239_v32  ;;  %v1312_v60 = vmul.f32 %v9243_v24, %v1263_v42  ;;  %9244 = vst [vmem:[#allocation6_spill] sm:$0xff] %v6305_v21  ;;  %v6313_v23 = vpop.permute.xlu0 %2305  ;;  %v9253_v54 = vld [vmem:[#allocation91_spill] sm:$0xff] }
 0x2f5   : > { %9242 = vst [vmem:[#allocation63_spill] sm:$0xff] %v6300_v12  ;;  %v1313_v27 = vmul.f32 %v9243_v24, %v1264_v7  ;;  %v1772_v18 = vrot.slane %v1763_v48, %v5278_v22  ;;  %v1062_v37 = vadd.f32 %v1050_v58, %v930_v20  ;;  %v1063_v2 = vadd.f32 %v1051_v46, %v931_v34  ;;  %v9257_v24 = vld [vmem:[#allocation86_spill] sm:$0xff] }
 0x2f6   : > { %v1265_v25 = vmul.f32 %v5485_v50, %v6287_v49  ;;  %v6311_v38 = vrot.slane %v6104_v55, %v5273_v30  ;;  %9245 = vst [vmem:[#allocation14_spill] sm:$0xff] %v6313_v23  ;;  %2749 = vrot.lane.b32.xlu1 %v4466_v57, %s4285_s10  ;;  %v6318_v42 = vadd.f32 %v1308_v44, %v5954_v0  ;;  %v9252_v44 = vld [vmem:[#allocation85_spill] sm:$0xff] }
 0x2f7   : > { %v1192_v48 = vadd.f32 %v1180_v8, %v1060_v17  ;;  %v1193_v7 = vadd.f32 %v1181_v36, %v1061_v6  ;;  %v6322_v58 = vrot.slane %v6118_v19, %v5273_v30  ;;  %2751 = vrot.lane.b32.xlu0 %v4619_v28, %s4285_s10  ;;  %v6327_v50 = vadd.f32 %v1309_v3, %v5956_v39  ;;  %v6341_v6 = vpop.permute.xlu1 %2310  ;;  %v9247_v28 = vld [vmem:[#allocation83_spill] sm:$0xff]  ;;  %v9248_v8 = vld [vmem:[#allocation90_spill] sm:$0xff]  ;;  %v9249_v36 = vld [vmem:[#allocation84_spill] sm:$0xff] }
 0x2f8   : > { %v1266_v55 = vmul.f32 %v5488_v29, %v6300_v12  ;;  %v1194_v46 = vadd.f32 %v1182_v52, %v1062_v37  ;;  %v1195_v57 = vadd.f32 %v1183_v61, %v1063_v2  ;;  %v6336_v17 = vrot.slane %v1768_v51, %v5273_v30  ;;  %9246 = vst [vmem:[#allocation25_spill] sm:$0xff] %v6341_v6  ;;  %v4056_v52 = vld [vmem:[%s8505_s5 + $0x14] sm:$0x3]  ;;  %v6365_v61 = vpop.permute.xlu0 %2315  ;;  %v9276_v12 = vld [vmem:[#allocation98_spill] sm:$0xff] }
 0x2f9   : > { %v6331_v20 = vadd.f32 %v1312_v60, %v1192_v48  ;;  %v6333_v0 = vadd.f32 %v1313_v27, %v1193_v7  ;;  %v6339_v19 = vrot.slane %v1772_v18, %v5273_v30  ;;  %v1314_v39 = vmul.f32 %v9247_v28, %v1265_v25  ;;  %v9256_v51 = vld [vmem:[#allocation92_spill] sm:$0xff]  ;;  %v9260_v18 = vld [vmem:[#allocation87_spill] sm:$0xff]  ;;  %v9264_v48 = vld [vmem:[#allocation94_spill] sm:$0xff] }
 0x2fa   : > { %v6348_v29 = vsel %vm1352_vm7, %v9249_v36, %v9248_v8  ;;  %v6354_v34 = vsel %vm1352_vm7, %v9248_v8, %v9249_v36  ;;  %v6360_v32 = vsel %vm1352_vm7, %v9253_v54, %v9252_v44  ;;  %2753 = vrot.lane.b32.xlu1 %v4637_v35, %s4285_s10  ;;  %v6373_v3 = vsel %vm1352_vm7, %v9252_v44, %v9253_v54  ;;  %v9261_v35 = vld [vmem:[#allocation93_spill] sm:$0xff]  ;;  %v9265_v7 = vld [vmem:[#allocation88_spill] sm:$0xff] }
 0x2fb   : > { %9250 = vst [vmem:[#allocation20_spill] sm:$0xff] %v6348_v29  ;;  %9251 = vst [vmem:[#allocation80_spill] sm:$0xff] %v6354_v34  ;;  %v6379_v60 = vsel %vm1352_vm7, %v9257_v24, %v9256_v51  ;;  %v6385_v27 = vsel %vm1352_vm7, %v9256_v51, %v9257_v24  ;;  %v6391_v37 = vsel %vm1352_vm7, %v9261_v35, %v9260_v18  ;;  %2755 = vrot.lane.b32.xlu0 %v4530_v5, %s4285_s10  ;;  %v6421_v51 = vpop.permute.xlu1 %2320 }
 0x2fc   : > { %9254 = vst [vmem:[#allocation71_spill] sm:$0xff] %v6360_v32  ;;  %9255 = vst [vmem:[#allocation81_spill] sm:$0xff] %v6373_v3  ;;  %v1315_v2 = vmul.f32 %v9247_v28, %v1266_v55  ;;  %v6400_v25 = vsel %vm1352_vm7, %v9260_v18, %v9261_v35  ;;  %v6406_v8 = vsel %vm1352_vm7, %v9265_v7, %v9264_v48  ;;  %v9268_v55 = vld [vmem:[#allocation204_spill] sm:$0xff]  ;;  %v1895_v54 = vunpack.c.l.bf16 %v4056_v52 }
 0x2fd   : > { %9258 = vst [vmem:[#allocation26_spill] sm:$0xff] %v6379_v60  ;;  %9259 = vst [vmem:[#allocation82_spill] sm:$0xff] %v6385_v27  ;;  %v6412_v36 = vsel %vm1352_vm7, %v9264_v48, %v9265_v7  ;;  %v1387_v5 = vmul.f32 %v5509_v14, %v6354_v34  ;;  %v1388_v28 = vmul.f32 %v9268_v55, %v6348_v29  ;;  %v6431_v7 = vpop.permute.xlu0 %2347  ;;  %v9271_v34 = vld [vmem:[#allocation89_spill] sm:$0xff] }
 0x2fe   : > { %9262 = vst [vmem:[#allocation83_spill] sm:$0xff] %v6391_v37  ;;  %9263 = vst [vmem:[#allocation90_spill] sm:$0xff] %v6400_v25  ;;  %v1389_v44 = vmul.f32 %v5509_v14, %v6360_v32  ;;  %v1390_v24 = vmul.f32 %v9268_v55, %v6373_v3  ;;  %v1391_v18 = vmul.f32 %v5509_v14, %v6385_v27  ;;  %2757 = vrot.lane.b32.xlu1 %v4542_v10, %s4285_s10  ;;  %v9270_v3 = vld [vmem:[#allocation95_spill] sm:$0xff] }
 0x2ff   : > { %9266 = vst [vmem:[#allocation84_spill] sm:$0xff] %v6406_v8  ;;  %9267 = vst [vmem:[#allocation85_spill] sm:$0xff] %v6412_v36  ;;  %v1392_v35 = vmul.f32 %v9268_v55, %v6379_v60  ;;  %v1393_v48 = vmul.f32 %v5509_v14, %v6391_v37  ;;  %v1394_v52 = vmul.f32 %v9268_v55, %v6400_v25  ;;  %2759 = vrot.lane.b32.xlu0 %v4540_v9, %s4285_s10  ;;  %v9274_v37 = vld [vmem:[#allocation96_spill] sm:$0xff]  ;;  %v6462_v45 = vpop.permute.xlu1 %2349 }
 0x300   : > { %9269 = vst [vmem:[#allocation91_spill] sm:$0xff] %v6431_v7  ;;  %v1395_v32 = vmul.f32 %v5509_v14, %v6412_v36  ;;  %v1396_v27 = vmul.f32 %v9268_v55, %v6406_v8  ;;  %v6445_v60 = vsel %vm1352_vm7, %v9271_v34, %v9270_v3  ;;  %v6453_v10 = vsel %vm1352_vm7, %v9270_v3, %v9271_v34  ;;  %v9275_v8 = vld [vmem:[#allocation97_spill] sm:$0xff]  ;;  %v9278_v34 = vld [vmem:[#allocation99_spill] sm:$0xff] }
 0x301   : > { %9272 = vst [vmem:[#allocation92_spill] sm:$0xff] %v6445_v60  ;;  %9273 = vst [vmem:[#allocation86_spill] sm:$0xff] %v6453_v10  ;;  %v1436_v36 = vmul.f32 %v9274_v37, %v1387_v5  ;;  %v1437_v25 = vmul.f32 %v9274_v37, %v1388_v28  ;;  %v1438_v29 = vmul.f32 %v9275_v8, %v1389_v44  ;;  %v6468_v28 = vpop.permute.xlu0 %2351 }
 0x302   : > { %v1439_v49 = vmul.f32 %v9275_v8, %v1390_v24  ;;  %v1440_v63 = vmul.f32 %v9276_v12, %v1391_v18  ;;  %v1900_v62 = vrot.slane %v1895_v54, %v5273_v30  ;;  %v1904_v9 = vrot.slane %v1895_v54, %v5278_v22  ;;  %9277 = vst [vmem:[#allocation87_spill] sm:$0xff] %v6462_v45  ;;  %v9290_v18 = vld [vmem:[#allocation109_spill] sm:$0xff] }
 0x303   : > { %v1441_v33 = vmul.f32 %v9276_v12, %v1392_v35  ;;  %v1442_v3 = vmul.f32 %v9278_v34, %v1393_v48  ;;  %v1443_v5 = vmul.f32 %v9278_v34, %v1394_v52  ;;  %v1444_v37 = vmul.f32 %v9279_v11, %v1395_v32  ;;  %9280 = vst [vmem:[#allocation93_spill] sm:$0xff] %v6468_v28  ;;  %v9291_v35 = vld [vmem:[#allocation103_spill] sm:$0xff]  ;;  %v9295_v34 = vld [vmem:[#allocation104_spill] sm:$0xff] }
 0x304   : > { %2761 = vrot.lane.b32.xlu1 %v4550_v13, %s4285_s10  ;;  %v6472_v8 = vadd.f32 %v1314_v39, %v1194_v46  ;;  %v6474_v44 = vadd.f32 %v1315_v2, %v1195_v57  ;;  %v1397_v54 = vmul.f32 %v5509_v14, %v6453_v10  ;;  %v1445_v12 = vmul.f32 %v9279_v11, %v1396_v27  ;;  %v4106_v14 = vld [vmem:[%s8503_s3 + $0x330] sm:$0xff]  ;;  %v9283_v27 = vld [vmem:[#allocation7_spill] sm:$0xff]  ;;  %v9285_v2 = vld [vmem:[#allocation101_spill] sm:$0xff] }
 0x305   : > { %2763 = vrot.lane.b32.xlu0 %v4666_v41, %s4285_s10  ;;  %v1398_v32 = vmul.f32 %v9268_v55, %v6445_v60  ;;  %v6484_v24 = vadd.f32 %v1436_v36, %v6055_v40  ;;  %v6487_v13 = vadd.f32 %v1437_v25, %v6070_v56  ;;  %v6490_v46 = vadd.f32 %v1438_v29, %v6078_v1  ;;  %v6507_v56 = vpop.permute.xlu1 %2353  ;;  %v9282_v39 = vld [vmem:[#allocation72_spill] sm:$0xff]  ;;  %v9287_v25 = vld [vmem:[#allocation102_spill] sm:$0xff] }
 0x306   : > { %v6496_v11 = vadd.f32 %v1439_v49, %v6080_v15  ;;  %v6499_v41 = vadd.f32 %v1440_v63, %v6318_v42  ;;  %v6502_v57 = vrot.slane %v1900_v62, %v5273_v30  ;;  %v6505_v40 = vrot.slane %v1904_v9, %v5273_v30  ;;  %9281 = vst [vmem:[#allocation94_spill] sm:$0xff] %v6507_v56  ;;  %v6521_v49 = vpop.permute.xlu0 %2355  ;;  %v9284_v62 = vld [vmem:[#allocation29_spill] sm:$0xff]  ;;  %v4063_v55 = vld [vmem:[%s8505_s5 + $0x16] sm:$0x3]  ;;  %v9294_v9 = vld [vmem:[#allocation110_spill] sm:$0xff] }
 0x307   : > { %v6510_v1 = vadd.f32 %v1441_v33, %v6327_v50  ;;  %v6513_v29 = vadd.f32 %v1442_v3, %v9282_v39  ;;  %v6516_v15 = vadd.f32 %v1443_v5, %v9283_v27  ;;  %v6519_v63 = vadd.f32 %v1444_v37, %v6331_v20  ;;  %v9286_v50 = vld [vmem:[#allocation108_spill] sm:$0xff]  ;;  %v4108_v37 = vld [vmem:[%s8503_s3 + $0x340] sm:$0xff]  ;;  %v9316_v56 = vld [vmem:[#allocation115_spill] sm:$0xff] }
 0x308   : > { %2765 = vrot.lane.b32.xlu1 %v9284_v62, %s4285_s10  ;;  %v6526_v42 = vadd.f32 %v1445_v12, %v6333_v0  ;;  %v1446_v33 = vmul.f32 %v9285_v2, %v1397_v54  ;;  %v6533_v36 = vsel %vm1484_vm8, %v9287_v25, %v9286_v50  ;;  %v6539_v20 = vsel %vm1484_vm8, %v9286_v50, %v9287_v25  ;;  %v4107_v0 = vld [vmem:[%s8503_s3 + $0x338] sm:$0xff]  ;;  %v9298_v54 = vld [vmem:[#allocation111_spill] sm:$0xff]  ;;  %v9302_v27 = vld [vmem:[#allocation112_spill] sm:$0xff] }
 0x309   : > { %9288 = vst [vmem:[#allocation88_spill] sm:$0xff] %v6533_v36  ;;  %9289 = vst [vmem:[#allocation204_spill] sm:$0xff] %v6539_v20  ;;  %2823 = vperm.xlu0 %4236, %v4106_v14   ;;  %v6551_v48 = vsel %vm1484_vm8, %v9291_v35, %v9290_v18  ;;  %v6557_v52 = vsel %vm1484_vm8, %v9290_v18, %v9291_v35  ;;  %v6563_v3 = vsel %vm1484_vm8, %v9295_v34, %v9294_v9  ;;  %v9299_v12 = vld [vmem:[#allocation105_spill] sm:$0xff]  ;;  %v9303_v62 = vld [vmem:[#allocation106_spill] sm:$0xff]  ;;  %v6599_v18 = vpop.permute.xlu1 %2357 }
 0x30a   : > { %9292 = vst [vmem:[#allocation95_spill] sm:$0xff] %v6551_v48  ;;  %9293 = vst [vmem:[#allocation89_spill] sm:$0xff] %v6557_v52  ;;  %v6569_v5 = vsel %vm1484_vm8, %v9294_v9, %v9295_v34  ;;  %v6578_v14 = vsel %vm1484_vm8, %v9299_v12, %v9298_v54  ;;  %v6584_v39 = vsel %vm1484_vm8, %v9298_v54, %v9299_v12  ;;  %v9307_v9 = vld [vmem:[#allocation60_spill] sm:$0xff]  ;;  %v9308_v54 = vld [vmem:[#allocation59_spill] sm:$0xff]  ;;  %v2027_v10 = vunpack.c.l.bf16 %v4063_v55  ;;  %v6606_v60 = vpop.permute.xlu0 %2359 }
 0x30b   : > { %9296 = vst [vmem:[#allocation96_spill] sm:$0xff] %v6563_v3  ;;  %9297 = vst [vmem:[#allocation97_spill] sm:$0xff] %v6569_v5  ;;  %v6590_v50 = vsel %vm1484_vm8, %v9303_v62, %v9302_v27  ;;  %v6596_v25 = vsel %vm1484_vm8, %v9302_v27, %v9303_v62  ;;  %v1447_v35 = vmul.f32 %v9285_v2, %v1398_v32  ;;  %v4109_v2 = vld [vmem:[%s8503_s3 + $0x348] sm:$0xff] }
 0x30c   : > { %9300 = vst [vmem:[#allocation98_spill] sm:$0xff] %v6578_v14  ;;  %9301 = vst [vmem:[#allocation99_spill] sm:$0xff] %v6584_v39  ;;  %v1519_v34 = vmul.f32 %v9307_v9, %v6539_v20  ;;  %v1520_v12 = vmul.f32 %v9308_v54, %v6533_v36  ;;  %2828 = vperm.xlu1 %4237, %v4107_v0   ;;  %v1521_v27 = vmul.f32 %v9307_v9, %v6557_v52 }
 0x30d   : > { %9304 = vst [vmem:[#allocation100_spill] sm:$0xff] %v6590_v50  ;;  %9305 = vst [vmem:[#allocation72_spill] sm:$0xff] %v6596_v25  ;;  %v1522_v62 = vmul.f32 %v9308_v54, %v6551_v48  ;;  %v1523_v26 = vmul.f32 %v9307_v9, %v6569_v5  ;;  %v1524_v32 = vmul.f32 %v9308_v54, %v6563_v3  ;;  %2833 = vperm.xlu0 %4236, %v4108_v37   ;;  %v4110_v37 = vld [vmem:[%s8503_s3 + $0x350] sm:$0xff]  ;;  %v9310_v3 = vld [vmem:[#allocation113_spill] sm:$0xff]  ;;  %v6644_v36 = vpop.permute.xlu1 %2361 }
 0x30e   : > { %9306 = vst [vmem:[#allocation7_spill] sm:$0xff] %v6599_v18  ;;  %9309 = vst [vmem:[#allocation29_spill] sm:$0xff] %v6606_v60  ;;  %v1525_v55 = vmul.f32 %v9307_v9, %v6584_v39  ;;  %v1526_v0 = vmul.f32 %v9308_v54, %v6578_v14  ;;  %v1527_v52 = vmul.f32 %v9307_v9, %v6596_v25  ;;  %v9311_v48 = vld [vmem:[#allocation107_spill] sm:$0xff]  ;;  %v9314_v25 = vld [vmem:[#allocation114_spill] sm:$0xff]  ;;  %v6650_v7 = vpop.permute.xlu0 %2363 }
 0x30f   : > { %v1528_v5 = vmul.f32 %v9308_v54, %v6590_v50  ;;  %v6634_v20 = vsel %vm1484_vm8, %v9311_v48, %v9310_v3  ;;  %v6640_v39 = vsel %vm1484_vm8, %v9310_v3, %v9311_v48  ;;  %v1568_v14 = vmul.f32 %v9314_v25, %v1519_v34  ;;  %9315 = vst [vmem:[#allocation102_spill] sm:$0xff] %v6644_v36  ;;  %v9318_v60 = vld [vmem:[#allocation116_spill] sm:$0xff]  ;;  %v9319_v34 = vld [vmem:[#allocation117_spill] sm:$0xff] }
 0x310   : > { %9312 = vst [vmem:[#allocation101_spill] sm:$0xff] %v6634_v20  ;;  %9313 = vst [vmem:[#allocation108_spill] sm:$0xff] %v6640_v39  ;;  %v1569_v50 = vmul.f32 %v9314_v25, %v1520_v12  ;;  %v1570_v6 = vmul.f32 %v9316_v56, %v1521_v27  ;;  %v1571_v28 = vmul.f32 %v9316_v56, %v1522_v62  ;;  %2838 = vperm.xlu1 %4237, %v4109_v2   ;;  %v4111_v56 = vld [vmem:[%s8503_s3 + $0x358] sm:$0xff]  ;;  %v9320_v27 = vld [vmem:[#allocation118_spill] sm:$0xff] }
 0x311   : > { %v2032_v23 = vrot.slane %v2027_v10, %v5273_v30  ;;  %v2036_v45 = vrot.slane %v2027_v10, %v5278_v22  ;;  %9317 = vst [vmem:[#allocation109_spill] sm:$0xff] %v6650_v7  ;;  %v1572_v48 = vmul.f32 %v9318_v60, %v1523_v26  ;;  %v1573_v3 = vmul.f32 %v9318_v60, %v1524_v32  ;;  %v4113_v60 = vld [vmem:[%s8503_s3 + $0x360] sm:$0xff] }
 0x312   : > { %v1574_v21 = vmul.f32 %v9319_v34, %v1525_v55  ;;  %v1575_v25 = vmul.f32 %v9319_v34, %v1526_v0  ;;  %2843 = vperm.xlu0 %4236, %v4110_v37   ;;  %v6660_v12 = vadd.f32 %v1446_v33, %v6472_v8  ;;  %v6663_v10 = vadd.f32 %v1447_v35, %v6474_v44  ;;  %v6680_v33 = vpop.permute.xlu1 %2365  ;;  %v9330_v55 = vld [vmem:[#allocation128_spill] sm:$0xff]  ;;  %v9331_v0 = vld [vmem:[#allocation122_spill] sm:$0xff]  ;;  %v9335_v34 = vld [vmem:[#allocation119_spill] sm:$0xff] }
 0x313   : > { %v1576_v62 = vmul.f32 %v9320_v27, %v1527_v52  ;;  %v1577_v26 = vmul.f32 %v9320_v27, %v1528_v5  ;;  %v1529_v32 = vmul.f32 %v9307_v9, %v6640_v39  ;;  %v1530_v2 = vmul.f32 %v9308_v54, %v6634_v20  ;;  %9321 = vst [vmem:[#allocation103_spill] sm:$0xff] %v6680_v33  ;;  %v6694_v54 = vpop.permute.xlu0 %2367  ;;  %v9337_v27 = vld [vmem:[#allocation123_spill] sm:$0xff] }
 0x314   : > { %v6675_v8 = vadd.f32 %v1568_v14, %v6484_v24  ;;  %v6678_v44 = vadd.f32 %v1569_v50, %v6487_v13  ;;  %v6683_v52 = vadd.f32 %v1570_v6, %v6490_v46  ;;  %v6686_v5 = vadd.f32 %v1571_v28, %v6496_v11  ;;  %2848 = vperm.xlu1 %4237, %v4111_v56   ;;  %v9322_v11 = vld [vmem:[#allocation126_spill] sm:$0xff]  ;;  %v9336_v56 = vld [vmem:[#allocation129_spill] sm:$0xff] }
 0x315   : > { %v6689_v35 = vrot.slane %v2032_v23, %v5273_v30  ;;  %v6692_v9 = vrot.slane %v2036_v45, %v5273_v30  ;;  %v6697_v24 = vadd.f32 %v1572_v48, %v6499_v41  ;;  %v6700_v13 = vadd.f32 %v1573_v3, %v6510_v1  ;;  %v4114_v45 = vld [vmem:[%s8503_s3 + $0x368] sm:$0xff]  ;;  %v9323_v41 = vld [vmem:[#allocation120_spill] sm:$0xff] }
 0x316   : > { %v6703_v6 = vadd.f32 %v1574_v21, %v6513_v29  ;;  %v6706_v28 = vadd.f32 %v1575_v25, %v6516_v15  ;;  %2918 = vperm.xlu0 %4236, %v4113_v60   ;;  %v6712_v23 = vadd.f32 %v1576_v62, %v6519_v63  ;;  %v6715_v46 = vadd.f32 %v1577_v26, %v6526_v42  ;;  %v4070_v29 = vld [vmem:[%s8505_s5 + $0x18] sm:$0x3]  ;;  %v4115_v15 = vld [vmem:[%s8503_s3 + $0x370] sm:$0xff]  ;;  %v9326_v63 = vld [vmem:[#allocation127_spill] sm:$0xff]  ;;  %v6759_v3 = vpop.permute.xlu1 %2369 }
 0x317   : > { %v6721_v21 = vsel %vm1616_vm9, %v9323_v41, %v9322_v11  ;;  %v6727_v1 = vsel %vm1616_vm9, %v9322_v11, %v9323_v41  ;;  %v9327_v42 = vld [vmem:[#allocation121_spill] sm:$0xff]  ;;  %v6751_v37 = vsel %vm1616_vm9, %v9331_v0, %v9330_v55  ;;  %v6757_v48 = vsel %vm1616_vm9, %v9330_v55, %v9331_v0  ;;  %9334 = vst [vmem:[#allocation60_spill] sm:$0xff] %v6759_v3  ;;  %v9340_v60 = vld [vmem:[#allocation124_spill] sm:$0xff]  ;;  %v9341_v11 = vld [vmem:[#allocation130_spill] sm:$0xff] }
 0x318   : > { %9324 = vst [vmem:[#allocation110_spill] sm:$0xff] %v6721_v21  ;;  %9325 = vst [vmem:[#allocation104_spill] sm:$0xff] %v6727_v1  ;;  %v6739_v14 = vsel %vm1616_vm9, %v9327_v42, %v9326_v63  ;;  %v6745_v50 = vsel %vm1616_vm9, %v9326_v63, %v9327_v42  ;;  %v1578_v25 = vmul.f32 %v9335_v34, %v1529_v32  ;;  %v6781_v32 = vpop.permute.xlu0 %2427  ;;  %2923 = vperm.xlu1 %4237, %v4114_v45  }
 0x319   : > { %9328 = vst [vmem:[#allocation111_spill] sm:$0xff] %v6739_v14  ;;  %9329 = vst [vmem:[#allocation105_spill] sm:$0xff] %v6745_v50  ;;  %v6766_v62 = vsel %vm1616_vm9, %v9337_v27, %v9336_v56  ;;  %v6772_v26 = vsel %vm1616_vm9, %v9336_v56, %v9337_v27  ;;  %v6778_v41 = vsel %vm1616_vm9, %v9341_v11, %v9340_v60  ;;  %v2159_v0 = vunpack.c.l.bf16 %v4070_v29  ;;  %v4116_v56 = vld [vmem:[%s8503_s3 + $0x378] sm:$0xff]  ;;  %v4117_v29 = vld [vmem:[%s8503_s3 + $0x380] sm:$0xff] }
 0x31a   : > { %9332 = vst [vmem:[#allocation112_spill] sm:$0xff] %v6751_v37  ;;  %9333 = vst [vmem:[#allocation106_spill] sm:$0xff] %v6757_v48  ;;  %v1579_v63 = vmul.f32 %v9335_v34, %v1530_v2  ;;  %v1651_v42 = vmul.f32 %v6311_v38, %v6727_v1  ;;  %v1652_v55 = vmul.f32 %v6322_v58, %v6721_v21  ;;  %2928 = vperm.xlu0 %4236, %v4115_v15   ;;  %v9347_v21 = vld [vmem:[#allocation125_spill] sm:$0xff] }
 0x31b   : > { %9338 = vst [vmem:[#allocation59_spill] sm:$0xff] %v6766_v62  ;;  %9339 = vst [vmem:[#allocation113_spill] sm:$0xff] %v6772_v26  ;;  %v1653_v27 = vmul.f32 %v6311_v38, %v6745_v50  ;;  %v1654_v45 = vmul.f32 %v6322_v58, %v6739_v14  ;;  %v1655_v2 = vmul.f32 %v6311_v38, %v6757_v48  ;;  %v9346_v14 = vld [vmem:[#allocation131_spill] sm:$0xff] }
 0x31c   : > { %9342 = vst [vmem:[#allocation107_spill] sm:$0xff] %v6778_v41  ;;  %9343 = vst [vmem:[#allocation114_spill] sm:$0xff] %v6781_v32  ;;  %v1656_v34 = vmul.f32 %v6322_v58, %v6751_v37  ;;  %v1657_v15 = vmul.f32 %v6311_v38, %v6772_v26  ;;  %v1658_v1 = vmul.f32 %v6322_v58, %v6766_v62  ;;  %v6814_v37 = vpop.permute.xlu1 %2432  ;;  %v9350_v62 = vld [vmem:[#allocation132_spill] sm:$0xff]  ;;  %v6830_v20 = vpop.permute.xlu0 %2437  ;;  %2933 = vperm.xlu1 %4237, %v4116_v56   ;;  %v9354_v56 = vld [vmem:[#allocation135_spill] sm:$0xff] }
 0x31d   : > { %v6810_v50 = vsel %vm1616_vm9, %v9340_v60, %v9341_v11  ;;  %v1659_v48 = vmul.f32 %v6311_v38, %v6778_v41  ;;  %9345 = vst [vmem:[#allocation116_spill] sm:$0xff] %v6814_v37  ;;  %v6820_v39 = vsel %vm1616_vm9, %v9347_v21, %v9346_v14  ;;  %v6826_v26 = vsel %vm1616_vm9, %v9346_v14, %v9347_v21  ;;  %v9352_v41 = vld [vmem:[#allocation133_spill] sm:$0xff]  ;;  %v4118_v21 = vld [vmem:[%s8503_s3 + $0x388] sm:$0xff] }
 0x31e   : > { %9344 = vst [vmem:[#allocation115_spill] sm:$0xff] %v6810_v50  ;;  %9348 = vst [vmem:[#allocation117_spill] sm:$0xff] %v6820_v39  ;;  %v1700_v60 = vmul.f32 %v9350_v62, %v1651_v42  ;;  %v1701_v11 = vmul.f32 %v9350_v62, %v1652_v55  ;;  %v1702_v37 = vmul.f32 %v9352_v41, %v1653_v27  ;;  %2938 = vperm.xlu0 %4236, %v4117_v29   ;;  %v9353_v62 = vld [vmem:[#allocation134_spill] sm:$0xff] }
 0x31f   : > { %9349 = vst [vmem:[#allocation118_spill] sm:$0xff] %v6826_v26  ;;  %9351 = vst [vmem:[#allocation126_spill] sm:$0xff] %v6830_v20  ;;  %v1703_v33 = vmul.f32 %v9352_v41, %v1654_v45  ;;  %v2164_v32 = vrot.slane %v2159_v0, %v5273_v30  ;;  %v2168_v7 = vrot.slane %v2159_v0, %v5278_v22  ;;  %v4120_v41 = vld [vmem:[%s8503_s3 + $0x390] sm:$0xff] }
 0x320   : > { %v6840_v14 = vadd.f32 %v1578_v25, %v6660_v12  ;;  %v1704_v42 = vmul.f32 %v9353_v62, %v1655_v2  ;;  %v1705_v55 = vmul.f32 %v9353_v62, %v1656_v34  ;;  %v1706_v27 = vmul.f32 %v9354_v56, %v1657_v15  ;;  %v9355_v12 = vld [vmem:[#allocation136_spill] sm:$0xff]  ;;  %v6855_v20 = vpop.permute.xlu1 %2442  ;;  %2943 = vperm.xlu1 %4237, %v4118_v21  }
 0x321   : > { %v6849_v0 = vadd.f32 %v1579_v63, %v6663_v10  ;;  %v1660_v45 = vmul.f32 %v6322_v58, %v6810_v50  ;;  %v1707_v29 = vmul.f32 %v9354_v56, %v1658_v1  ;;  %v1708_v25 = vmul.f32 %v9355_v12, %v1659_v48  ;;  %9356 = vst [vmem:[#allocation120_spill] sm:$0xff] %v6855_v20  ;;  %v6867_v63 = vpop.permute.xlu0 %2447  ;;  %v9364_v56 = vld [vmem:[#allocation140_spill] sm:$0xff] }
 0x322   : > { %v1661_v2 = vmul.f32 %v6311_v38, %v6826_v26  ;;  %v1662_v34 = vmul.f32 %v6322_v58, %v6820_v39  ;;  %v6862_v15 = vadd.f32 %v1700_v60, %v6675_v8  ;;  %v6865_v10 = vadd.f32 %v1701_v11, %v6678_v44  ;;  %9357 = vst [vmem:[#allocation127_spill] sm:$0xff] %v6867_v63  ;;  %v4121_v8 = vld [vmem:[%s8503_s3 + $0x398] sm:$0xff]  ;;  %v9359_v11 = vld [vmem:[#allocation138_spill] sm:$0xff] }
 0x323   : > { %v6870_v1 = vadd.f32 %v1702_v37, %v6683_v52  ;;  %v6873_v48 = vadd.f32 %v1703_v33, %v6686_v5  ;;  %v6876_v38 = vrot.slane %v2164_v32, %v5273_v30  ;;  %v6879_v58 = vrot.slane %v2168_v7, %v5273_v30  ;;  %3013 = vperm.xlu0 %4236, %v4120_v41   ;;  %v4122_v7 = vld [vmem:[%s8503_s3 + $0x3a0] sm:$0xff] }
 0x324   : > { %v6885_v44 = vadd.f32 %v1704_v42, %v6697_v24  ;;  %v6888_v52 = vadd.f32 %v1705_v55, %v6700_v13  ;;  %v6891_v33 = vadd.f32 %v1706_v27, %v6703_v6  ;;  %v1709_v5 = vmul.f32 %v9355_v12, %v1660_v45  ;;  %v9358_v24 = vld [vmem:[#allocation137_spill] sm:$0xff]  ;;  %v9360_v13 = vld [vmem:[#allocation144_spill] sm:$0xff]  ;;  %v6908_v21 = vpop.permute.xlu1 %2452  ;;  %v9365_v27 = vld [vmem:[#allocation146_spill] sm:$0xff]  ;;  %3018 = vperm.xlu1 %4237, %v4121_v8  }
 0x325   : > { %v6898_v37 = vadd.f32 %v1707_v29, %v6706_v28  ;;  %v6901_v32 = vadd.f32 %v1708_v25, %v6712_v23  ;;  %v1710_v60 = vmul.f32 %v9358_v24, %v1661_v2  ;;  %v1755_v6 = vsel %vm1748_vm10, %v9360_v13, %v9359_v11  ;;  %9361 = vst [vmem:[#allocation121_spill] sm:$0xff] %v6908_v21  ;;  %v9362_v42 = vld [vmem:[#allocation145_spill] sm:$0xff]  ;;  %v9363_v28 = vld [vmem:[#allocation139_spill] sm:$0xff]  ;;  %v6926_v45 = vpop.permute.xlu0 %2479  ;;  %v9379_v63 = vld [vmem:[#allocation154_spill] sm:$0xff] }
 0x326   : > { %v1749_v62 = vsel %vm1748_vm10, %v9359_v11, %v9360_v13  ;;  %v1750_v23 = vsel %vm1748_vm10, %v9363_v28, %v9362_v42  ;;  %v1756_v55 = vsel %vm1748_vm10, %v9362_v42, %v9363_v28  ;;  %v1757_v41 = vsel %vm1748_vm10, %v9365_v27, %v9364_v56  ;;  %9366 = vst [vmem:[#allocation128_spill] sm:$0xff] %v6926_v45  ;;  %v9367_v12 = vld [vmem:[#allocation147_spill] sm:$0xff]  ;;  %v9368_v25 = vld [vmem:[#allocation141_spill] sm:$0xff]  ;;  %v9369_v13 = vld [vmem:[#allocation142_spill] sm:$0xff] }
 0x327   : > { %v1751_v29 = vsel %vm1748_vm10, %v9364_v56, %v9365_v27  ;;  %v1752_v2 = vsel %vm1748_vm10, %v9368_v25, %v9367_v12  ;;  %v1758_v11 = vsel %vm1748_vm10, %v9367_v12, %v9368_v25  ;;  %v9370_v42 = vld [vmem:[#allocation148_spill] sm:$0xff]  ;;  %3023 = vperm.xlu0 %4236, %v4122_v7   ;;  %v4123_v28 = vld [vmem:[%s8503_s3 + $0x3a8] sm:$0xff]  ;;  %v1711_v56 = vmul.f32 %v9358_v24, %v1662_v34  ;;  %v9372_v25 = vld [vmem:[#allocation149_spill] sm:$0xff] }
 0x328   : > { %v1759_v8 = vsel %vm1748_vm10, %v9370_v42, %v9369_v13  ;;  %v1783_v27 = vmul.f32 %v6336_v17, %v1755_v6  ;;  %v1753_v26 = vsel %vm1748_vm10, %v9369_v13, %v9370_v42  ;;  %v9371_v12 = vld [vmem:[#allocation143_spill] sm:$0xff]  ;;  %v4124_v7 = vld [vmem:[%s8503_s3 + $0x3b0] sm:$0xff]  ;;  %v1784_v34 = vmul.f32 %v6339_v19, %v1749_v62  ;;  %v6965_v13 = vpop.permute.xlu1 %2481  ;;  %3028 = vperm.xlu1 %4237, %v4123_v28  }
 0x329   : > { %v1760_v39 = vsel %vm1748_vm10, %v9372_v25, %v9371_v12  ;;  %v1785_v24 = vmul.f32 %v6336_v17, %v1756_v55  ;;  %v1786_v6 = vmul.f32 %v6339_v19, %v1750_v23  ;;  %v1787_v50 = vmul.f32 %v6336_v17, %v1757_v41  ;;  %9373 = vst [vmem:[#allocation122_spill] sm:$0xff] %v6965_v13  ;;  %v6971_v21 = vpop.permute.xlu0 %2483  ;;  %v9375_v41 = vld [vmem:[#allocation150_spill] sm:$0xff] }
 0x32a   : > { %v1788_v42 = vmul.f32 %v6339_v19, %v1751_v29  ;;  %v1789_v20 = vmul.f32 %v6336_v17, %v1758_v11  ;;  %v1790_v45 = vmul.f32 %v6339_v19, %v1752_v2  ;;  %v1791_v36 = vmul.f32 %v6336_v17, %v1759_v8  ;;  %9374 = vst [vmem:[#allocation119_spill] sm:$0xff] %v6971_v21  ;;  %v4084_v2 = vld [vmem:[%s8505_s5 + $0x1c] sm:$0x3]  ;;  %v9376_v8 = vld [vmem:[#allocation151_spill] sm:$0xff] }
 0x32b   : > { %v1792_v62 = vmul.f32 %v6339_v19, %v1753_v26  ;;  %v1754_v23 = vsel %vm1748_vm10, %v9371_v12, %v9372_v25  ;;  %v1793_v55 = vmul.f32 %v6336_v17, %v1760_v39  ;;  %v1832_v29 = vmul.f32 %v9375_v41, %v1783_v27  ;;  %3033 = vperm.xlu0 %4236, %v4124_v7   ;;  %v4125_v11 = vld [vmem:[%s8503_s3 + $0x3b8] sm:$0xff]  ;;  %v9377_v12 = vld [vmem:[#allocation152_spill] sm:$0xff]  ;;  %v4127_v17 = vld [vmem:[%s8503_s3 + $0x3c0] sm:$0xff] }
 0x32c   : > { %v1833_v26 = vmul.f32 %v9375_v41, %v1784_v34  ;;  %v1834_v28 = vmul.f32 %v9376_v8, %v1785_v24  ;;  %v1835_v21 = vmul.f32 %v9376_v8, %v1786_v6  ;;  %v1836_v25 = vmul.f32 %v9377_v12, %v1787_v50  ;;  %v9378_v27 = vld [vmem:[#allocation153_spill] sm:$0xff]  ;;  %v6997_v3 = vpop.permute.xlu1 %2485  ;;  %v9381_v6 = vld [vmem:[#allocation155_spill] sm:$0xff]  ;;  %3038 = vperm.xlu1 %4237, %v4125_v11  }
 0x32d   : > { %v1837_v39 = vmul.f32 %v9377_v12, %v1788_v42  ;;  %v1838_v7 = vmul.f32 %v9378_v27, %v1789_v20  ;;  %v1839_v13 = vmul.f32 %v9378_v27, %v1790_v45  ;;  %v1840_v18 = vmul.f32 %v9379_v63, %v1791_v36  ;;  %9380 = vst [vmem:[#allocation129_spill] sm:$0xff] %v6997_v3  ;;  %v7002_v8 = vpop.permute.xlu0 %2487 }
 0x32e   : > { %v1721_v34 = vadd.f32 %v1709_v5, %v6715_v46  ;;  %v1841_v24 = vmul.f32 %v9379_v63, %v1792_v62  ;;  %v1842_v50 = vmul.f32 %v9381_v6, %v1793_v55  ;;  %v2386_v41 = vunpack.c.l.bf16 %v4084_v2  ;;  %v4128_v46 = vld [vmem:[%s8503_s3 + $0x3c8] sm:$0xff]  ;;  %v4130_v2 = vld [vmem:[%s8503_s3 + $0x3d8] sm:$0xff] }
 0x32f   : > { %v1722_v42 = vadd.f32 %v1710_v60, %v6840_v14  ;;  %v7006_v20 = vadd.f32 %v1711_v56, %v6849_v0  ;;  %v1794_v45 = vmul.f32 %v6339_v19, %v1754_v23  ;;  %v7010_v36 = vadd.f32 %v1832_v29, %v6862_v15  ;;  %3108 = vperm.xlu0 %4236, %v4127_v17   ;;  %v4129_v19 = vld [vmem:[%s8503_s3 + $0x3d0] sm:$0xff]  ;;  %v9389_v17 = vld [vmem:[#allocation159_spill] sm:$0xff] }
 0x330   : > { %v7016_v63 = vadd.f32 %v1833_v26, %v6865_v10  ;;  %v7019_v5 = vadd.f32 %v1834_v28, %v6870_v1  ;;  %v7022_v14 = vadd.f32 %v1835_v21, %v6873_v48  ;;  %v7025_v0 = vadd.f32 %v1836_v25, %v6885_v44  ;;  %v7042_v48 = vpop.permute.xlu1 %2489  ;;  %3113 = vperm.xlu1 %4237, %v4128_v46   ;;  %v9384_v23 = vld [vmem:[#allocation156_spill] sm:$0xff]  ;;  %v9388_v28 = vld [vmem:[#allocation158_spill] sm:$0xff] }
 0x331   : > { %v7031_v15 = vadd.f32 %v1837_v39, %v6888_v52  ;;  %v7034_v60 = vadd.f32 %v1838_v7, %v6891_v33  ;;  %v7037_v10 = vadd.f32 %v1839_v13, %v6898_v37  ;;  %v7040_v1 = vadd.f32 %v1840_v18, %v6901_v32  ;;  %v7050_v62 = vpop.permute.xlu0 %2491  ;;  %v9383_v33 = vld [vmem:[#allocation162_spill] sm:$0xff]  ;;  %v9385_v32 = vld [vmem:[#allocation157_spill] sm:$0xff]  ;;  %v9386_v13 = vld [vmem:[#allocation163_spill] sm:$0xff] }
 0x332   : > { %v7044_v44 = vadd.f32 %v1841_v24, %v1721_v34  ;;  %v1843_v21 = vmul.f32 %v9381_v6, %v1794_v45  ;;  %v7047_v56 = vadd.f32 %v1842_v50, %v1722_v42  ;;  %v2391_v52 = vrot.slane %v2386_v41, %v5273_v30  ;;  %9382 = vst [vmem:[#allocation123_spill] sm:$0xff] %v7050_v62  ;;  %v9387_v26 = vld [vmem:[#allocation164_spill] sm:$0xff]  ;;  %v9390_v39 = vld [vmem:[#allocation166_spill] sm:$0xff]  ;;  %v9391_v24 = vld [vmem:[#allocation167_spill] sm:$0xff] }
 0x333   : > { %v1881_v37 = vsel %vm1880_vm11, %v9384_v23, %v9383_v33  ;;  %v1887_v18 = vsel %vm1880_vm11, %v9383_v33, %v9384_v23  ;;  %v1888_v55 = vsel %vm1880_vm11, %v9386_v13, %v9385_v32  ;;  %v2395_v29 = vrot.slane %v2386_v41, %v5278_v22  ;;  %3118 = vperm.xlu0 %4236, %v4129_v19   ;;  %v4131_v7 = vld [vmem:[%s8503_s3 + $0x3e0] sm:$0xff]  ;;  %v9392_v6 = vld [vmem:[#allocation160_spill] sm:$0xff]  ;;  %v9393_v42 = vld [vmem:[#allocation161_spill] sm:$0xff] }
 0x334   : > { %v1882_v11 = vsel %vm1880_vm11, %v9385_v32, %v9386_v13  ;;  %v1883_v12 = vsel %vm1880_vm11, %v9388_v28, %v9387_v26  ;;  %v1889_v25 = vsel %vm1880_vm11, %v9387_v26, %v9388_v28  ;;  %v1890_v27 = vsel %vm1880_vm11, %v9390_v39, %v9389_v17  ;;  %v9394_v45 = vld [vmem:[#allocation168_spill] sm:$0xff]  ;;  %v7104_v19 = vpop.permute.xlu1 %2493  ;;  %3123 = vperm.xlu1 %4237, %v4130_v2  }
 0x335   : > { %v1884_v34 = vsel %vm1880_vm11, %v9389_v17, %v9390_v39  ;;  %v1885_v50 = vsel %vm1880_vm11, %v9392_v6, %v9391_v24  ;;  %v1891_v41 = vsel %vm1880_vm11, %v9391_v24, %v9392_v6  ;;  %v1892_v46 = vsel %vm1880_vm11, %v9394_v45, %v9393_v42  ;;  %9395 = vst [vmem:[#allocation124_spill] sm:$0xff] %v7104_v19  ;;  %v7113_v26 = vpop.permute.xlu0 %2495  ;;  %v9421_v19 = vld [vmem:[#allocation10_spill] sm:$0xff] }
 0x336   : > { %v1915_v33 = vmul.f32 %v6502_v57, %v1887_v18  ;;  %v1916_v23 = vmul.f32 %v6505_v40, %v1881_v37  ;;  %v1917_v32 = vmul.f32 %v6502_v57, %v1888_v55  ;;  %v1886_v13 = vsel %vm1880_vm11, %v9393_v42, %v9394_v45  ;;  %9396 = vst [vmem:[#allocation130_spill] sm:$0xff] %v7113_v26  ;;  %v4132_v37 = vld [vmem:[%s8503_s3 + $0x3e8] sm:$0xff]  ;;  %v9398_v42 = vld [vmem:[#allocation170_spill] sm:$0xff] }
 0x337   : > { %v1918_v28 = vmul.f32 %v6505_v40, %v1882_v11  ;;  %v1919_v17 = vmul.f32 %v6502_v57, %v1889_v25  ;;  %v1920_v39 = vmul.f32 %v6505_v40, %v1883_v12  ;;  %v1921_v18 = vmul.f32 %v6502_v57, %v1890_v27  ;;  %3128 = vperm.xlu0 %4236, %v4131_v7   ;;  %v4134_v11 = vld [vmem:[%s8503_s3 + $0x3f0] sm:$0xff]  ;;  %v9397_v25 = vld [vmem:[#allocation169_spill] sm:$0xff] }
 0x338   : > { %v1922_v55 = vmul.f32 %v6505_v40, %v1884_v34  ;;  %v1923_v24 = vmul.f32 %v6502_v57, %v1891_v41  ;;  %v1924_v6 = vmul.f32 %v6505_v40, %v1885_v50  ;;  %v1925_v2 = vmul.f32 %v6502_v57, %v1892_v46  ;;  %v7133_v3 = vpop.permute.xlu1 %2497  ;;  %v9400_v41 = vld [vmem:[#allocation171_spill] sm:$0xff]  ;;  %v9401_v46 = vld [vmem:[#allocation173_spill] sm:$0xff]  ;;  %3133 = vperm.xlu1 %4237, %v4132_v37  }
 0x339   : > { %v1926_v12 = vmul.f32 %v6505_v40, %v1886_v13  ;;  %v1964_v27 = vmul.f32 %v9397_v25, %v1915_v33  ;;  %v1965_v7 = vmul.f32 %v9397_v25, %v1916_v23  ;;  %v1966_v45 = vmul.f32 %v9398_v42, %v1917_v32  ;;  %9399 = vst [vmem:[#allocation131_spill] sm:$0xff] %v7133_v3  ;;  %v4091_v40 = vld [vmem:[%s8505_s5 + $0x1e] sm:$0x3]  ;;  %v7142_v13 = vpop.permute.xlu0 %2499 }
 0x33a   : > { %v1967_v34 = vmul.f32 %v9398_v42, %v1918_v28  ;;  %v1968_v50 = vmul.f32 %v9400_v41, %v1919_v17  ;;  %v1969_v57 = vmul.f32 %v9400_v41, %v1920_v39  ;;  %v1970_v26 = vmul.f32 %v9401_v46, %v1921_v18  ;;  %v9402_v23 = vld [vmem:[#allocation177_spill] sm:$0xff]  ;;  %v9403_v28 = vld [vmem:[#allocation184_spill] sm:$0xff] }
 0x33b   : > { %v1971_v33 = vmul.f32 %v9401_v46, %v1922_v55  ;;  %v1972_v32 = vmul.f32 %v9402_v23, %v1923_v24  ;;  %v1973_v25 = vmul.f32 %v9402_v23, %v1924_v6  ;;  %v1974_v42 = vmul.f32 %v9403_v28, %v1925_v2  ;;  %3203 = vperm.xlu0 %4236, %v4134_v11   ;;  %v4135_v17 = vld [vmem:[%s8503_s3 + $0x3f8] sm:$0xff]  ;;  %v4136_v55 = vld [vmem:[%s8503_s3 + $0x400] sm:$0xff] }
 0x33c   : > { %v1855_v39 = vadd.f32 %v1843_v21, %v7006_v20  ;;  %v1975_v18 = vmul.f32 %v9403_v28, %v1926_v12  ;;  %v7154_v41 = vrot.slane %v2391_v52, %v5273_v30  ;;  %v7157_v37 = vrot.slane %v2395_v29, %v5273_v30  ;;  %v7171_v2 = vpop.permute.xlu1 %2501  ;;  %3208 = vperm.xlu1 %4237, %v4135_v17   ;;  %v9414_v17 = vld [vmem:[#allocation221_spill] sm:$0xff] }
 0x33d   : > { %v7163_v24 = vadd.f32 %v1964_v27, %v7010_v36  ;;  %v7166_v6 = vadd.f32 %v1965_v7, %v7016_v63  ;;  %v7169_v20 = vadd.f32 %v1966_v45, %v7019_v5  ;;  %v2518_v21 = vunpack.c.l.bf16 %v4091_v40  ;;  %v7185_v63 = vpop.permute.xlu0 %2559  ;;  %v9406_v27 = vld [vmem:[#allocation186_spill] sm:$0xff]  ;;  %v4138_v45 = vld [vmem:[%s8503_s3 + $0x410] sm:$0xff] }
 0x33e   : > { %v7174_v52 = vadd.f32 %v1967_v34, %v7022_v14  ;;  %v7177_v29 = vadd.f32 %v1968_v50, %v7025_v0  ;;  %v7180_v11 = vadd.f32 %v1969_v57, %v7031_v15  ;;  %v7183_v36 = vadd.f32 %v1970_v26, %v7034_v60  ;;  %9404 = vst [vmem:[#allocation125_spill] sm:$0xff] %v7185_v63  ;;  %v4137_v15 = vld [vmem:[%s8503_s3 + $0x408] sm:$0xff]  ;;  %v9405_v26 = vld [vmem:[#allocation208_spill] sm:$0xff]  ;;  %v9409_v50 = vld [vmem:[#allocation213_spill] sm:$0xff] }
 0x33f   : > { %v7188_v5 = vadd.f32 %v1971_v33, %v7037_v10  ;;  %v7191_v12 = vadd.f32 %v1972_v32, %v7040_v1  ;;  %v7194_v14 = vadd.f32 %v1973_v25, %v7044_v44  ;;  %v7197_v0 = vadd.f32 %v1974_v42, %v7047_v56  ;;  %3213 = vperm.xlu0 %4236, %v4136_v55   ;;  %v9407_v44 = vld [vmem:[#allocation188_spill] sm:$0xff]  ;;  %v9410_v57 = vld [vmem:[#allocation191_spill] sm:$0xff]  ;;  %v9412_v32 = vld [vmem:[#allocation218_spill] sm:$0xff] }
 0x340   : > { %v7202_v60 = vadd.f32 %v1975_v18, %v1855_v39  ;;  %v2013_v10 = vsel %vm2012_vm12, %v9406_v27, %v9405_v26  ;;  %v2019_v1 = vsel %vm2012_vm12, %v9405_v26, %v9406_v27  ;;  %v9408_v56 = vld [vmem:[#allocation212_spill] sm:$0xff]  ;;  %v2015_v46 = vsel %vm2012_vm12, %v9410_v57, %v9409_v50  ;;  %v7232_v23 = vpop.permute.xlu1 %2564  ;;  %v9413_v25 = vld [vmem:[#allocation195_spill] sm:$0xff]  ;;  %v9415_v39 = vld [vmem:[#allocation198_spill] sm:$0xff]  ;;  %3218 = vperm.xlu1 %4237, %v4137_v15  }
 0x341   : > { %v2020_v7 = vsel %vm2012_vm12, %v9408_v56, %v9407_v44  ;;  %v2014_v34 = vsel %vm2012_vm12, %v9407_v44, %v9408_v56  ;;  %v2021_v40 = vsel %vm2012_vm12, %v9409_v50, %v9410_v57  ;;  %v2523_v33 = vrot.slane %v2518_v21, %v5273_v30  ;;  %9411 = vst [vmem:[#allocation132_spill] sm:$0xff] %v7232_v23  ;;  %v7251_v26 = vpop.permute.xlu0 %2569  ;;  %v4139_v57 = vld [vmem:[%s8503_s3 + $0x418] sm:$0xff]  ;;  %v9420_v23 = vld [vmem:[#allocation224_spill] sm:$0xff] }
 0x342   : > { %v2016_v28 = vsel %vm2012_vm12, %v9413_v25, %v9412_v32  ;;  %v2022_v42 = vsel %vm2012_vm12, %v9412_v32, %v9413_v25  ;;  %v2017_v18 = vsel %vm2012_vm12, %v9415_v39, %v9414_v17  ;;  %v2023_v55 = vsel %vm2012_vm12, %v9414_v17, %v9415_v39  ;;  %9416 = vst [vmem:[#allocation133_spill] sm:$0xff] %v7251_v26  ;;  %v9417_v15 = vld [vmem:[#allocation205_spill] sm:$0xff]  ;;  %v9418_v39 = vld [vmem:[#allocation223_spill] sm:$0xff] }
 0x343   : > { %v2047_v27 = vmul.f32 %v6689_v35, %v2019_v1  ;;  %v2048_v44 = vmul.f32 %v6692_v9, %v2013_v10  ;;  %v2049_v56 = vmul.f32 %v6689_v35, %v2020_v7  ;;  %v2527_v50 = vrot.slane %v2518_v21, %v5278_v22  ;;  %3223 = vperm.xlu0 %4236, %v4138_v45   ;;  %v4141_v21 = vld [vmem:[%s8503_s3 + $0x420] sm:$0xff] }
 0x344   : > { %v2050_v32 = vmul.f32 %v6692_v9, %v2014_v34  ;;  %v2051_v25 = vmul.f32 %v6689_v35, %v2021_v40  ;;  %v2052_v17 = vmul.f32 %v6692_v9, %v2015_v46  ;;  %v2024_v10 = vsel %vm2012_vm12, %v9418_v39, %v9417_v15  ;;  %v4098_v1 = vld [vmem:[%s8505_s5 + $0x20] sm:$0x3]  ;;  %v7277_v40 = vpop.permute.xlu1 %2574  ;;  %3228 = vperm.xlu1 %4237, %v4139_v57  }
 0x345   : > { %v2053_v7 = vmul.f32 %v6689_v35, %v2022_v42  ;;  %v2054_v45 = vmul.f32 %v6692_v9, %v2016_v28  ;;  %v2055_v34 = vmul.f32 %v6689_v35, %v2023_v55  ;;  %v2056_v46 = vmul.f32 %v6692_v9, %v2017_v18  ;;  %9419 = vst [vmem:[#allocation134_spill] sm:$0xff] %v7277_v40  ;;  %v7286_v42 = vpop.permute.xlu0 %2579  ;;  %v9423_v55 = vld [vmem:[#allocation32_spill] sm:$0xff] }
 0x346   : > { %v2018_v26 = vsel %vm2012_vm12, %v9417_v15, %v9418_v39  ;;  %v2096_v63 = vmul.f32 %v9420_v23, %v2047_v27  ;;  %v2097_v3 = vmul.f32 %v9420_v23, %v2048_v44  ;;  %v2098_v62 = vmul.f32 %v9421_v19, %v2049_v56  ;;  %9422 = vst [vmem:[#allocation135_spill] sm:$0xff] %v7286_v42  ;;  %v4142_v15 = vld [vmem:[%s8503_s3 + $0x428] sm:$0xff]  ;;  %v9424_v23 = vld [vmem:[#allocation33_spill] sm:$0xff] }
 0x347   : > { %v2057_v28 = vmul.f32 %v6689_v35, %v2024_v10  ;;  %v2099_v18 = vmul.f32 %v9421_v19, %v2050_v32  ;;  %v2100_v40 = vmul.f32 %v9423_v55, %v2051_v25  ;;  %3298 = vperm.xlu0 %4236, %v4141_v21   ;;  %v2650_v39 = vunpack.c.l.bf16 %v4098_v1  ;;  %v9425_v42 = vld [vmem:[#allocation15_spill] sm:$0xff]  ;;  %v4143_v35 = vld [vmem:[%s8503_s3 + $0x430] sm:$0xff] }
 0x348   : > { %v2101_v27 = vmul.f32 %v9423_v55, %v2052_v17  ;;  %v2102_v44 = vmul.f32 %v9424_v23, %v2053_v7  ;;  %v2103_v56 = vmul.f32 %v9424_v23, %v2054_v45  ;;  %v2104_v57 = vmul.f32 %v9425_v42, %v2055_v34  ;;  %v7309_v17 = vpop.permute.xlu1 %2584  ;;  %3303 = vperm.xlu1 %4237, %v4142_v15   ;;  %v9431_v55 = vld [vmem:[#allocation67_spill] sm:$0xff] }
 0x349   : > { %v2058_v19 = vmul.f32 %v6692_v9, %v2018_v26  ;;  %v2105_v32 = vmul.f32 %v9425_v42, %v2056_v46  ;;  %v7304_v25 = vrot.slane %v2523_v33, %v5273_v30  ;;  %v7307_v10 = vrot.slane %v2527_v50, %v5273_v30  ;;  %v9426_v9 = vld [vmem:[#allocation16_spill] sm:$0xff]  ;;  %v7321_v45 = vpop.permute.xlu0 %2611  ;;  %v9432_v15 = vld [vmem:[#allocation3_spill] sm:$0xff] }
 0x34a   : > { %v7312_v21 = vadd.f32 %v2096_v63, %v7163_v24  ;;  %v7315_v1 = vadd.f32 %v2097_v3, %v7166_v6  ;;  %v7318_v7 = vadd.f32 %v2098_v62, %v7169_v20  ;;  %v2106_v26 = vmul.f32 %v9426_v9, %v2057_v28  ;;  %v4144_v3 = vld [vmem:[%s8503_s3 + $0x438] sm:$0xff]  ;;  %v4145_v63 = vld [vmem:[%s8503_s3 + $0x440] sm:$0xff]  ;;  %v9427_v46 = vld [vmem:[#allocation52_spill] sm:$0xff] }
 0x34b   : > { %v7324_v33 = vadd.f32 %v2099_v18, %v7174_v52  ;;  %v7327_v50 = vadd.f32 %v2100_v40, %v7177_v29  ;;  %v2107_v24 = vmul.f32 %v9426_v9, %v2058_v19  ;;  %3308 = vperm.xlu0 %4236, %v4143_v35   ;;  %v2655_v62 = vrot.slane %v2650_v39, %v5273_v30  ;;  %v9428_v40 = vld [vmem:[#allocation49_spill] sm:$0xff] }
 0x34c   : > { %v7335_v6 = vadd.f32 %v2101_v27, %v7180_v11  ;;  %v7338_v20 = vadd.f32 %v2102_v44, %v7183_v36  ;;  %v7341_v52 = vadd.f32 %v2103_v56, %v7188_v5  ;;  %v7344_v29 = vadd.f32 %v2104_v57, %v7191_v12  ;;  %v9429_v5 = vld [vmem:[#allocation17_spill] sm:$0xff]  ;;  %v9430_v12 = vld [vmem:[#allocation42_spill] sm:$0xff]  ;;  %v7364_v28 = vpop.permute.xlu1 %2613  ;;  %3313 = vperm.xlu1 %4237, %v4144_v3   ;;  %v4146_v56 = vld [vmem:[%s8503_s3 + $0x448] sm:$0xff] }
 0x34d   : > { %v7350_v34 = vadd.f32 %v2105_v32, %v7194_v14  ;;  %v2145_v11 = vsel %vm2144_vm13, %v9428_v40, %v9427_v46  ;;  %v2151_v36 = vsel %vm2144_vm13, %v9427_v46, %v9428_v40  ;;  %v2152_v42 = vsel %vm2144_vm13, %v9430_v12, %v9429_v5  ;;  %v7381_v44 = vpop.permute.xlu0 %2615  ;;  %v4148_v3 = vld [vmem:[%s8503_s3 + $0x450] sm:$0xff] }
 0x34e   : > { %v7367_v14 = vadd.f32 %v2106_v26, %v7197_v0  ;;  %v2146_v18 = vsel %vm2144_vm13, %v9429_v5, %v9430_v12  ;;  %v2147_v27 = vsel %vm2144_vm13, %v9432_v15, %v9431_v55  ;;  %v2153_v23 = vsel %vm2144_vm13, %v9431_v55, %v9432_v15  ;;  %v9434_v26 = vld [vmem:[#allocation70_spill] sm:$0xff] }
 0x34f   : > { %v7384_v0 = vadd.f32 %v2107_v24, %v7202_v60  ;;  %3318 = vperm.xlu0 %4236, %v4145_v63   ;;  %v2659_v57 = vrot.slane %v2650_v39, %v5278_v22  ;;  %v7392_v35 = vrot.slane %v2655_v62, %v5273_v30  ;;  %v2179_v19 = vmul.f32 %v6876_v38, %v2151_v36  ;;  %v9433_v60 = vld [vmem:[#allocation22_spill] sm:$0xff]  ;;  %v9436_v36 = vld [vmem:[#allocation51_spill] sm:$0xff] }
 0x350   : > { %v2180_v32 = vmul.f32 %v6879_v58, %v2145_v11  ;;  %v2181_v9 = vmul.f32 %v6876_v38, %v2152_v42  ;;  %v2154_v24 = vsel %vm2144_vm13, %v9434_v26, %v9433_v60  ;;  %v2182_v39 = vmul.f32 %v6879_v58, %v2146_v18  ;;  %v7411_v40 = vpop.permute.xlu1 %2617  ;;  %v9435_v11 = vld [vmem:[#allocation57_spill] sm:$0xff]  ;;  %v9437_v42 = vld [vmem:[#allocation64_spill] sm:$0xff]  ;;  %3323 = vperm.xlu1 %4237, %v4146_v56  }
 0x351   : > { %v2183_v62 = vmul.f32 %v6876_v38, %v2153_v23  ;;  %v2184_v63 = vmul.f32 %v6879_v58, %v2147_v27  ;;  %v2148_v46 = vsel %vm2144_vm13, %v9433_v60, %v9434_v26  ;;  %v2149_v5 = vsel %vm2144_vm13, %v9436_v36, %v9435_v11  ;;  %v7423_v15 = vpop.permute.xlu0 %2619  ;;  %v9438_v23 = vld [vmem:[#allocation225_spill] sm:$0xff]  ;;  %v9439_v60 = vld [vmem:[#allocation23_spill] sm:$0xff] }
 0x352   : > { %v2155_v12 = vsel %vm2144_vm13, %v9435_v11, %v9436_v36  ;;  %v2228_v18 = vmul.f32 %v9437_v42, %v2179_v19  ;;  %v2229_v55 = vmul.f32 %v9437_v42, %v2180_v32  ;;  %v2185_v27 = vmul.f32 %v6876_v38, %v2154_v24  ;;  %v4149_v56 = vld [vmem:[%s8503_s3 + $0x458] sm:$0xff] }
 0x353   : > { %v2150_v26 = vsel %vm2144_vm13, %v9439_v60, %v9438_v23  ;;  %v2156_v22 = vsel %vm2144_vm13, %v9438_v23, %v9439_v60  ;;  %3393 = vperm.xlu0 %4236, %v4148_v3   ;;  %v7435_v19 = vrot.slane %v2659_v57, %v5273_v30  ;;  %v2230_v32 = vmul.f32 %v6187_v4, %v2181_v9  ;;  %v4150_v3 = vld [vmem:[%s8503_s3 + $0x460] sm:$0xff] }
 0x354   : > { %v2231_v24 = vmul.f32 %v6187_v4, %v2182_v39  ;;  %v2232_v11 = vmul.f32 %v6193_v43, %v2183_v62  ;;  %v2233_v36 = vmul.f32 %v6193_v43, %v2184_v63  ;;  %v2186_v57 = vmul.f32 %v6879_v58, %v2148_v46  ;;  %v7452_v60 = vpop.permute.xlu1 %2621  ;;  %3398 = vperm.xlu1 %4237, %v4149_v56  }
 0x355   : > { %v2187_v42 = vmul.f32 %v6876_v38, %v2155_v12  ;;  %v2188_v23 = vmul.f32 %v6879_v58, %v2149_v5  ;;  %v2234_v9 = vmul.f32 %v6236_v16, %v2185_v27  ;;  %v2189_v4 = vmul.f32 %v6876_v38, %v2156_v22  ;;  %v2624_v63 = vpop.permute.xlu0 %2623  ;;  %v4151_v38 = vld [vmem:[%s8503_s3 + $0x468] sm:$0xff]  ;;  %v9440_v27 = vld [vmem:[#allocation182_spill] sm:$0xff] }
 0x356   : > { %v2190_v43 = vmul.f32 %v6879_v58, %v2150_v26  ;;  %v7457_v39 = vadd.f32 %v2228_v18, %v7312_v21  ;;  %v7460_v62 = vadd.f32 %v2229_v55, %v7315_v1  ;;  %v2636_v12 = vsel %vm2635_vm14, %v7321_v45, %v2624_v63  ;;  %v9441_v26 = vld [vmem:[#allocation183_spill] sm:$0xff] }
 0x357   : > { %v2236_v46 = vmul.f32 %v6254_v53, %v2187_v42  ;;  %v2237_v5 = vmul.f32 %v6254_v53, %v2188_v23  ;;  %v2642_v22 = vsel %vm2635_vm14, %v2624_v63, %v7321_v45  ;;  %3403 = vperm.xlu0 %4236, %v4150_v3   ;;  %v7474_v58 = vadd.f32 %v2230_v32, %v7318_v7  ;;  %v4152_v45 = vld [vmem:[%s8503_s3 + $0x470] sm:$0xff]  ;;  %v9445_v23 = vld [vmem:[#allocation187_spill] sm:$0xff] }
 0x358   : > { %v7477_v21 = vadd.f32 %v2231_v24, %v7324_v33  ;;  %v7480_v53 = vadd.f32 %v2232_v11, %v7327_v50  ;;  %v7483_v1 = vadd.f32 %v2233_v36, %v7335_v6  ;;  %v7490_v18 = vmul.f32 %v6236_v16, %v2186_v57  ;;  %v2626_v55 = vpop.permute.xlu1 %2625  ;;  %3408 = vperm.xlu1 %4237, %v4151_v38   ;;  %v4153_v36 = vld [vmem:[%s8503_s3 + $0x478] sm:$0xff] }
 0x359   : > { %v7493_v7 = vadd.f32 %v2234_v9, %v7338_v20  ;;  %v2238_v33 = vmul.f32 %v6269_v31, %v2189_v4  ;;  %v2239_v50 = vmul.f32 %v6269_v31, %v2190_v43  ;;  %v2331_v6 = vmul.f32 %v6365_v61, %v9440_v27  ;;  %v2628_v20 = vpop.permute.xlu0 %2627  ;;  %v9444_v57 = vld [vmem:[#allocation185_spill] sm:$0xff] }
 0x35a   : > { %v2332_v56 = vmul.f32 %v6365_v61, %v9441_v26  ;;  %v2637_v32 = vsel %vm2635_vm14, %v7364_v28, %v2626_v55  ;;  %v2643_v16 = vsel %vm2635_vm14, %v2626_v55, %v7364_v28  ;;  %v2248_v24 = vadd.f32 %v2236_v46, %v7344_v29  ;;  %v9442_v28 = vld [vmem:[#allocation172_spill] sm:$0xff]  ;;  %v9443_v29 = vld [vmem:[#allocation174_spill] sm:$0xff]  ;;  %v4156_v55 = vld [vmem:[%s8503_s3 + $0x488] sm:$0xff] }
 0x35b   : > { %v2249_v31 = vadd.f32 %v2237_v5, %v7350_v34  ;;  %v2638_v11 = vsel %vm2635_vm14, %v7381_v44, %v2628_v20  ;;  %v2644_v61 = vsel %vm2635_vm14, %v2628_v20, %v7381_v44  ;;  %3413 = vperm.xlu0 %4236, %v4152_v45   ;;  %v7520_v3 = vmul.f32 %v6277_v47, %v9442_v28  ;;  %v4155_v44 = vld [vmem:[%s8503_s3 + $0x480] sm:$0xff]  ;;  %v9446_v45 = vld [vmem:[#allocation60_spill] sm:$0xff] }
 0x35c   : > { %v7524_v34 = vmul.f32 %v6277_v47, %v9443_v29  ;;  %v2333_v42 = vmul.f32 %v6421_v51, %v9444_v57  ;;  %v2334_v9 = vmul.f32 %v6421_v51, %v9445_v23  ;;  %v2250_v4 = vadd.f32 %v2238_v33, %v7367_v14  ;;  %v2630_v46 = vpop.permute.xlu1 %2629  ;;  %3418 = vperm.xlu1 %4237, %v4153_v36   ;;  %v9447_v33 = vld [vmem:[#allocation7_spill] sm:$0xff]  ;;  %v4157_v20 = vld [vmem:[%s8503_s3 + $0x490] sm:$0xff] }
 0x35d   : > { %v2251_v43 = vadd.f32 %v2239_v50, %v7384_v0  ;;  %v2376_v47 = vsel %vm2371_vm15, %v6521_v49, %v6694_v54  ;;  %v2382_v63 = vsel %vm2371_vm15, %v6694_v54, %v6521_v49  ;;  %v2343_v51 = vadd.f32 %v2331_v6, %v2248_v24  ;;  %v2632_v0 = vpop.permute.xlu0 %2631 }
 0x35e   : > { %v2344_v5 = vadd.f32 %v2332_v56, %v2249_v31  ;;  %v2639_v38 = vsel %vm2635_vm14, %v7411_v40, %v2630_v46  ;;  %v2645_v14 = vsel %vm2635_vm14, %v2630_v46, %v7411_v40  ;;  %v2377_v50 = vsel %vm2371_vm15, %v9447_v33, %v9446_v45  ;;  %v4159_v46 = vld [vmem:[%s8503_s3 + $0x4a0] sm:$0xff] }
 0x35f   : > { %v2383_v49 = vsel %vm2371_vm15, %v9446_v45, %v9447_v33  ;;  %v2640_v54 = vsel %vm2635_vm14, %v7423_v15, %v2632_v0  ;;  %v2646_v40 = vsel %vm2635_vm14, %v2632_v0, %v7423_v15  ;;  %3488 = vperm.xlu0 %4236, %v4155_v44   ;;  %v7566_v27 = vadd.f32 %v2333_v42, %v2250_v4  ;;  %v4158_v4 = vld [vmem:[%s8503_s3 + $0x498] sm:$0xff] }
 0x360   : > { %v7568_v6 = vadd.f32 %v2334_v9, %v2251_v43  ;;  %v2414_v26 = vmul.f32 %v7154_v41, %v2376_v47  ;;  %v2415_v56 = vmul.f32 %v7157_v37, %v2382_v63  ;;  %v2508_v15 = vsel %vm2503_vm0, %v7002_v8, %v7142_v13  ;;  %v2634_v28 = vpop.permute.xlu1 %2633  ;;  %3493 = vperm.xlu1 %4237, %v4156_v55  }
 0x361   : > { %v2514_v24 = vsel %vm2503_vm0, %v7142_v13, %v7002_v8  ;;  %v2670_v31 = vmul.f32 %v7392_v35, %v2636_v12  ;;  %v2671_v36 = vmul.f32 %v7435_v19, %v2642_v22  ;;  %v2416_v29 = vmul.f32 %v7154_v41, %v2377_v50  ;;  %v2692_v9 = vpop.permute.xlu0 %2691  ;;  %v9448_v8 = vld [vmem:[#allocation127_spill] sm:$0xff] }
 0x362   : > { %v2417_v57 = vmul.f32 %v7157_v37, %v2383_v49  ;;  %v2641_v42 = vsel %vm2635_vm14, %v7452_v60, %v2634_v28  ;;  %v2647_v23 = vsel %vm2635_vm14, %v2634_v28, %v7452_v60  ;;  %v2463_v13 = vmul.f32 %v9448_v8, %v2414_v26 }
 0x363   : > { %v2464_v12 = vmul.f32 %v9448_v8, %v2415_v56  ;;  %v7595_v22 = vmul.f32 %v2692_v9, %v2670_v31  ;;  %v7597_v44 = vmul.f32 %v2692_v9, %v2671_v36  ;;  %3498 = vperm.xlu0 %4236, %v4157_v20   ;;  %v2546_v43 = vmul.f32 %v7304_v25, %v2508_v15  ;;  %v9450_v15 = vld [vmem:[#allocation135_spill] sm:$0xff] }
 0x364   : > { %v2547_v47 = vmul.f32 %v7307_v10, %v2514_v24  ;;  %v2672_v60 = vmul.f32 %v7392_v35, %v2637_v32  ;;  %v2673_v63 = vmul.f32 %v7435_v19, %v2643_v16  ;;  %v2509_v0 = vsel %vm2503_vm0, %v7042_v48, %v7171_v2  ;;  %v2697_v50 = vpop.permute.xlu1 %2696  ;;  %v9449_v16 = vld [vmem:[#allocation121_spill] sm:$0xff]  ;;  %3503 = vperm.xlu1 %4237, %v4158_v4  }
 0x365   : > { %v2515_v45 = vsel %vm2503_vm0, %v7171_v2, %v7042_v48  ;;  %v2674_v33 = vmul.f32 %v7392_v35, %v2638_v11  ;;  %v2675_v32 = vmul.f32 %v7435_v19, %v2644_v61  ;;  %v2465_v49 = vmul.f32 %v9449_v16, %v2416_v29  ;;  %v2702_v20 = vpop.permute.xlu0 %2701  ;;  %v4160_v11 = vld [vmem:[%s8503_s3 + $0x4a8] sm:$0xff] }
 0x366   : > { %v2466_v55 = vmul.f32 %v9449_v16, %v2417_v57  ;;  %v7621_v26 = vmul.f32 %v2697_v50, %v2672_v60  ;;  %v7623_v56 = vmul.f32 %v2697_v50, %v2673_v63  ;;  %v2595_v24 = vmul.f32 %v9450_v15, %v2546_v43  ;;  %v4162_v57 = vld [vmem:[%s8503_s3 + $0x4b0] sm:$0xff] }
 0x367   : > { %v2596_v31 = vmul.f32 %v9450_v15, %v2547_v47  ;;  %v7627_v48 = vmul.f32 %v2702_v20, %v2674_v33  ;;  %v7629_v2 = vmul.f32 %v2702_v20, %v2675_v32  ;;  %3508 = vperm.xlu0 %4236, %v4159_v46   ;;  %v2548_v61 = vmul.f32 %v7304_v25, %v2509_v0  ;;  %v4164_v32 = vld [vmem:[%s8503_s3 + $0x4c0] sm:$0xff] }
 0x368   : > { %v2549_v36 = vmul.f32 %v7307_v10, %v2515_v45  ;;  %v2676_v28 = vmul.f32 %v7392_v35, %v2639_v38  ;;  %v2677_v29 = vmul.f32 %v7435_v19, %v2645_v14  ;;  %v2475_v9 = vadd.f32 %v2463_v13, %v2343_v51  ;;  %v2707_v47 = vpop.permute.xlu1 %2706  ;;  %3513 = vperm.xlu1 %4237, %v4160_v11   ;;  %v4105_v51 = vld [vmem:[%s8505_s5 + $0x22] sm:$0x3] }
 0x369   : > { %v2476_v8 = vadd.f32 %v2464_v12, %v2344_v5  ;;  %v2678_v4 = vmul.f32 %v7392_v35, %v2640_v54  ;;  %v2679_v43 = vmul.f32 %v7435_v19, %v2646_v40  ;;  %v2597_v60 = vmul.f32 %v7309_v17, %v2548_v61  ;;  %v2712_v14 = vpop.permute.xlu0 %2711  ;;  %v4163_v40 = vld [vmem:[%s8503_s3 + $0x4b8] sm:$0xff]  ;;  %v4165_v61 = vld [vmem:[%s8503_s3 + $0x4c8] sm:$0xff] }
 0x36a   : > { %v2598_v63 = vmul.f32 %v7309_v17, %v2549_v36  ;;  %v7645_v46 = vmul.f32 %v2707_v47, %v2676_v28  ;;  %v7647_v38 = vmul.f32 %v2707_v47, %v2677_v29  ;;  %v2607_v5 = vadd.f32 %v2595_v24, %v2475_v9  ;;  %v9454_v36 = vld [vmem:[#allocation29_spill] sm:$0xff]  ;;  %v9455_v28 = vld [vmem:[#allocation91_spill] sm:$0xff] }
 0x36b   : > { %v2608_v13 = vadd.f32 %v2596_v31, %v2476_v8  ;;  %v2727_v54 = vmul.f32 %v2712_v14, %v2678_v4  ;;  %v2728_v12 = vmul.f32 %v2712_v14, %v2679_v43  ;;  %3583 = vperm.xlu0 %4236, %v4162_v57   ;;  %v2477_v17 = vadd.f32 %v2465_v49, %v7566_v27  ;;  %v9453_v31 = vld [vmem:[#allocation180_spill] sm:$0xff]  ;;  %v9456_v57 = vld [vmem:[#allocation102_spill] sm:$0xff]  ;;  %v9457_v9 = vld [vmem:[#allocation87_spill] sm:$0xff] }
 0x36c   : > { %v2478_v0 = vadd.f32 %v2466_v55, %v7568_v6  ;;  %v2680_v45 = vmul.f32 %v7392_v35, %v2641_v42  ;;  %v2681_v33 = vmul.f32 %v7435_v19, %v2647_v23  ;;  %v7664_v50 = vadd.f32 %v7490_v18, %v7341_v52  ;;  %v2717_v15 = vpop.permute.xlu1 %2716  ;;  %3588 = vperm.xlu1 %4237, %v4163_v40   ;;  %v9451_v18 = vld [vmem:[#allocation178_spill] sm:$0xff]  ;;  %v9459_v14 = vld [vmem:[#allocation175_spill] sm:$0xff]  ;;  %v9463_v40 = vld [vmem:[#allocation93_spill] sm:$0xff] }
 0x36d   : > { %v7666_v16 = vadd.f32 %v2727_v54, %v2607_v5  ;;  %v7668_v20 = vadd.f32 %v2728_v12, %v2608_v13  ;;  %v2782_v27 = vunpack.c.l.bf16 %v4105_v51  ;;  %v2609_v49 = vadd.f32 %v2597_v60, %v2477_v17  ;;  %v7670_v42 = vpop.permute.xlu0 %2743  ;;  %v9452_v23 = vld [vmem:[#allocation6_spill] sm:$0xff]  ;;  %v9458_v60 = vld [vmem:[#allocation165_spill] sm:$0xff]  ;;  %v9461_v13 = vld [vmem:[#allocation176_spill] sm:$0xff] }
 0x36e   : > { %v2610_v6 = vadd.f32 %v2598_v63, %v2478_v0  ;;  %v2729_v55 = vmul.f32 %v2717_v15, %v2680_v45  ;;  %v2730_v35 = vmul.f32 %v2717_v15, %v2681_v33  ;;  %v2335_v19 = vadd.f32 %v7520_v3, %v7457_v39  ;;  %v9460_v51 = vld [vmem:[#allocation14_spill] sm:$0xff]  ;;  %v9462_v12 = vld [vmem:[#allocation109_spill] sm:$0xff] }
 0x36f   : > { %v2336_v52 = vadd.f32 %v7524_v34, %v7460_v62  ;;  %v2325_v24 = vmul.f32 %v9452_v23, %v9451_v18  ;;  %v2326_v11 = vmul.f32 %v9452_v23, %v9453_v31  ;;  %3593 = vperm.xlu0 %4236, %v4164_v32   ;;  %v2372_v29 = vsel %vm2371_vm15, %v9455_v28, %v9454_v36  ;;  %v4166_v34 = vld [vmem:[%s8503_s3 + $0x4d0] sm:$0xff]  ;;  %v9466_v18 = vld [vmem:[#allocation181_spill] sm:$0xff] }
 0x370   : > { %v2378_v39 = vsel %vm2371_vm15, %v9454_v36, %v9455_v28  ;;  %v7691_v62 = vadd.f32 %v2729_v55, %v2609_v49  ;;  %v7693_v3 = vadd.f32 %v2730_v35, %v2610_v6  ;;  %v2373_v8 = vsel %vm2371_vm15, %v9457_v9, %v9456_v57  ;;  %v7707_v43 = vpop.permute.xlu1 %2745  ;;  %3598 = vperm.xlu1 %4237, %v4165_v61   ;;  %v4167_v49 = vld [vmem:[%s8503_s3 + $0x4d8] sm:$0xff]  ;;  %v9464_v6 = vld [vmem:[#allocation179_spill] sm:$0xff]  ;;  %v9467_v61 = vld [vmem:[#allocation114_spill] sm:$0xff] }
 0x371   : > { %v2379_v4 = vsel %vm2371_vm15, %v9456_v57, %v9457_v9  ;;  %v2787_v47 = vrot.slane %v2782_v27, %v5273_v30  ;;  %v2791_v63 = vrot.slane %v2782_v27, %v9458_v60  ;;  %v2327_v5 = vmul.f32 %v9460_v51, %v9459_v14  ;;  %v7723_v45 = vpop.permute.xlu0 %2747  ;;  %v9465_v55 = vld [vmem:[#allocation25_spill] sm:$0xff] }
 0x372   : > { %v2328_v54 = vmul.f32 %v9460_v51, %v9461_v13  ;;  %v2374_v17 = vsel %vm2371_vm15, %v9463_v40, %v9462_v12  ;;  %v2380_v0 = vsel %vm2371_vm15, %v9462_v12, %v9463_v40  ;;  %v2337_v33 = vadd.f32 %v2325_v24, %v7474_v58  ;;  %v9471_v13 = vld [vmem:[#allocation126_spill] sm:$0xff] }
 0x373   : > { %v2338_v32 = vadd.f32 %v2326_v11, %v7477_v21  ;;  %v2406_v15 = vmul.f32 %v7154_v41, %v2372_v29  ;;  %v2407_v27 = vmul.f32 %v7157_v37, %v2378_v39  ;;  %3603 = vperm.xlu0 %4236, %v4166_v34   ;;  %v2329_v35 = vmul.f32 %v9465_v55, %v9464_v6  ;;  %v4169_v21 = vld [vmem:[%s8503_s3 + $0x4e0] sm:$0xff]  ;;  %v9468_v39 = vld [vmem:[#allocation103_spill] sm:$0xff] }
 0x374   : > { %v2330_v23 = vmul.f32 %v9465_v55, %v9466_v18  ;;  %v2408_v31 = vmul.f32 %v7154_v41, %v2373_v8  ;;  %v2409_v58 = vmul.f32 %v7157_v37, %v2379_v4  ;;  %v2410_v24 = vmul.f32 %v7154_v41, %v2374_v17  ;;  %v7745_v29 = vpop.permute.xlu1 %2749  ;;  %v9469_v34 = vld [vmem:[#allocation94_spill] sm:$0xff]  ;;  %v9470_v8 = vld [vmem:[#allocation116_spill] sm:$0xff]  ;;  %3608 = vperm.xlu1 %4237, %v4167_v49  }
 0x375   : > { %v2411_v11 = vmul.f32 %v7157_v37, %v2380_v0  ;;  %v2455_v36 = vmul.f32 %v9467_v61, %v2406_v15  ;;  %v2456_v28 = vmul.f32 %v9467_v61, %v2407_v27  ;;  %v2375_v57 = vsel %vm2371_vm15, %v9469_v34, %v9468_v39  ;;  %v7757_v51 = vpop.permute.xlu0 %2751  ;;  %v4170_v15 = vld [vmem:[%s8503_s3 + $0x4e8] sm:$0xff]  ;;  %v9476_v61 = vld [vmem:[#allocation122_spill] sm:$0xff] }
 0x376   : > { %v2381_v9 = vsel %vm2371_vm15, %v9468_v39, %v9469_v34  ;;  %v2457_v4 = vmul.f32 %v9470_v8, %v2408_v31  ;;  %v2458_v14 = vmul.f32 %v9470_v8, %v2409_v58  ;;  %v2459_v12 = vmul.f32 %v9471_v13, %v2410_v24 }
 0x377   : > { %v2460_v40 = vmul.f32 %v9471_v13, %v2411_v11  ;;  %3678 = vperm.xlu0 %4236, %v4169_v21   ;;  %v7762_v17 = vrot.slane %v2787_v47, %v5273_v30  ;;  %v7765_v0 = vrot.slane %v2791_v63, %v5273_v30  ;;  %v2339_v27 = vadd.f32 %v2327_v5, %v7480_v53  ;;  %v4171_v47 = vld [vmem:[%s8503_s3 + $0x4f0] sm:$0xff]  ;;  %v9472_v5 = vld [vmem:[#allocation123_spill] sm:$0xff] }
 0x378   : > { %v2340_v6 = vadd.f32 %v2328_v54, %v7483_v1  ;;  %v2341_v49 = vadd.f32 %v2329_v35, %v7493_v7  ;;  %v2342_v55 = vadd.f32 %v2330_v23, %v7664_v50  ;;  %v2412_v18 = vmul.f32 %v7154_v41, %v2375_v57  ;;  %v7779_v21 = vpop.permute.xlu1 %2753  ;;  %v9473_v1 = vld [vmem:[#allocation128_spill] sm:$0xff]  ;;  %3683 = vperm.xlu1 %4237, %v4170_v15   ;;  %v9477_v57 = vld [vmem:[#allocation130_spill] sm:$0xff]  ;;  %v9479_v13 = vld [vmem:[#allocation131_spill] sm:$0xff] }
 0x379   : > { %v2413_v63 = vmul.f32 %v7157_v37, %v2381_v9  ;;  %v2467_v31 = vadd.f32 %v2455_v36, %v2335_v19  ;;  %v2468_v58 = vadd.f32 %v2456_v28, %v2336_v52  ;;  %v2469_v24 = vadd.f32 %v2457_v4, %v2337_v33  ;;  %v2756_v54 = vpop.permute.xlu0 %2755  ;;  %v4172_v33 = vld [vmem:[%s8503_s3 + $0x4f8] sm:$0xff]  ;;  %v9475_v11 = vld [vmem:[#allocation124_spill] sm:$0xff]  ;;  %v9478_v9 = vld [vmem:[#allocation119_spill] sm:$0xff] }
 0x37a   : > { %v2470_v53 = vadd.f32 %v2458_v14, %v2338_v32  ;;  %v2504_v7 = vsel %vm2503_vm0, %v9473_v1, %v9472_v5  ;;  %v2510_v50 = vsel %vm2503_vm0, %v9472_v5, %v9473_v1  ;;  %v2471_v41 = vadd.f32 %v2459_v12, %v2339_v27  ;;  %v9474_v32 = vld [vmem:[#allocation120_spill] sm:$0xff]  ;;  %v9480_v12 = vld [vmem:[#allocation129_spill] sm:$0xff] }
 0x37b   : > { %v2472_v37 = vadd.f32 %v2460_v40, %v2340_v6  ;;  %v2768_v19 = vsel %vm2767_vm1, %v7670_v42, %v2756_v54  ;;  %v2774_v52 = vsel %vm2767_vm1, %v2756_v54, %v7670_v42  ;;  %3688 = vperm.xlu0 %4236, %v4171_v47   ;;  %v2461_v35 = vmul.f32 %v9474_v32, %v2412_v18  ;;  %v4173_v42 = vld [vmem:[%s8503_s3 + $0x500] sm:$0xff]  ;;  %v9481_v54 = vld [vmem:[#allocation125_spill] sm:$0xff] }
 0x37c   : > { %v2462_v23 = vmul.f32 %v9474_v32, %v2413_v63  ;;  %v2505_v36 = vsel %vm2503_vm0, %v9476_v61, %v9475_v11  ;;  %v2511_v28 = vsel %vm2503_vm0, %v9475_v11, %v9476_v61  ;;  %v2538_v39 = vmul.f32 %v7304_v25, %v2504_v7  ;;  %v2758_v14 = vpop.permute.xlu1 %2757  ;;  %3693 = vperm.xlu1 %4237, %v4172_v33   ;;  %v4174_v7 = vld [vmem:[%s8503_s3 + $0x508] sm:$0xff]  ;;  %v3730_v11 = vld [vmem:[%s8504_s4] sm:$0xff] }
 0x37d   : > { %v2539_v34 = vmul.f32 %v7307_v10, %v2510_v50  ;;  %v2506_v8 = vsel %vm2503_vm0, %v9478_v9, %v9477_v57  ;;  %v2512_v4 = vsel %vm2503_vm0, %v9477_v57, %v9478_v9  ;;  %v2507_v40 = vsel %vm2503_vm0, %v9480_v12, %v9479_v13  ;;  %v2760_v47 = vpop.permute.xlu0 %2759  ;;  %v9483_v9 = vld [vmem:[#allocation133_spill] sm:$0xff] }
 0x37e   : > { %v2513_v15 = vsel %vm2503_vm0, %v9479_v13, %v9480_v12  ;;  %v2769_v27 = vsel %vm2767_vm1, %v7707_v43, %v2758_v14  ;;  %v2775_v6 = vsel %vm2767_vm1, %v2758_v14, %v7707_v43  ;;  %v2540_v18 = vmul.f32 %v7304_v25, %v2505_v36  ;;  %v9482_v36 = vld [vmem:[#allocation132_spill] sm:$0xff] }
 0x37f   : > { %v2541_v63 = vmul.f32 %v7307_v10, %v2511_v28  ;;  %v2770_v5 = vsel %vm2767_vm1, %v7723_v45, %v2760_v47  ;;  %v2776_v1 = vsel %vm2767_vm1, %v2760_v47, %v7723_v45  ;;  %3698 = vperm.xlu0 %4236, %v4173_v42   ;;  %v2542_v43 = vmul.f32 %v7304_v25, %v2506_v8 }
 0x380   : > { %v2543_v50 = vmul.f32 %v7307_v10, %v2512_v4  ;;  %v2587_v33 = vmul.f32 %v9481_v54, %v2538_v39  ;;  %v2588_v32 = vmul.f32 %v9481_v54, %v2539_v34  ;;  %v2544_v61 = vmul.f32 %v7304_v25, %v2507_v40  ;;  %v2762_v57 = vpop.permute.xlu1 %2761  ;;  %3703 = vperm.xlu1 %4237, %v4174_v7   ;;  %v3731_v40 = vld [vmem:[%s8504_s4 + $0x8] sm:$0xff] }
 0x381   : > { %v2545_v45 = vmul.f32 %v7307_v10, %v2513_v15  ;;  %v2589_v28 = vmul.f32 %v9482_v36, %v2540_v18  ;;  %v2590_v42 = vmul.f32 %v9482_v36, %v2541_v63  ;;  %v2591_v8 = vmul.f32 %v9483_v9, %v2542_v43  ;;  %v2764_v25 = vpop.permute.xlu0 %2763 }
 0x382   : > { %v2592_v4 = vmul.f32 %v9483_v9, %v2543_v50  ;;  %v2771_v39 = vsel %vm2767_vm1, %v7745_v29, %v2762_v57  ;;  %v2777_v34 = vsel %vm2767_vm1, %v2762_v57, %v7745_v29  ;;  %v2473_v10 = vadd.f32 %v2461_v35, %v2341_v49  ;;  %v9484_v29 = vld [vmem:[#allocation134_spill] sm:$0xff] }
 0x383   : > { %v2474_v14 = vadd.f32 %v2462_v23, %v2342_v55  ;;  %v2772_v13 = vsel %vm2767_vm1, %v7757_v51, %v2764_v25  ;;  %v2778_v12 = vsel %vm2767_vm1, %v2764_v25, %v7757_v51  ;;  %3738 = vperm.xlu0 %4236, %v3730_v11   ;;  %v2599_v15 = vadd.f32 %v2587_v33, %v2467_v31  ;;  %v3732_v55 = vld [vmem:[%s8504_s4 + $0x10] sm:$0xff] }
 0x384   : > { %v2600_v47 = vadd.f32 %v2588_v32, %v2468_v58  ;;  %v2593_v18 = vmul.f32 %v9484_v29, %v2544_v61  ;;  %v2594_v49 = vmul.f32 %v9484_v29, %v2545_v45  ;;  %v2601_v35 = vadd.f32 %v2589_v28, %v2469_v24  ;;  %v2766_v7 = vpop.permute.xlu1 %2765  ;;  %3743 = vperm.xlu1 %4237, %v3731_v40  }
 0x385   : > { %v2602_v23 = vadd.f32 %v2590_v42, %v2470_v53  ;;  %v2802_v63 = vmul.f32 %v7762_v17, %v2768_v19  ;;  %v2803_v51 = vmul.f32 %v7765_v0, %v2774_v52  ;;  %v2603_v43 = vadd.f32 %v2591_v8, %v2471_v41  ;;  %v2824_v54 = vpop.permute.xlu0 %2823  ;;  %v3733_v41 = vld [vmem:[%s8504_s4 + $0x18] sm:$0xff] }
 0x386   : > { %v2604_v50 = vadd.f32 %v2592_v4, %v2472_v37  ;;  %v2773_v31 = vsel %vm2767_vm1, %v7779_v21, %v2766_v7  ;;  %v2779_v58 = vsel %vm2767_vm1, %v2766_v7, %v7779_v21  ;;  %v2731_v24 = vadd.f32 %v7595_v22, %v2599_v15  ;;  %v3734_v21 = vld [vmem:[%s8504_s4 + $0x20] sm:$0xff] }
 0x387   : > { %v2732_v53 = vadd.f32 %v7597_v44, %v2600_v47  ;;  %v2851_v19 = vmul.f32 %v2824_v54, %v2802_v63  ;;  %v2852_v33 = vmul.f32 %v2824_v54, %v2803_v51  ;;  %3748 = vperm.xlu0 %4236, %v3732_v55   ;;  %v2605_v37 = vadd.f32 %v2593_v18, %v2473_v10  ;;  %v4119_v10 = vld [vmem:[%s8505_s5 + $0x26] sm:$0x3]  ;;  %v9487_v54 = vld [vmem:[#allocation192_spill] sm:$0xff] }
 0x388   : > { %v2606_v52 = vadd.f32 %v2594_v49, %v2474_v14  ;;  %v2804_v32 = vmul.f32 %v7762_v17, %v2769_v27  ;;  %v2805_v59 = vmul.f32 %v7765_v0, %v2775_v6  ;;  %v2806_v22 = vmul.f32 %v7762_v17, %v2770_v5  ;;  %v2829_v45 = vpop.permute.xlu1 %2828  ;;  %3753 = vperm.xlu1 %4237, %v3733_v41   ;;  %v3735_v5 = vld [vmem:[%s8504_s4 + $0x28] sm:$0xff] }
 0x389   : > { %v2807_v44 = vmul.f32 %v7765_v0, %v2776_v1  ;;  %v2863_v11 = vadd.f32 %v2851_v19, %v2731_v24  ;;  %v2864_v61 = vadd.f32 %v2852_v33, %v2732_v53  ;;  %v2733_v36 = vadd.f32 %v7621_v26, %v2601_v35  ;;  %v2834_v27 = vpop.permute.xlu0 %2833  ;;  %v9488_v24 = vld [vmem:[#allocation190_spill] sm:$0xff] }
 0x38a   : > { %v2734_v28 = vadd.f32 %v7623_v56, %v2602_v23  ;;  %v2853_v42 = vmul.f32 %v2829_v45, %v2804_v32  ;;  %v2854_v57 = vmul.f32 %v2829_v45, %v2805_v59  ;;  %v2735_v6 = vadd.f32 %v7627_v48, %v2603_v43  ;;  %v9485_v43 = vld [vmem:[#allocation193_spill] sm:$0xff]  ;;  %v9490_v32 = vld [vmem:[#allocation194_spill] sm:$0xff]  ;;  %v9491_v45 = vld [vmem:[#allocation199_spill] sm:$0xff] }
 0x38b   : > { %v2736_v9 = vadd.f32 %v7629_v2, %v2604_v50  ;;  %v2855_v8 = vmul.f32 %v2834_v27, %v2806_v22  ;;  %v2856_v4 = vmul.f32 %v2834_v27, %v2807_v44  ;;  %3758 = vperm.xlu0 %4236, %v3734_v21   ;;  %v2808_v1 = vmul.f32 %v7762_v17, %v2771_v39 }
 0x38c   : > { %v2809_v26 = vmul.f32 %v7765_v0, %v2777_v34  ;;  %v2865_v56 = vadd.f32 %v2853_v42, %v2733_v36  ;;  %v2866_v25 = vadd.f32 %v2854_v57, %v2734_v28  ;;  %v2810_v48 = vmul.f32 %v7762_v17, %v2772_v13  ;;  %v2839_v15 = vpop.permute.xlu1 %2838  ;;  %3763 = vperm.xlu1 %4237, %v3735_v5   ;;  %v9492_v28 = vld [vmem:[#allocation200_spill] sm:$0xff] }
 0x38d   : > { %v2811_v2 = vmul.f32 %v7765_v0, %v2778_v12  ;;  %v2867_v14 = vadd.f32 %v2855_v8, %v2735_v6  ;;  %v2868_v40 = vadd.f32 %v2856_v4, %v2736_v9  ;;  %v2737_v47 = vadd.f32 %v7645_v46, %v2605_v37  ;;  %v2844_v34 = vpop.permute.xlu0 %2843  ;;  %v9493_v4 = vld [vmem:[#allocation206_spill] sm:$0xff] }
 0x38e   : > { %v2738_v29 = vadd.f32 %v7647_v38, %v2606_v52  ;;  %v2857_v39 = vmul.f32 %v2839_v15, %v2808_v1  ;;  %v2858_v18 = vmul.f32 %v2839_v15, %v2809_v26  ;;  %v2859_v49 = vmul.f32 %v2844_v34, %v2810_v48  ;;  %v9486_v38 = vld [vmem:[#allocation189_spill] sm:$0xff] }
 0x38f   : > { %v2860_v55 = vmul.f32 %v2844_v34, %v2811_v2  ;;  %v2972_v35 = vunpack.c.l.bf16 %v4119_v10  ;;  %v2812_v23 = vmul.f32 %v7762_v17, %v2773_v31  ;;  %v2813_v13 = vmul.f32 %v7765_v0, %v2779_v58  ;;  %v9489_v58 = vld [vmem:[#allocation196_spill] sm:$0xff]  ;;  %v9494_v1 = vld [vmem:[#allocation201_spill] sm:$0xff]  ;;  %v4126_v10 = vld [vmem:[%s8505_s5 + $0x28] sm:$0x3] }
 0x390   : > { %v2869_v63 = vadd.f32 %v2857_v39, %v2737_v47  ;;  %v2870_v12 = vadd.f32 %v2858_v18, %v2738_v29  ;;  %v2871_v51 = vadd.f32 %v2859_v49, %v7666_v16  ;;  %v2849_v46 = vpop.permute.xlu1 %2848  ;;  %v2897_v50 = vmul.f32 %v9486_v38, %v9485_v43  ;;  %v9495_v47 = vld [vmem:[#allocation27_spill] sm:$0xff]  ;;  %v9496_v39 = vld [vmem:[#allocation28_spill] sm:$0xff] }
 0x391   : > { %v2872_v7 = vadd.f32 %v2860_v55, %v7668_v20  ;;  %v2898_v53 = vmul.f32 %v9488_v24, %v9487_v54  ;;  %v2861_v19 = vmul.f32 %v2849_v46, %v2812_v23  ;;  %v2862_v33 = vmul.f32 %v2849_v46, %v2813_v13  ;;  %v2919_v41 = vpop.permute.xlu0 %2918  ;;  %v9497_v46 = vld [vmem:[#allocation73_spill] sm:$0xff] }
 0x392   : > { %v2946_v37 = vmul.f32 %v2919_v41, %v2897_v50  ;;  %v2977_v0 = vrot.slane %v2972_v35, %v5273_v30  ;;  %v2981_v31 = vrot.slane %v2972_v35, %v9458_v60  ;;  %v2899_v52 = vmul.f32 %v9486_v38, %v9489_v58 }
 0x393   : > { %v2947_v17 = vmul.f32 %v2919_v41, %v2898_v53  ;;  %v2873_v16 = vadd.f32 %v2861_v19, %v7691_v62  ;;  %v2874_v20 = vadd.f32 %v2862_v33, %v7693_v3  ;;  %v2900_v59 = vmul.f32 %v9488_v24, %v9490_v32  ;;  %v9499_v19 = vld [vmem:[#allocation202_spill] sm:$0xff]  ;;  %v9500_v41 = vld [vmem:[#allocation197_spill] sm:$0xff]  ;;  %v9502_v32 = vld [vmem:[#allocation203_spill] sm:$0xff] }
 0x394   : > { %v2958_v21 = vadd.f32 %v2946_v37, %v2863_v11  ;;  %v2924_v44 = vpop.permute.xlu1 %2923  ;;  %v2901_v36 = vmul.f32 %v9486_v38, %v9491_v45  ;;  %v2902_v42 = vmul.f32 %v9488_v24, %v9492_v28  ;;  %v7936_v9 = vrot.slane %v2977_v0, %v5273_v30  ;;  %v9503_v28 = vld [vmem:[#allocation210_spill] sm:$0xff] }
 0x395   : > { %v2959_v22 = vadd.f32 %v2947_v17, %v2864_v61  ;;  %v2948_v57 = vmul.f32 %v2924_v44, %v2899_v52  ;;  %v2949_v27 = vmul.f32 %v2924_v44, %v2900_v59  ;;  %v2929_v62 = vpop.permute.xlu0 %2928  ;;  %v7939_v8 = vrot.slane %v2981_v31, %v5273_v30 }
 0x396   : > { %v2950_v6 = vmul.f32 %v2929_v62, %v2901_v36  ;;  %v2951_v3 = vmul.f32 %v2929_v62, %v2902_v42  ;;  %v2903_v5 = vmul.f32 %v9486_v38, %v9493_v4  ;;  %v2904_v26 = vmul.f32 %v9488_v24, %v9494_v1 }
 0x397   : > { %v2960_v11 = vadd.f32 %v2948_v57, %v2865_v56  ;;  %v2961_v61 = vadd.f32 %v2949_v27, %v2866_v25  ;;  %v2905_v29 = vmul.f32 %v9486_v38, %v9495_v47  ;;  %v2906_v56 = vmul.f32 %v9488_v24, %v9496_v39  ;;  %v9504_v57 = vld [vmem:[#allocation209_spill] sm:$0xff] }
 0x398   : > { %v2962_v48 = vadd.f32 %v2950_v6, %v2867_v14  ;;  %v2963_v2 = vadd.f32 %v2951_v3, %v2868_v40  ;;  %v2934_v15 = vpop.permute.xlu1 %2933  ;;  %v3067_v35 = vunpack.c.l.bf16 %v4126_v10  ;;  %v2907_v43 = vmul.f32 %v9486_v38, %v9497_v46  ;;  %v9498_v14 = vld [vmem:[#allocation62_spill] sm:$0xff]  ;;  %v9506_v10 = vld [vmem:[#allocation211_spill] sm:$0xff] }
 0x399   : > { %v2952_v25 = vmul.f32 %v2934_v15, %v2903_v5  ;;  %v2953_v18 = vmul.f32 %v2934_v15, %v2904_v26  ;;  %v2939_v34 = vpop.permute.xlu0 %2938  ;;  %v2908_v40 = vmul.f32 %v9488_v24, %v9498_v14  ;;  %v2992_v33 = vmul.f32 %v7936_v9, %v9499_v19  ;;  %v9509_v14 = vld [vmem:[#allocation13_spill] sm:$0xff] }
 0x39a   : > { %v2954_v49 = vmul.f32 %v2939_v34, %v2905_v29  ;;  %v2955_v55 = vmul.f32 %v2939_v34, %v2906_v56  ;;  %v2993_v37 = vmul.f32 %v7939_v8, %v9500_v41  ;;  %v3072_v58 = vrot.slane %v3067_v35, %v5273_v30  ;;  %v9507_v56 = vld [vmem:[#allocation41_spill] sm:$0xff]  ;;  %v9511_v41 = vld [vmem:[#allocation215_spill] sm:$0xff] }
 0x39b   : > { %v2964_v23 = vadd.f32 %v2952_v25, %v2869_v63  ;;  %v2965_v13 = vadd.f32 %v2953_v18, %v2870_v12  ;;  %v3076_v38 = vrot.slane %v3067_v35, %v9458_v60  ;;  %v2995_v59 = vmul.f32 %v7939_v8, %v9502_v32  ;;  %v9508_v18 = vld [vmem:[#allocation58_spill] sm:$0xff] }
 0x39c   : > { %v2966_v50 = vadd.f32 %v2954_v49, %v2871_v51  ;;  %v2967_v54 = vadd.f32 %v2955_v55, %v2872_v7  ;;  %v2944_v53 = vpop.permute.xlu1 %2943  ;;  %v9501_v51 = vld [vmem:[#allocation207_spill] sm:$0xff]  ;;  %v2996_v42 = vmul.f32 %v7936_v9, %v9503_v28  ;;  %v2997_v27 = vmul.f32 %v7939_v8, %v9504_v57  ;;  %v9516_v28 = vld [vmem:[#allocation220_spill] sm:$0xff] }
 0x39d   : > { %v2956_v17 = vmul.f32 %v2944_v53, %v2907_v43  ;;  %v2957_v0 = vmul.f32 %v2944_v53, %v2908_v40  ;;  %v2994_v7 = vmul.f32 %v7936_v9, %v9501_v51  ;;  %v3082_v4 = vrot.slane %v3072_v58, %v5273_v30  ;;  %v9510_v53 = vld [vmem:[#allocation74_spill] sm:$0xff]  ;;  %v9513_v51 = vld [vmem:[#allocation219_spill] sm:$0xff] }
 0x39e   : > { %v3014_v31 = vpop.permute.xlu0 %3013  ;;  %v3086_v5 = vrot.slane %v3076_v38, %v5273_v30  ;;  %v2999_v15 = vmul.f32 %v7939_v8, %v9506_v10  ;;  %v3000_v25 = vmul.f32 %v7936_v9, %v9507_v56  ;;  %v3001_v34 = vmul.f32 %v7939_v8, %v9508_v18  ;;  %v9520_v56 = vld [vmem:[#allocation65_spill] sm:$0xff] }
 0x39f   : > { %v3041_v63 = vmul.f32 %v3014_v31, %v2992_v33  ;;  %v3042_v12 = vmul.f32 %v3014_v31, %v2993_v37  ;;  %v2968_v52 = vadd.f32 %v2956_v17, %v2873_v16  ;;  %v2969_v24 = vadd.f32 %v2957_v0, %v2874_v20  ;;  %v9512_v17 = vld [vmem:[#allocation216_spill] sm:$0xff] }
 0x3a0   : > { %v3019_v36 = vpop.permute.xlu1 %3018  ;;  %v3002_v40 = vmul.f32 %v7936_v9, %v9509_v14  ;;  %v3087_v37 = vmul.f32 %v3082_v4, %v9511_v41  ;;  %v3088_v0 = vmul.f32 %v3086_v5, %v9512_v17 }
 0x3a1   : > { %v3053_v44 = vadd.f32 %v3041_v63, %v2958_v21  ;;  %v3054_v45 = vadd.f32 %v3042_v12, %v2959_v22  ;;  %v3043_v62 = vmul.f32 %v3019_v36, %v2994_v7  ;;  %v3044_v6 = vmul.f32 %v3019_v36, %v2995_v59  ;;  %v9505_v21 = vld [vmem:[#allocation214_spill] sm:$0xff] }
 0x3a2   : > { %v3024_v3 = vpop.permute.xlu0 %3023  ;;  %v2998_v22 = vmul.f32 %v7936_v9, %v9505_v21  ;;  %v3089_v7 = vmul.f32 %v3082_v4, %v9513_v51  ;;  %v9514_v9 = vld [vmem:[#allocation217_spill] sm:$0xff] }
 0x3a3   : > { %v3045_v16 = vmul.f32 %v3024_v3, %v2996_v42  ;;  %v3046_v20 = vmul.f32 %v3024_v3, %v2997_v27  ;;  %v3055_v1 = vadd.f32 %v3043_v62, %v2960_v11  ;;  %v3056_v26 = vadd.f32 %v3044_v6, %v2961_v61 }
 0x3a4   : > { %v3029_v39 = vpop.permute.xlu1 %3028  ;;  %v3090_v32 = vmul.f32 %v3086_v5, %v9514_v9  ;;  %v3092_v42 = vmul.f32 %v3086_v5, %v9516_v28 }
 0x3a5   : > { %v3057_v47 = vadd.f32 %v3045_v16, %v2962_v48  ;;  %v3058_v29 = vadd.f32 %v3046_v20, %v2963_v2  ;;  %v3047_v49 = vmul.f32 %v3029_v39, %v2998_v22  ;;  %v3048_v55 = vmul.f32 %v3029_v39, %v2999_v15  ;;  %v9517_v16 = vld [vmem:[#allocation43_spill] sm:$0xff]  ;;  %v9519_v15 = vld [vmem:[#allocation56_spill] sm:$0xff] }
 0x3a6   : > { %v3034_v35 = vpop.permute.xlu0 %3033  ;;  %v3003_v48 = vmul.f32 %v7939_v8, %v9510_v53  ;;  %v3093_v20 = vmul.f32 %v3082_v4, %v9517_v16  ;;  %v3095_v39 = vmul.f32 %v3082_v4, %v9519_v15 }
 0x3a7   : > { %v3049_v11 = vmul.f32 %v3034_v35, %v3000_v25  ;;  %v3050_v61 = vmul.f32 %v3034_v35, %v3001_v34  ;;  %v3059_v46 = vadd.f32 %v3047_v49, %v2964_v23  ;;  %v3060_v43 = vadd.f32 %v3048_v55, %v2965_v13 }
 0x3a8   : > { %v3039_v33 = vpop.permute.xlu1 %3038  ;;  %v3096_v25 = vmul.f32 %v3086_v5, %v9520_v56 }
 0x3a9   : > { %v3061_v2 = vadd.f32 %v3049_v11, %v2966_v50  ;;  %v3062_v19 = vadd.f32 %v3050_v61, %v2967_v54  ;;  %v3051_v31 = vmul.f32 %v3039_v33, %v3002_v40  ;;  %v3052_v63 = vmul.f32 %v3039_v33, %v3003_v48  ;;  %v9515_v54 = vld [vmem:[#allocation222_spill] sm:$0xff]  ;;  %v9521_v11 = vld [vmem:[#allocation19_spill] sm:$0xff] }
 0x3aa   : > { %v3109_v12 = vpop.permute.xlu0 %3108  ;;  %v3091_v36 = vmul.f32 %v3082_v4, %v9515_v54  ;;  %v3097_v61 = vmul.f32 %v3082_v4, %v9521_v11  ;;  %v4133_v4 = vld [vmem:[%s8505_s5 + $0x2a] sm:$0x3] }
 0x3ab   : > { %v3136_v58 = vmul.f32 %v3109_v12, %v3087_v37  ;;  %v3137_v38 = vmul.f32 %v3109_v12, %v3088_v0  ;;  %v3063_v23 = vadd.f32 %v3051_v31, %v2968_v52  ;;  %v3064_v13 = vadd.f32 %v3052_v63, %v2969_v24  ;;  %v4140_v0 = vld [vmem:[%s8505_s5 + $0x2c] sm:$0x3]  ;;  %v4147_v31 = vld [vmem:[%s8505_s5 + $0x2e] sm:$0x3] }
 0x3ac   : > { %v3114_v50 = vpop.permute.xlu1 %3113  ;;  %v3257_v12 = vunpack.c.l.bf16 %v4140_v0  ;;  %v9535_v0 = vld [vmem:[#allocation48_spill] sm:$0xff] }
 0x3ad   : > { %v7988_v59 = vadd.f32 %v3136_v58, %v3053_v44  ;;  %v7990_v8 = vadd.f32 %v3137_v38, %v3054_v45  ;;  %v3138_v57 = vmul.f32 %v3114_v50, %v3089_v7  ;;  %v3139_v27 = vmul.f32 %v3114_v50, %v3090_v32  ;;  %v9518_v44 = vld [vmem:[#allocation30_spill] sm:$0xff] }
 0x3ae   : > { %v3119_v62 = vpop.permute.xlu0 %3118  ;;  %v3094_v21 = vmul.f32 %v3086_v5, %v9518_v44  ;;  %v3262_v51 = vrot.slane %v3257_v12, %v5273_v30  ;;  %v3266_v7 = vrot.slane %v3257_v12, %v9458_v60  ;;  %v9536_v12 = vld [vmem:[#allocation47_spill] sm:$0xff] }
 0x3af   : > { %v3140_v6 = vmul.f32 %v3119_v62, %v3091_v36  ;;  %v3141_v3 = vmul.f32 %v3119_v62, %v3092_v42  ;;  %v7994_v52 = vadd.f32 %v3138_v57, %v3055_v1  ;;  %v7996_v24 = vadd.f32 %v3139_v27, %v3056_v26  ;;  %v4154_v42 = vld [vmem:[%s8505_s5 + $0x30] sm:$0x3]  ;;  %v4161_v57 = vld [vmem:[%s8505_s5 + $0x32] sm:$0x3] }
 0x3b0   : > { %v3124_v10 = vpop.permute.xlu1 %3123  ;;  %v3272_v27 = vrot.slane %v3262_v51, %v5273_v30  ;;  %v3276_v62 = vrot.slane %v3266_v7, %v5273_v30  ;;  %v9539_v7 = vld [vmem:[#allocation50_spill] sm:$0xff] }
 0x3b1   : > { %v8000_v45 = vadd.f32 %v3140_v6, %v3057_v47  ;;  %v8002_v22 = vadd.f32 %v3141_v3, %v3058_v29  ;;  %v3142_v18 = vmul.f32 %v3124_v10, %v3093_v20  ;;  %v3143_v34 = vmul.f32 %v3124_v10, %v3094_v21  ;;  %v9522_v47 = vld [vmem:[#allocation76_spill] sm:$0xff]  ;;  %v9525_v3 = vld [vmem:[#allocation9_spill] sm:$0xff] }
 0x3b2   : > { %v3129_v49 = vpop.permute.xlu0 %3128  ;;  %v3098_v14 = vmul.f32 %v3086_v5, %v9522_v47  ;;  %v9527_v10 = vld [vmem:[#allocation44_spill] sm:$0xff] }
 0x3b3   : > { %v3144_v1 = vmul.f32 %v3129_v49, %v3095_v39  ;;  %v3145_v55 = vmul.f32 %v3129_v49, %v3096_v25  ;;  %v8006_v26 = vadd.f32 %v3142_v18, %v3059_v46  ;;  %v8008_v35 = vadd.f32 %v3143_v34, %v3060_v43  ;;  %v9528_v39 = vld [vmem:[#allocation11_spill] sm:$0xff]  ;;  %v4168_v34 = vld [vmem:[%s8505_s5 + $0x34] sm:$0x3] }
 0x3b4   : > { %v3134_v53 = vpop.permute.xlu1 %3133  ;;  %v3447_v25 = vunpack.c.l.bf16 %v4154_v42  ;;  %v3542_v18 = vunpack.c.l.bf16 %v4161_v57  ;;  %v9529_v49 = vld [vmem:[#allocation31_spill] sm:$0xff] }
 0x3b5   : > { %v8012_v29 = vadd.f32 %v3144_v1, %v3061_v2  ;;  %v8014_v40 = vadd.f32 %v3145_v55, %v3062_v19  ;;  %v3146_v48 = vmul.f32 %v3134_v53, %v3097_v61  ;;  %v3147_v33 = vmul.f32 %v3134_v53, %v3098_v14  ;;  %v9530_v55 = vld [vmem:[#allocation45_spill] sm:$0xff]  ;;  %v9531_v61 = vld [vmem:[#allocation46_spill] sm:$0xff] }
 0x3b6   : > { %v8016_v41 = vpop.permute.xlu0 %3203  ;;  %v3162_v2 = vunpack.c.l.bf16 %v4133_v4  ;;  %v9532_v14 = vld [vmem:[#allocation34_spill] sm:$0xff]  ;;  %v9534_v4 = vld [vmem:[#allocation35_spill] sm:$0xff] }
 0x3b7   : > { %v8018_v37 = vadd.f32 %v3146_v48, %v3063_v23  ;;  %v8020_v17 = vadd.f32 %v3147_v33, %v3064_v13  ;;  %v3352_v23 = vunpack.c.l.bf16 %v4147_v31  ;;  %v9533_v48 = vld [vmem:[#allocation12_spill] sm:$0xff]  ;;  %v8100_v31 = vmul.f32 %v3276_v62, %v9535_v0  ;;  %v9545_v0 = vld [vmem:[#allocation53_spill] sm:$0xff] }
 0x3b8   : > { %v8022_v46 = vpop.permute.xlu1 %3208  ;;  %v3167_v58 = vrot.slane %v3162_v2, %v5273_v30  ;;  %v3171_v13 = vrot.slane %v3162_v2, %v9458_v60  ;;  %v8097_v2 = vmul.f32 %v3272_v27, %v9534_v4 }
 0x3b9   : > { %9523 = vst [vmem:[#allocation136_spill] sm:$0xff] %v8020_v17  ;;  %v3357_v54 = vrot.slane %v3352_v23, %v5273_v30  ;;  %v3361_v36 = vrot.slane %v3352_v23, %v9458_v60  ;;  %v9574_v17 = vld [vmem:[#allocation69_spill] sm:$0xff] }
 0x3ba   : > { %v8024_v43 = vpop.permute.xlu0 %3213  ;;  %v3177_v32 = vrot.slane %v3167_v58, %v5273_v30  ;;  %v3181_v28 = vrot.slane %v3171_v13, %v5273_v30  ;;  %v8103_v58 = vmul.f32 %v3272_v27, %v9536_v12  ;;  %v9538_v13 = vld [vmem:[#allocation2_spill] sm:$0xff] }
 0x3bb   : > { %v3367_v44 = vrot.slane %v3357_v54, %v5273_v30  ;;  %v3371_v21 = vrot.slane %v3361_v36, %v5273_v30  ;;  %v8108_v51 = vmul.f32 %v3276_v62, %v9538_v13  ;;  %v8111_v54 = vmul.f32 %v3272_v27, %v9539_v7  ;;  %v9540_v36 = vld [vmem:[#allocation36_spill] sm:$0xff]  ;;  %v9547_v13 = vld [vmem:[#allocation38_spill] sm:$0xff] }
 0x3bc   : > { %v8029_v5 = vpop.permute.xlu1 %3218  ;;  %v8066_v16 = vmul.f32 %v3177_v32, %v9525_v3  ;;  %v8073_v15 = vmul.f32 %v3181_v28, %v9527_v10  ;;  %v8076_v56 = vmul.f32 %v3177_v32, %v9528_v39  ;;  %v8082_v1 = vmul.f32 %v3181_v28, %v9529_v49 }
 0x3bd   : > { %v8085_v11 = vmul.f32 %v3177_v32, %v9530_v55  ;;  %v8088_v47 = vmul.f32 %v3181_v28, %v9531_v61  ;;  %v8091_v53 = vmul.f32 %v3177_v32, %v9532_v14  ;;  %v8094_v33 = vmul.f32 %v3181_v28, %v9533_v48  ;;  %v9542_v61 = vld [vmem:[#allocation37_spill] sm:$0xff]  ;;  %v9543_v48 = vld [vmem:[#allocation4_spill] sm:$0xff] }
 0x3be   : > { %v8031_v19 = vpop.permute.xlu0 %3223  ;;  %v8114_v42 = vmul.f32 %v3276_v62, %v9540_v36  ;;  %v3637_v3 = vunpack.c.l.bf16 %v4168_v34  ;;  %v3452_v10 = vrot.slane %v3447_v25, %v5273_v30  ;;  %v3456_v39 = vrot.slane %v3447_v25, %v9458_v60  ;;  %v9549_v34 = vld [vmem:[#allocation18_spill] sm:$0xff]  ;;  %v9551_v25 = vld [vmem:[#allocation21_spill] sm:$0xff] }
 0x3bf   : > { %v3547_v49 = vrot.slane %v3542_v18, %v5273_v30  ;;  %v3551_v55 = vrot.slane %v3542_v18, %v9458_v60  ;;  %v8123_v14 = vmul.f32 %v3272_v27, %v9542_v61  ;;  %v8126_v4 = vmul.f32 %v3276_v62, %v9543_v48  ;;  %v9554_v18 = vld [vmem:[#allocation39_spill] sm:$0xff] }
 0x3c0   : > { %v8039_v63 = vpop.permute.xlu1 %3228  ;;  %v8129_v12 = vmul.f32 %v3367_v44, %v9545_v0  ;;  %v8132_v7 = vmul.f32 %v3371_v21, %v9547_v13  ;;  %v8135_v36 = vmul.f32 %v3367_v44, %v9549_v34  ;;  %v8143_v61 = vmul.f32 %v3367_v44, %v9554_v18  ;;  %v9559_v0 = vld [vmem:[#allocation40_spill] sm:$0xff] }
 0x3c1   : > { %9544 = vst [vmem:[#allocation139_spill] sm:$0xff] %v8126_v4  ;;  %v9561_v13 = vld [vmem:[#allocation24_spill] sm:$0xff]  ;;  %v3642_v34 = vrot.slane %v3637_v3, %v5273_v30  ;;  %v3466_v18 = vrot.slane %v3456_v39, %v5273_v30 }
 0x3c2   : > { %v8042_v38 = vpop.permute.xlu0 %3298  ;;  %9546 = vst [vmem:[#allocation140_spill] sm:$0xff] %v8129_v12  ;;  %9548 = vst [vmem:[#allocation146_spill] sm:$0xff] %v8132_v7  ;;  %v8151_v12 = vmul.f32 %v3367_v44, %v9559_v0  ;;  %v8154_v7 = vmul.f32 %v3371_v21, %v9561_v13  ;;  %v9564_v0 = vld [vmem:[#allocation54_spill] sm:$0xff] }
 0x3c3   : > { %9550 = vst [vmem:[#allocation147_spill] sm:$0xff] %v8135_v36  ;;  %9555 = vst [vmem:[#allocation148_spill] sm:$0xff] %v8143_v61  ;;  %v3557_v61 = vrot.slane %v3547_v49, %v5273_v30  ;;  %v9565_v13 = vld [vmem:[#allocation66_spill] sm:$0xff] }
 0x3c4   : > { %v8047_v9 = vpop.permute.xlu1 %3303  ;;  %9560 = vst [vmem:[#allocation150_spill] sm:$0xff] %v8151_v12  ;;  %9562 = vst [vmem:[#allocation151_spill] sm:$0xff] %v8154_v7  ;;  %v8166_v12 = vmul.f32 %v3181_v28, %v9564_v0  ;;  %v8169_v7 = vmul.f32 %v3272_v27, %v9565_v13  ;;  %v8186_v0 = vmul.f32 %v3371_v21, %v9574_v17  ;;  %v9581_v17 = vld [vmem:[#allocation20_spill] sm:$0xff] }
 0x3c6   : > { %v8050_v50 = vpop.permute.xlu0 %3308  ;;  %9566 = vst [vmem:[#allocation152_spill] sm:$0xff] %v8169_v7  ;;  %9575 = vst [vmem:[#allocation162_spill] sm:$0xff] %v8186_v0  ;;  %v9577_v7 = vld [vmem:[#allocation8_spill] sm:$0xff] }
 0x3c8   : > { %v8063_v6 = vpop.permute.xlu1 %3313 }
 0x3c9   : > { %9524 = vst [vmem:[#allocation137_spill] sm:$0xff] %v8063_v6  ;;  %v9576_v6 = vld [vmem:[#allocation68_spill] sm:$0xff] }
 0x3ca   : > { %v8068_v20 = vpop.permute.xlu0 %3318  ;;  %v8189_v13 = vmul.f32 %v3272_v27, %v9576_v6  ;;  %v9583_v27 = vld [vmem:[#allocation80_spill] sm:$0xff] }
 0x3cb   : > { %9526 = vst [vmem:[#allocation138_spill] sm:$0xff] %v8068_v20  ;;  %v9556_v20 = vld [vmem:[#allocation55_spill] sm:$0xff]  ;;  %v8208_v6 = vmul.f32 %v3466_v18, %v9583_v27 }
 0x3cc   : > { %v8105_v23 = vpop.permute.xlu1 %3323  ;;  %v8146_v48 = vmul.f32 %v3371_v21, %v9556_v20  ;;  %v3561_v20 = vrot.slane %v3551_v55, %v5273_v30  ;;  %v9572_v55 = vld [vmem:[#allocation79_spill] sm:$0xff] }
 0x3cd   : > { %9537 = vst [vmem:[#allocation144_spill] sm:$0xff] %v8105_v23  ;;  %9584 = vst [vmem:[#allocation163_spill] sm:$0xff] %v8208_v6  ;;  %v9597_v6 = vld [vmem:[#allocation84_spill] sm:$0xff] }
 0x3ce   : > { %v8116_v57 = vpop.permute.xlu0 %3393  ;;  %9557 = vst [vmem:[#allocation143_spill] sm:$0xff] %v8146_v48  ;;  %v9563_v48 = vld [vmem:[#allocation5_spill] sm:$0xff] }
 0x3cf   : > { %9541 = vst [vmem:[#allocation145_spill] sm:$0xff] %v8116_v57  ;;  %v8138_v57 = vmul.f32 %v3371_v21, %v9551_v25  ;;  %v3646_v25 = vrot.slane %v3637_v3, %v9458_v60  ;;  %v9569_v60 = vld [vmem:[#allocation61_spill] sm:$0xff] }
 0x3d0   : > { %v8140_v23 = vpop.permute.xlu1 %3398  ;;  %v8175_v3 = vmul.f32 %v3177_v32, %v9569_v60  ;;  %v9579_v60 = vld [vmem:[#allocation63_spill] sm:$0xff] }
 0x3d1   : > { %9552 = vst [vmem:[#allocation141_spill] sm:$0xff] %v8138_v57  ;;  %9553 = vst [vmem:[#allocation142_spill] sm:$0xff] %v8140_v23  ;;  %v3462_v57 = vrot.slane %v3452_v10, %v5273_v30  ;;  %v9567_v23 = vld [vmem:[#allocation75_spill] sm:$0xff]  ;;  %v9570_v10 = vld [vmem:[#allocation78_spill] sm:$0xff] }
 0x3d2   : > { %v8148_v4 = vpop.permute.xlu0 %3403  ;;  %v8172_v36 = vmul.f32 %v3276_v62, %v9567_v23  ;;  %v8178_v39 = vmul.f32 %v3181_v28, %v9570_v10  ;;  %v8192_v23 = vmul.f32 %v3276_v62, %v9577_v7  ;;  %v3656_v28 = vrot.slane %v3646_v25, %v5273_v30  ;;  %v9585_v62 = vld [vmem:[#allocation81_spill] sm:$0xff] }
 0x3d3   : > { %9558 = vst [vmem:[#allocation149_spill] sm:$0xff] %v8148_v4  ;;  %v8163_v4 = vmul.f32 %v3177_v32, %v9563_v48  ;;  %v8183_v48 = vmul.f32 %v3367_v44, %v9572_v55  ;;  %v3652_v32 = vrot.slane %v3642_v34, %v5273_v30  ;;  %v8199_v10 = vmul.f32 %v3367_v44, %v9579_v60  ;;  %v9580_v55 = vld [vmem:[#allocation77_spill] sm:$0xff]  ;;  %v9589_v34 = vld [vmem:[#allocation26_spill] sm:$0xff] }
 0x3d4   : > { %9568 = vst [vmem:[#allocation153_spill] sm:$0xff] %v8172_v36  ;;  %v8180_v49 = vpop.permute.xlu1 %3408  ;;  %v8205_v0 = vmul.f32 %v3462_v57, %v9581_v17  ;;  %v8211_v7 = vmul.f32 %v3462_v57, %v9585_v62  ;;  %v8217_v30 = vmul.f32 %v3462_v57, %v9589_v34  ;;  %v9591_v44 = vld [vmem:[#allocation82_spill] sm:$0xff]  ;;  %v9595_v17 = vld [vmem:[#allocation83_spill] sm:$0xff]  ;;  %v8231_v62 = vmul.f32 %v3462_v57, %v9597_v6  ;;  %v9602_v34 = vld [vmem:[#allocation92_spill] sm:$0xff] }
 0x3d5   : > { %9571 = vst [vmem:[#allocation154_spill] sm:$0xff] %v8180_v49  ;;  %9573 = vst [vmem:[#allocation155_spill] sm:$0xff] %v8183_v48  ;;  %v8202_v48 = vmul.f32 %v3371_v21, %v9580_v55  ;;  %v8220_v25 = vmul.f32 %v3466_v18, %v9591_v44  ;;  %v9593_v60 = vld [vmem:[#allocation90_spill] sm:$0xff]  ;;  %v8228_v27 = vmul.f32 %v3466_v18, %v9595_v17 }
 0x3d6   : > { %v8194_v36 = vpop.permute.xlu0 %3413  ;;  %9582 = vst [vmem:[#allocation157_spill] sm:$0xff] %v8205_v0  ;;  %9586 = vst [vmem:[#allocation164_spill] sm:$0xff] %v8211_v7  ;;  %v8225_v55 = vmul.f32 %v3462_v57, %v9593_v60  ;;  %v9599_v7 = vld [vmem:[#allocation85_spill] sm:$0xff]  ;;  %v9603_v44 = vld [vmem:[#allocation86_spill] sm:$0xff] }
 0x3d7   : > { %9578 = vst [vmem:[#allocation156_spill] sm:$0xff] %v8194_v36  ;;  %v9587_v36 = vld [vmem:[#allocation71_spill] sm:$0xff]  ;;  %9590 = vst [vmem:[#allocation159_spill] sm:$0xff] %v8217_v30  ;;  %v8239_v30 = vmul.f32 %v3462_v57, %v9602_v34  ;;  %v9605_v0 = vld [vmem:[#allocation88_spill] sm:$0xff] }
 0x3d8   : > { %v8214_v49 = vmul.f32 %v3466_v18, %v9587_v36  ;;  %9592 = vst [vmem:[#allocation166_spill] sm:$0xff] %v8220_v25  ;;  %v8222_v21 = vpop.permute.xlu1 %3418  ;;  %9594 = vst [vmem:[#allocation167_spill] sm:$0xff] %v8225_v55  ;;  %v8234_v36 = vmul.f32 %v3466_v18, %v9599_v7  ;;  %v8242_v25 = vmul.f32 %v3466_v18, %v9603_v44  ;;  %v9607_v55 = vld [vmem:[#allocation204_spill] sm:$0xff]  ;;  %v9615_v57 = vld [vmem:[#allocation97_spill] sm:$0xff] }
 0x3d9   : > { %9596 = vst [vmem:[#allocation160_spill] sm:$0xff] %v8228_v27  ;;  %9598 = vst [vmem:[#allocation161_spill] sm:$0xff] %v8231_v62  ;;  %v8245_v60 = vmul.f32 %v3557_v61, %v9605_v0  ;;  %v8248_v17 = vmul.f32 %v3561_v20, %v9607_v55  ;;  %v9609_v27 = vld [vmem:[#allocation95_spill] sm:$0xff]  ;;  %v9611_v62 = vld [vmem:[#allocation89_spill] sm:$0xff]  ;;  %v8260_v34 = vmul.f32 %v3561_v20, %v9615_v57 }
 0x3da   : > { %9588 = vst [vmem:[#allocation158_spill] sm:$0xff] %v8214_v49  ;;  %9600 = vst [vmem:[#allocation168_spill] sm:$0xff] %v8234_v36  ;;  %v8236_v49 = vpop.permute.xlu0 %3488  ;;  %v8251_v6 = vmul.f32 %v3557_v61, %v9609_v27  ;;  %v8254_v7 = vmul.f32 %v3561_v20, %v9611_v62  ;;  %v9613_v36 = vld [vmem:[#allocation96_spill] sm:$0xff]  ;;  %v9617_v18 = vld [vmem:[#allocation98_spill] sm:$0xff] }
 0x3db   : > { %9601 = vst [vmem:[#allocation169_spill] sm:$0xff] %v8236_v49  ;;  %9604 = vst [vmem:[#allocation170_spill] sm:$0xff] %v8242_v25  ;;  %v8257_v49 = vmul.f32 %v3557_v61, %v9613_v36  ;;  %v8263_v44 = vmul.f32 %v3557_v61, %v9617_v18  ;;  %v9619_v0 = vld [vmem:[#allocation99_spill] sm:$0xff]  ;;  %v9621_v55 = vld [vmem:[#allocation100_spill] sm:$0xff] }
 0x3dc   : > { %9606 = vst [vmem:[#allocation171_spill] sm:$0xff] %v8245_v60  ;;  %9608 = vst [vmem:[#allocation173_spill] sm:$0xff] %v8248_v17  ;;  %v8266_v60 = vmul.f32 %v3561_v20, %v9619_v0  ;;  %v8269_v17 = vmul.f32 %v3557_v61, %v9621_v55  ;;  %v9623_v27 = vld [vmem:[#allocation72_spill] sm:$0xff]  ;;  %v8274_v62 = vpop.permute.xlu1 %3493  ;;  %v9631_v55 = vld [vmem:[#allocation111_spill] sm:$0xff] }
 0x3dd   : > { %9610 = vst [vmem:[#allocation177_spill] sm:$0xff] %v8251_v6  ;;  %9612 = vst [vmem:[#allocation184_spill] sm:$0xff] %v8254_v7  ;;  %v8272_v6 = vmul.f32 %v3561_v20, %v9623_v27  ;;  %v9625_v7 = vld [vmem:[#allocation101_spill] sm:$0xff]  ;;  %v9633_v25 = vld [vmem:[#allocation112_spill] sm:$0xff] }
 0x3de   : > { %9614 = vst [vmem:[#allocation208_spill] sm:$0xff] %v8257_v49  ;;  %9616 = vst [vmem:[#allocation186_spill] sm:$0xff] %v8260_v34  ;;  %v8277_v36 = vmul.f32 %v3557_v61, %v9625_v7  ;;  %v9627_v49 = vld [vmem:[#allocation108_spill] sm:$0xff]  ;;  %v9629_v34 = vld [vmem:[#allocation110_spill] sm:$0xff]  ;;  %v8297_v61 = vmul.f32 %v3652_v32, %v9633_v25 }
 0x3df   : > { %9618 = vst [vmem:[#allocation188_spill] sm:$0xff] %v8263_v44  ;;  %9620 = vst [vmem:[#allocation212_spill] sm:$0xff] %v8266_v60  ;;  %v8280_v57 = vmul.f32 %v3561_v20, %v9627_v49  ;;  %v8283_v18 = vmul.f32 %v3652_v32, %v9629_v34  ;;  %v9630_v44 = vld [vmem:[#allocation104_spill] sm:$0xff]  ;;  %v8288_v60 = vpop.permute.xlu0 %3498  ;;  %v9632_v27 = vld [vmem:[#allocation105_spill] sm:$0xff]  ;;  %v3231_v49 = vmul.f32 %v8016_v41, %v8066_v16 }
 0x3e0   : > { %9622 = vst [vmem:[#allocation213_spill] sm:$0xff] %v8269_v17  ;;  %9624 = vst [vmem:[#allocation191_spill] sm:$0xff] %v8272_v6  ;;  %v8286_v0 = vmul.f32 %v3656_v28, %v9630_v44  ;;  %v8291_v17 = vmul.f32 %v3652_v32, %v9631_v55  ;;  %v8294_v6 = vmul.f32 %v3656_v28, %v9632_v27  ;;  %v9635_v7 = vld [vmem:[#allocation106_spill] sm:$0xff]  ;;  %v9637_v55 = vld [vmem:[#allocation59_spill] sm:$0xff] }
 0x3e1   : > { %9626 = vst [vmem:[#allocation218_spill] sm:$0xff] %v8277_v36  ;;  %9628 = vst [vmem:[#allocation195_spill] sm:$0xff] %v8280_v57  ;;  %v8300_v20 = vmul.f32 %v3656_v28, %v9635_v7  ;;  %v3232_v34 = vmul.f32 %v8016_v41, %v8073_v15  ;;  %v3233_v44 = vmul.f32 %v8022_v46, %v8076_v56  ;;  %v9638_v25 = vld [vmem:[#allocation113_spill] sm:$0xff]  ;;  %v9639_v7 = vld [vmem:[#allocation115_spill] sm:$0xff] }
 0x3e2   : > { %9634 = vst [vmem:[#allocation221_spill] sm:$0xff] %v8297_v61  ;;  %v8309_v57 = vmul.f32 %v3652_v32, %v9637_v55  ;;  %v3234_v27 = vmul.f32 %v8022_v46, %v8082_v1  ;;  %v8314_v36 = vmul.f32 %v3656_v28, %v9638_v25  ;;  %v9640_v61 = vld [vmem:[#allocation107_spill] sm:$0xff]  ;;  %v3235_v41 = vmul.f32 %v8024_v43, %v8085_v11  ;;  %v8328_v55 = vpop.permute.xlu1 %3503  ;;  %v9642_v46 = vld [vmem:[#allocation117_spill] sm:$0xff] }
 0x3e3   : > { %9636 = vst [vmem:[#allocation198_spill] sm:$0xff] %v8300_v20  ;;  %v8317_v20 = vmul.f32 %v3652_v32, %v9639_v7  ;;  %v8320_v16 = vmul.f32 %v3656_v28, %v9640_v61  ;;  %v3236_v15 = vmul.f32 %v8024_v43, %v8088_v47  ;;  %v3237_v56 = vmul.f32 %v8029_v5, %v8091_v53  ;;  %v8339_v7 = vpop.permute.xlu0 %3508  ;;  %v9643_v43 = vld [vmem:[#allocation118_spill] sm:$0xff] }
 0x3e4   : > { %v8331_v1 = vmul.f32 %v3652_v32, %v9642_v46  ;;  %v3238_v25 = vmul.f32 %v8029_v5, %v8094_v33  ;;  %v3239_v61 = vmul.f32 %v8031_v19, %v8163_v4  ;;  %v3240_v11 = vmul.f32 %v8031_v19, %v8166_v12  ;;  %v9652_v46 = vld [vmem:[#allocation145_spill] sm:$0xff] }
 0x3e5   : > { %9641 = vst [vmem:[#allocation205_spill] sm:$0xff] %v8320_v16  ;;  %v8342_v47 = vmul.f32 %v3656_v28, %v9643_v43  ;;  %v3243_v53 = vadd.f32 %v3231_v49, %v7988_v59  ;;  %v3244_v16 = vadd.f32 %v3232_v34, %v7990_v8  ;;  %v3245_v32 = vadd.f32 %v3233_v44, %v7994_v52  ;;  %v9646_v34 = vld [vmem:[#allocation139_spill] sm:$0xff]  ;;  %v9647_v44 = vld [vmem:[#allocation152_spill] sm:$0xff] }
 0x3e6   : > { %v3241_v5 = vmul.f32 %v8039_v63, %v8175_v3  ;;  %v3246_v33 = vadd.f32 %v3234_v27, %v7996_v24  ;;  %v3242_v4 = vmul.f32 %v8039_v63, %v8178_v39  ;;  %v3326_v19 = vmul.f32 %v8042_v38, %v8097_v2  ;;  %v8361_v28 = vpop.permute.xlu1 %3513  ;;  %v9645_v39 = vld [vmem:[#allocation136_spill] sm:$0xff]  ;;  %v9648_v27 = vld [vmem:[#allocation138_spill] sm:$0xff] }
 0x3e7   : > { %v3327_v12 = vmul.f32 %v8042_v38, %v8100_v31  ;;  %v3247_v59 = vadd.f32 %v3235_v41, %v8000_v45  ;;  %v3248_v8 = vadd.f32 %v3236_v15, %v8002_v22  ;;  %v3249_v52 = vadd.f32 %v3237_v56, %v8006_v26  ;;  %v8368_v31 = vpop.permute.xlu0 %3583  ;;  %v9649_v41 = vld [vmem:[#allocation153_spill] sm:$0xff]  ;;  %v9650_v15 = vld [vmem:[#allocation144_spill] sm:$0xff] }
 0x3e8   : > { %v3328_v3 = vmul.f32 %v8047_v9, %v8103_v58  ;;  %v3250_v24 = vadd.f32 %v3238_v25, %v8008_v35  ;;  %v3251_v63 = vadd.f32 %v3239_v61, %v8012_v29  ;;  %v3252_v2 = vadd.f32 %v3240_v11, %v8014_v40  ;;  %v9644_v58 = vld [vmem:[#allocation137_spill] sm:$0xff]  ;;  %v9653_v61 = vld [vmem:[#allocation146_spill] sm:$0xff] }
 0x3e9   : > { %v3329_v38 = vmul.f32 %v8047_v9, %v8108_v51  ;;  %v3253_v45 = vadd.f32 %v3241_v5, %v8018_v37  ;;  %v3330_v22 = vmul.f32 %v8050_v50, %v8111_v54  ;;  %v3331_v26 = vmul.f32 %v8050_v50, %v8114_v42 }
 0x3ea   : > { %v3332_v35 = vmul.f32 %v9644_v58, %v8123_v14  ;;  %v3254_v29 = vadd.f32 %v3242_v4, %v9645_v39  ;;  %v3338_v49 = vadd.f32 %v3326_v19, %v3243_v53  ;;  %v3339_v40 = vadd.f32 %v3327_v12, %v3244_v16  ;;  %v8386_v42 = vpop.permute.xlu1 %3588  ;;  %v9651_v16 = vld [vmem:[#allocation140_spill] sm:$0xff]  ;;  %v9654_v4 = vld [vmem:[#allocation147_spill] sm:$0xff]  ;;  %v9655_v19 = vld [vmem:[#allocation142_spill] sm:$0xff] }
 0x3eb   : > { %v3333_v9 = vmul.f32 %v9644_v58, %v9646_v34  ;;  %v3340_v51 = vadd.f32 %v3328_v3, %v3245_v32  ;;  %v3334_v37 = vmul.f32 %v9648_v27, %v9647_v44  ;;  %v3335_v54 = vmul.f32 %v9648_v27, %v9649_v41  ;;  %v8394_v43 = vpop.permute.xlu0 %3593  ;;  %v9656_v3 = vld [vmem:[#allocation141_spill] sm:$0xff]  ;;  %v9659_v39 = vld [vmem:[#allocation143_spill] sm:$0xff] }
 0x3ec   : > { %v3336_v50 = vmul.f32 %v9650_v15, %v8189_v13  ;;  %v3341_v14 = vadd.f32 %v3329_v38, %v3246_v33  ;;  %v3337_v56 = vmul.f32 %v9650_v15, %v8192_v23  ;;  %v3421_v25 = vmul.f32 %v9652_v46, %v9651_v16  ;;  %v9657_v38 = vld [vmem:[#allocation148_spill] sm:$0xff]  ;;  %v9658_v23 = vld [vmem:[#allocation149_spill] sm:$0xff]  ;;  %v9660_v15 = vld [vmem:[#allocation150_spill] sm:$0xff] }
 0x3ed   : > { %v3422_v11 = vmul.f32 %v9652_v46, %v9653_v61  ;;  %v3342_v53 = vadd.f32 %v3330_v22, %v3247_v59  ;;  %v3343_v32 = vadd.f32 %v3331_v26, %v3248_v8  ;;  %v3344_v5 = vadd.f32 %v3332_v35, %v3249_v52  ;;  %v9661_v59 = vld [vmem:[#allocation154_spill] sm:$0xff]  ;;  %v9663_v61 = vld [vmem:[#allocation155_spill] sm:$0xff] }
 0x3ee   : > { %v3423_v13 = vmul.f32 %v9655_v19, %v9654_v4  ;;  %v3345_v12 = vadd.f32 %v3333_v9, %v3250_v24  ;;  %v3424_v33 = vmul.f32 %v9655_v19, %v9656_v3  ;;  %v3425_v58 = vmul.f32 %v9658_v23, %v9657_v38  ;;  %v3599_v52 = vpop.permute.xlu1 %3598  ;;  %v9662_v24 = vld [vmem:[#allocation151_spill] sm:$0xff]  ;;  %v9664_v4 = vld [vmem:[#allocation156_spill] sm:$0xff]  ;;  %v9665_v3 = vld [vmem:[#allocation162_spill] sm:$0xff] }
 0x3ef   : > { %v3426_v34 = vmul.f32 %v9658_v23, %v9659_v39  ;;  %v3346_v44 = vadd.f32 %v3334_v37, %v3251_v63  ;;  %v3347_v27 = vadd.f32 %v3335_v54, %v3252_v2  ;;  %v3348_v41 = vadd.f32 %v3336_v50, %v3253_v45  ;;  %v8408_v16 = vpop.permute.xlu0 %3603  ;;  %v9666_v54 = vld [vmem:[#allocation157_spill] sm:$0xff] }
 0x3f0   : > { %v3427_v8 = vmul.f32 %v9661_v59, %v9660_v15  ;;  %v3349_v22 = vadd.f32 %v3337_v56, %v3254_v29  ;;  %v3433_v26 = vadd.f32 %v3421_v25, %v3338_v49  ;;  %v3434_v35 = vadd.f32 %v3422_v11, %v3339_v40  ;;  %v9667_v50 = vld [vmem:[#allocation169_spill] sm:$0xff]  ;;  %v9669_v11 = vld [vmem:[#allocation164_spill] sm:$0xff] }
 0x3f1   : > { %v3428_v9 = vmul.f32 %v9661_v59, %v9662_v24  ;;  %v3435_v46 = vadd.f32 %v3423_v13, %v3340_v51  ;;  %v3429_v19 = vmul.f32 %v9664_v4, %v9663_v61  ;;  %v3430_v63 = vmul.f32 %v9664_v4, %v9665_v3  ;;  %v9668_v51 = vld [vmem:[#allocation163_spill] sm:$0xff]  ;;  %v9675_v24 = vld [vmem:[#allocation161_spill] sm:$0xff] }
 0x3f2   : > { %v3431_v2 = vmul.f32 %v8222_v21, %v8199_v10  ;;  %v3436_v45 = vadd.f32 %v3424_v33, %v3341_v14  ;;  %v3437_v37 = vadd.f32 %v3425_v58, %v3342_v53  ;;  %v3438_v29 = vadd.f32 %v3426_v34, %v3343_v32  ;;  %v8424_v38 = vpop.permute.xlu1 %3608  ;;  %v9670_v10 = vld [vmem:[#allocation158_spill] sm:$0xff]  ;;  %v9671_v53 = vld [vmem:[#allocation159_spill] sm:$0xff] }
 0x3f3   : > { %v3432_v49 = vmul.f32 %v8222_v21, %v8202_v48  ;;  %v3439_v40 = vadd.f32 %v3427_v8, %v3344_v5  ;;  %v3516_v56 = vmul.f32 %v9667_v50, %v9666_v54  ;;  %v3517_v25 = vmul.f32 %v9667_v50, %v9668_v51  ;;  %v9672_v48 = vld [vmem:[#allocation166_spill] sm:$0xff]  ;;  %v3679_v5 = vpop.permute.xlu0 %3678  ;;  %v9673_v34 = vld [vmem:[#allocation167_spill] sm:$0xff]  ;;  %v9674_v8 = vld [vmem:[#allocation160_spill] sm:$0xff] }
 0x3f4   : > { %v3518_v13 = vmul.f32 %v8274_v62, %v9669_v11  ;;  %v3440_v23 = vadd.f32 %v3428_v9, %v3345_v12  ;;  %v3519_v14 = vmul.f32 %v8274_v62, %v9670_v10  ;;  %v3520_v32 = vmul.f32 %v8288_v60, %v9671_v53  ;;  %v9676_v9 = vld [vmem:[#allocation168_spill] sm:$0xff]  ;;  %v9678_v54 = vld [vmem:[#allocation171_spill] sm:$0xff]  ;;  %v9679_v51 = vld [vmem:[#allocation173_spill] sm:$0xff] }
 0x3f5   : > { %v3521_v21 = vmul.f32 %v8288_v60, %v9672_v48  ;;  %v3441_v33 = vadd.f32 %v3429_v19, %v3346_v44  ;;  %v3442_v58 = vadd.f32 %v3430_v63, %v3347_v27  ;;  %v3443_v39 = vadd.f32 %v3431_v2, %v3348_v41  ;;  %v9684_v53 = vld [vmem:[#allocation188_spill] sm:$0xff] }
 0x3f6   : > { %v3522_v15 = vmul.f32 %v8328_v55, %v9673_v34  ;;  %v3444_v59 = vadd.f32 %v3432_v49, %v3349_v22  ;;  %v3523_v12 = vmul.f32 %v8328_v55, %v9674_v8  ;;  %v3524_v62 = vmul.f32 %v8339_v7, %v9675_v24  ;;  %v3684_v27 = vpop.permute.xlu1 %3683  ;;  %v9677_v22 = vld [vmem:[#allocation170_spill] sm:$0xff] }
 0x3f7   : > { %v3525_v61 = vmul.f32 %v8339_v7, %v9676_v9  ;;  %v3528_v4 = vadd.f32 %v3516_v56, %v3433_v26  ;;  %v3529_v3 = vadd.f32 %v3517_v25, %v3434_v35  ;;  %v3530_v60 = vadd.f32 %v3518_v13, %v3435_v46  ;;  %v3689_v55 = vpop.permute.xlu0 %3688  ;;  %v9680_v26 = vld [vmem:[#allocation177_spill] sm:$0xff]  ;;  %v9682_v25 = vld [vmem:[#allocation208_spill] sm:$0xff]  ;;  %v9688_v8 = vld [vmem:[#allocation198_spill] sm:$0xff] }
 0x3f8   : > { %v3526_v44 = vmul.f32 %v8361_v28, %v8239_v30  ;;  %v3531_v41 = vadd.f32 %v3519_v14, %v3436_v45  ;;  %v3532_v19 = vadd.f32 %v3520_v32, %v3437_v37  ;;  %v3533_v63 = vadd.f32 %v3521_v21, %v3438_v29  ;;  %v9681_v45 = vld [vmem:[#allocation184_spill] sm:$0xff] }
 0x3f9   : > { %v3527_v2 = vmul.f32 %v8361_v28, %v9677_v22  ;;  %v3534_v49 = vadd.f32 %v3522_v15, %v3439_v40  ;;  %v3611_v50 = vmul.f32 %v8368_v31, %v9678_v54  ;;  %v3612_v7 = vmul.f32 %v8368_v31, %v9679_v51  ;;  %v9683_v31 = vld [vmem:[#allocation186_spill] sm:$0xff]  ;;  %v9685_v32 = vld [vmem:[#allocation212_spill] sm:$0xff] }
 0x3fa   : > { %v3613_v35 = vmul.f32 %v8386_v42, %v9680_v26  ;;  %v3535_v46 = vadd.f32 %v3523_v12, %v3440_v23  ;;  %v3536_v30 = vadd.f32 %v3524_v62, %v3441_v33  ;;  %v3537_v56 = vadd.f32 %v3525_v61, %v3442_v58  ;;  %v3694_v13 = vpop.permute.xlu1 %3693  ;;  %v9691_v51 = vld [vmem:[#allocation218_spill] sm:$0xff]  ;;  %v9692_v26 = vld [vmem:[#allocation195_spill] sm:$0xff] }
 0x3fb   : > { %v3614_v37 = vmul.f32 %v8386_v42, %v9681_v45  ;;  %v3538_v29 = vadd.f32 %v3526_v44, %v3443_v39  ;;  %v3615_v28 = vmul.f32 %v8394_v43, %v9682_v25  ;;  %v3706_v40 = vmul.f32 %v3679_v5, %v8283_v18  ;;  %v3699_v21 = vpop.permute.xlu0 %3698  ;;  %v9686_v39 = vld [vmem:[#allocation213_spill] sm:$0xff] }
 0x3fc   : > { %v3707_v11 = vmul.f32 %v3679_v5, %v8286_v0  ;;  %v3539_v10 = vadd.f32 %v3527_v2, %v3444_v59  ;;  %v3616_v14 = vmul.f32 %v8394_v43, %v9683_v31  ;;  %v3617_v23 = vmul.f32 %v3599_v52, %v9684_v53  ;;  %v9687_v5 = vld [vmem:[#allocation221_spill] sm:$0xff] }
 0x3fd   : > { %v3618_v48 = vmul.f32 %v3599_v52, %v9685_v32  ;;  %v3623_v33 = vadd.f32 %v3611_v50, %v3528_v4  ;;  %v3624_v42 = vadd.f32 %v3612_v7, %v3529_v3  ;;  %v3625_v58 = vadd.f32 %v3613_v35, %v3530_v60  ;;  %v9689_v3 = vld [vmem:[#allocation191_spill] sm:$0xff] }
 0x3fe   : > { %v3619_v34 = vmul.f32 %v8408_v16, %v9686_v39  ;;  %v3626_v15 = vadd.f32 %v3614_v37, %v3531_v41  ;;  %v3708_v18 = vmul.f32 %v3684_v27, %v8291_v17  ;;  %v3709_v0 = vmul.f32 %v3684_v27, %v8294_v6  ;;  %v3704_v24 = vpop.permute.xlu1 %3703 }
 0x3ff   : > { %v3710_v59 = vmul.f32 %v3689_v55, %v9687_v5  ;;  %v3627_v43 = vadd.f32 %v3615_v28, %v3532_v19  ;;  %v3711_v12 = vmul.f32 %v3689_v55, %v9688_v8  ;;  %v3719_v52 = vadd.f32 %v3707_v11, %v3624_v42  ;;  %v3739_v44 = vpop.permute.xlu0 %3738  ;;  %v9690_v55 = vld [vmem:[#allocation205_spill] sm:$0xff] }
 0x400   : > { %v3718_v62 = vadd.f32 %v3706_v40, %v3623_v33  ;;  %v3628_v9 = vadd.f32 %v3616_v14, %v3533_v63  ;;  %v3629_v61 = vadd.f32 %v3617_v23, %v3534_v49  ;;  %v3630_v4 = vadd.f32 %v3618_v48, %v3535_v46 }
 0x401   : > { %v3620_v60 = vmul.f32 %v8408_v16, %v9689_v3  ;;  %v3631_v41 = vadd.f32 %v3619_v34, %v3536_v30  ;;  %v3712_v17 = vmul.f32 %v3694_v13, %v8309_v57  ;;  %v3767_v27 = vadd.f32 %v3739_v44, %v3719_v52 }
 0x402   : > { %v3766_v6 = vadd.f32 %v3739_v44, %v3718_v62  ;;  %v3713_v19 = vmul.f32 %v3694_v13, %v8314_v36  ;;  %v3721_v63 = vadd.f32 %v3709_v0, %v3626_v15  ;;  %v3720_v22 = vadd.f32 %v3708_v18, %v3625_v58  ;;  %v3744_v57 = vpop.permute.xlu1 %3743 }
 0x403   : > { %v3722_v2 = vadd.f32 %v3710_v59, %v3627_v43  ;;  %v3714_v16 = vmul.f32 %v3699_v21, %v8317_v20  ;;  %v3715_v49 = vmul.f32 %v3699_v21, %v9690_v55  ;;  %v3723_v50 = vadd.f32 %v3711_v12, %v3628_v9  ;;  %v3749_v45 = vpop.permute.xlu0 %3748 }
 0x404   : > { %v4184_v54 = vpack.c.bf16 %v3767_v27, %v3766_v6  ;;  %v3621_v7 = vmul.f32 %v8424_v38, %v9691_v51  ;;  %v3622_v35 = vmul.f32 %v8424_v38, %v9692_v26  ;;  %v3768_v46 = vadd.f32 %v3744_v57, %v3720_v22 }
 0x405   : > { %v3769_v30 = vadd.f32 %v3744_v57, %v3721_v63  ;;  %v3632_v36 = vadd.f32 %v3620_v60, %v3537_v56  ;;  %v3770_v37 = vadd.f32 %v3749_v45, %v3722_v2  ;;  %v3771_v25 = vadd.f32 %v3749_v45, %v3723_v50 }
 0x406   : > { %3814 = vst [vmem:[%s8474_s27] sm:$0xff] %v4184_v54  ;;  %v3724_v20 = vadd.f32 %v3712_v17, %v3629_v61  ;;  %v3716_v28 = vmul.f32 %v3704_v24, %v8331_v1  ;;  %v3717_v40 = vmul.f32 %v3704_v24, %v8342_v47  ;;  %v3725_v13 = vadd.f32 %v3713_v19, %v3630_v4  ;;  %v3754_v14 = vpop.permute.xlu1 %3753 }
 0x407   : > { %v4185_v11 = vpack.c.bf16 %v3769_v30, %v3768_v46  ;;  %v4186_v31 = vpack.c.bf16 %v3771_v25, %v3770_v37  ;;  %v3726_v53 = vadd.f32 %v3714_v16, %v3631_v41  ;;  %v3727_v38 = vadd.f32 %v3715_v49, %v3632_v36  ;;  %v3759_v21 = vpop.permute.xlu0 %3758 }
 0x408   : > { %v3633_v23 = vadd.f32 %v3621_v7, %v3538_v29  ;;  %v3634_v32 = vadd.f32 %v3622_v35, %v3539_v10  ;;  %v3772_v56 = vadd.f32 %v3754_v14, %v3724_v20  ;;  %v3773_v48 = vadd.f32 %v3754_v14, %v3725_v13 }
 0x409   : > { %3815 = vst [vmem:[%s8474_s27 + $0x8] sm:$0xff] %v4185_v11  ;;  %3816 = vst [vmem:[%s8474_s27 + $0x10] sm:$0xff] %v4186_v31  ;;  %v3774_v33 = vadd.f32 %v3759_v21, %v3726_v53  ;;  %v3775_v1 = vadd.f32 %v3759_v21, %v3727_v38 }
 0x40a   : > { %v4187_v42 = vpack.c.bf16 %v3773_v48, %v3772_v56  ;;  %v3728_v47 = vadd.f32 %v3716_v28, %v3633_v23  ;;  %v3729_v58 = vadd.f32 %v3717_v40, %v3634_v32  ;;  %v3764_v34 = vpop.permute.xlu1 %3763 }
 0x40b   : > { %v4188_v39 = vpack.c.bf16 %v3775_v1, %v3774_v33 }
 0x40c   : > { %3817 = vst [vmem:[%s8474_s27 + $0x18] sm:$0xff] %v4187_v42  ;;  %v3776_v15 = vadd.f32 %v3764_v34, %v3728_v47  ;;  %v3777_v18 = vadd.f32 %v3764_v34, %v3729_v58 }
 0x40d   : > { %3818 = vst [vmem:[%s8474_s27 + $0x20] sm:$0xff] %v4188_v39 }
 0x40e   : > { %v4189_v29 = vpack.c.bf16 %v3777_v18, %v3776_v15 }
 0x410   : > { %3819 = vst [vmem:[%s8474_s27 + $0x28] sm:$0xff] %v4189_v29 }
 0x411 PF: > { %s16_s23 = sadd.s32 1, %s4266_s23   ;;  %s9693_s21 = smov %s4262_s22 }
 0x412   : > { %p13_p5 = scmp.ge.s32.totalorder %s16_s23, 4   ;;  %s9694_s22 = smov %s9696_s24 }
 0x414   :  { %15 = sbr.rel (!%p13_p5) target bundleno = 2 (0x2), region = 138 }

</bundles_post_ra>
